<compile_context>
chip_gen: v5e
topology: v5e:2x2
jax: 0.10.0
libtpu: 0.0.40
codegen_flags: <defaults>
</compile_context>

<pallas_src>
import jax
import jax.numpy as jnp
from jax import lax
from jax.experimental import pallas as pl
from jax.experimental.pallas import tpu as pltpu


def _round_up(a, b):
    return ((a + b - 1) // b) * b


def _num_tensorcores():
    """2 on v7x-class chips (megacore), 1 on v5e/v6e.  Best-effort detection."""
    try:
        kind = jax.devices()[0].device_kind.lower()
    except Exception:
        return 1
    return 2 if any(tag in kind for tag in ("v7", "7x", "tpu7")) else 1


# ---------------------------------------------------------------------------
# Kernel
# ---------------------------------------------------------------------------
def cnn_kernel(xp_ref, w1_ref, b1_ref, w2_ref, b2_ref, o_ref):
    # xp_ref: (TR, F+2)   zero-padded input rows (cols 0 and F+1 are zero)
    # w1_ref: (F+2, F*H)  banded conv1 weights (bf16 by default)
    # b1_ref: (1, F*H)    conv1 bias tiled over F (f32)
    # w2_ref: (F*H, F*H)  block-tridiagonal conv2 weights (bf16 by default)
    # b2_ref: (1, F*H)    conv2 bias tiled over F (f32)
    # o_ref:  (TR, F*H)   lane-dense output block
    x = xp_ref[...]

    y1 = jnp.dot(x.astype(w1_ref.dtype), w1_ref[...],
                 preferred_element_type=jnp.float32)
    y1 = jnp.maximum(y1 + b1_ref[...], 0.0)          # relu(conv1), (TR, F*H) f32

    y2 = jnp.dot(y1.astype(w2_ref.dtype), w2_ref[...],
                 preferred_element_type=jnp.float32)
    y2 = jnp.maximum(y2 + b2_ref[...], 0.0)          # relu(conv2), (TR, F*H) f32

    o_ref[...] = y2.astype(o_ref.dtype)              # unmasked full-lane store


# ---------------------------------------------------------------------------
# One-time parameter preparation (call once per weight update)
# ---------------------------------------------------------------------------
def build_cnn_banded_params(w1_t, b1, w2_t, b2, num_features, *,
                            mm_dtype=jnp.bfloat16):
    """Fold the 3-tap (1,3) convs into banded matmul weights.

    PyTorch Conv2d layouts: w1_t (H, 1, 1, 3), b1 (H,), w2_t (H, H, 1, 3),
    b2 (H,).  `num_features` is F (the last dim of x).  Returns a dict of
    device arrays to be passed to cnn_forward_pallas.
    """
    F = int(num_features)
    H = int(w1_t.shape[0])

    w1k = jnp.transpose(w1_t[:, 0, 0, :], (1, 0))        # (3, H)        [k, co]
    w2k = jnp.transpose(w2_t[:, :, 0, :], (2, 1, 0))     # (3, H, H) [k, ci, co]

    # W1big[f+k, f*H+co] = w1k[k, co]   (xp column index = f + k; xp has a
    # one-element zero pad on each side of the feature axis)
    blocks1 = []
    for f in range(F):
        blk = jnp.zeros((F + 2, H), jnp.float32)
        blk = blk.at[f:f + 3, :].set(w1k)
        blocks1.append(blk)
    w1big = jnp.concatenate(blocks1, axis=1)              # (F+2, F*H)

    # W2big[fi*H+ci, fo*H+co] = w2k[fi-fo+1, ci, co]  for |fi - fo| <= 1
    blocks2 = []
    for fo in range(F):
        blk = jnp.zeros((F * H, H), jnp.float32)
        lo, hi = max(fo - 1, 0), min(fo + 1, F - 1)
        sub = jnp.concatenate([w2k[fi - fo + 1] for fi in range(lo, hi + 1)],
                              axis=0)
        blk = blk.at[lo * H:(hi + 1) * H, :].set(sub)
        blocks2.append(blk)
    w2big = jnp.concatenate(blocks2, axis=1)               # (F*H, F*H)

    b1big = jnp.tile(b1.astype(jnp.float32), F).reshape(1, F * H)
    b2big = jnp.tile(b2.astype(jnp.float32), F).reshape(1, F * H)

    return dict(
        w1big=jnp.asarray(w1big, mm_dtype),
        b1big=jnp.asarray(b1big, jnp.float32),
        w2big=jnp.asarray(w2big, mm_dtype),
        b2big=jnp.asarray(b2big, jnp.float32),
        H=H, F=F,
    )


# ---------------------------------------------------------------------------
# Forward wrapper
# ---------------------------------------------------------------------------
def cnn_forward_pallas(x, params, *, tile_rows=1024, out_dtype=jnp.float32,
                       pytorch_layout=False):
    """x: (B, S, 1, N, F); params from build_cnn_banded_params.

    Returns lane-dense (B, S, N, F*H) by default (column index = f*H + h),
    which is the layout a downstream Pallas LSTM kernel should consume.
    With pytorch_layout=True, returns the exact PyTorch (B, S, H*F, N)
    (costs one extra full HBM pass over the output -- keep off the hot path).
    Set out_dtype=jnp.bfloat16 to halve the kernel's HBM writeback when the
    consumer can take bf16.
    """
    B, S, C, N, F = x.shape
    assert C == 1, "forward's .view(B*S, 1, N, -1) implies a single input channel"
    H = params["H"]
    assert F == params["F"], "params were built for a different feature count"
    FH = F * H
    R = B * S * N

    # ---- row tile selection ------------------------------------------------
    n_cores = _num_tensorcores()
    tr_max = _round_up(min(int(tile_rows), max(R, 8)), 8)
    if n_cores >= 2:
        # Keep both TensorCores busy with pipeline depth on each: aim for
        # 2*n_cores grid steps when R is large enough, never fewer than
        # n_cores steps.
        target_steps = 2 * n_cores if R >= 16 * n_cores else n_cores
        tr = min(tr_max, max(8, _round_up(pl.cdiv(R, target_steps), 8)))
    else:
        # Single-TC chips (v5e/v6e): biggest tile wins; no megacore cap.
        tr = tr_max
    Rp = _round_up(R, tr)
    grid = Rp // tr
    if n_cores >= 2 and grid % n_cores != 0:
        grid = _round_up(grid, n_cores)       # balanced split across the 2 TCs
        Rp = grid * tr

    # ---- input prep --------------------------------------------------------
    # Pad rows to a tile multiple and the feature axis by one zero on each
    # side (the +/-1 stencil shifts live in the banded weights).
    xk = x.reshape(R, F).astype(jnp.float32)
    xp = jnp.pad(xk, ((0, Rp - R), (1, 1)))               # (Rp, F+2)

    out_k = pl.pallas_call(
        cnn_kernel,
        out_shape=jax.ShapeDtypeStruct((Rp, FH), out_dtype),
        grid_spec=pltpu.PrefetchScalarGridSpec(
            num_scalar_prefetch=0,
            grid=(grid,),
            in_specs=[
                pl.BlockSpec((tr, F + 2), lambda i: (i, 0)),
                pl.BlockSpec((F + 2, FH), lambda i: (0, 0)),
                pl.BlockSpec((1, FH), lambda i: (0, 0)),
                pl.BlockSpec((FH, FH), lambda i: (0, 0)),
                pl.BlockSpec((1, FH), lambda i: (0, 0)),
            ],
            out_specs=pl.BlockSpec((tr, FH), lambda i: (i, 0)),
        ),
        compiler_params=pltpu.CompilerParams(
            dimension_semantics=("parallel",),
            vmem_limit_bytes=32 * 1024 * 1024,
        ),
    )(xp, params["w1big"], params["b1big"], params["w2big"], params["b2big"])

    out = out_k[:R].reshape(B, S, N, FH)                   # lane-dense layout
    if pytorch_layout:
        out = lane_dense_to_pytorch_layout(out, H)
    return out


def lane_dense_to_pytorch_layout(out_ld, hidden_dim):
    """(B, S, N, F*H) lane-dense -> exact PyTorch (B, S, H*F, N) view layout.

    This is one extra full HBM read+write of the output; use only when the
    exact module layout is required (it is NOT needed by a fused LSTM kernel).
    """
    B, S, N, FH = out_ld.shape
    F = FH // hidden_dim
    out = out_ld.reshape(B, S, N, F, hidden_dim)
    out = jnp.transpose(out, (0, 1, 4, 2, 3))              # (B, S, H, N, F)
    # Raw reshape mirrors PyTorch's .view(B, S, -1, N) on the contiguous
    # (B*S, H, N, F) tensor.
    return out.reshape(B, S, hidden_dim * F, N)


# ---------------------------------------------------------------------------
# Pure-JAX reference (mirrors the PyTorch module exactly)
# ---------------------------------------------------------------------------
def cnn_forward_ref(x, w1_t, b1, w2_t, b2):
    B, S, C, N, F = x.shape
    H = w1_t.shape[0]
    xr = x.reshape(B * S, 1, N, F)
    dn = ('NCHW', 'OIHW', 'NCHW')
    y1 = lax.conv_general_dilated(xr, w1_t, (1, 1), ((0, 0), (1, 1)),
                                  dimension_numbers=dn)
    y1 = jax.nn.relu(y1 + b1[None, :, None, None])
    y2 = lax.conv_general_dilated(y1, w2_t, (1, 1), ((0, 0), (1, 1)),
                                  dimension_numbers=dn)
    y2 = jax.nn.relu(y2 + b2[None, :, None, None])
    return y2.reshape(B, S, H * F, N)


if __name__ == "__main__":
    B, S, N, F = 2, 8, 16, 16     # batch, seq, num_nodes, features-per-node
    INPUT_DIM, HIDDEN = 1, 32

    key = jax.random.PRNGKey(0)
    kx, k1, k2, k3, k4 = jax.random.split(key, 5)

    x = jax.random.normal(kx, (B, S, INPUT_DIM, N, F), dtype=jnp.float32)
    # deterministic synthetic parameters (PyTorch Conv2d shapes)
    w1_t = 0.1 * jax.random.normal(k1, (HIDDEN, INPUT_DIM, 1, 3), jnp.float32)
    b1 = 0.1 * jax.random.normal(k2, (HIDDEN,), jnp.float32)
    w2_t = 0.1 * jax.random.normal(k3, (HIDDEN, HIDDEN, 1, 3), jnp.float32)
    b2 = 0.1 * jax.random.normal(k4, (HIDDEN,), jnp.float32)

    ref = cnn_forward_ref(x, w1_t, b1, w2_t, b2)

    # --- f32-MXU path: exact check against the conv reference ---------------
    params_f32 = build_cnn_banded_params(w1_t, b1, w2_t, b2, F,
                                         mm_dtype=jnp.float32)
    out_f32 = cnn_forward_pallas(x, params_f32, pytorch_layout=True)
    out_f32 = jax.block_until_ready(out_f32)
    assert out_f32.shape == (B, S, HIDDEN * F, N), out_f32.shape
    assert jnp.allclose(out_f32, ref, rtol=1e-5, atol=1e-5), \
        float(jnp.max(jnp.abs(out_f32 - ref)))

    # --- default hot path: bf16 MXU (f32 accum), lane-dense output ----------
    params = build_cnn_banded_params(w1_t, b1, w2_t, b2, F)   # bf16 weights
    out_ld = cnn_forward_pallas(x, params)                    # (B, S, N, F*H)
    out_ld = jax.block_until_ready(out_ld)
    assert out_ld.shape == (B, S, N, F * HIDDEN), out_ld.shape
    out_bf = lane_dense_to_pytorch_layout(out_ld, HIDDEN)
    # bf16 weights/activations -> relaxed tolerance (expected ~1e-2 rel).
    assert jnp.allclose(out_bf, ref, rtol=5e-2, atol=5e-2), \
        float(jnp.max(jnp.abs(out_bf - ref)))

    print("KERNEL_OK")
</pallas_src>

<mosaic_0001>
module attributes {stable_mosaic.version = 11 : i64} {
  func.func @cnn_kernel(%arg0: i32, %arg1: memref<256x18xf32, #tpu.memory_space<vmem>>, %arg2: memref<18x512xf32, #tpu.memory_space<vmem>>, %arg3: memref<1x512xf32, #tpu.memory_space<vmem>>, %arg4: memref<512x512xf32, #tpu.memory_space<vmem>>, %arg5: memref<1x512xf32, #tpu.memory_space<vmem>>, %arg6: memref<256x512xf32, #tpu.memory_space<vmem>>) attributes {dimension_semantics = [#tpu.dimension_semantics<parallel>], iteration_bounds = array<i64: 1>, scalar_prefetch = 0 : i64, scratch_operands = 0 : i64, tpu.core_type = #tpu.core_type<tc>, window_params = [{transform_indices = @transform_0, window_bounds = array<i64: 256, 18>}, {pipeline_mode = #tpu.pipeline_mode<synchronous>, transform_indices = @transform_1, window_bounds = array<i64: 18, 512>}, {pipeline_mode = #tpu.pipeline_mode<synchronous>, transform_indices = @transform_2, window_bounds = array<i64: 1, 512>}, {pipeline_mode = #tpu.pipeline_mode<synchronous>, transform_indices = @transform_3, window_bounds = array<i64: 512, 512>}, {pipeline_mode = #tpu.pipeline_mode<synchronous>, transform_indices = @transform_4, window_bounds = array<i64: 1, 512>}, {transform_indices = @transform_5, window_bounds = array<i64: 256, 512>}]} {
    %c0 = arith.constant 0 : index
    %c0_0 = arith.constant 0 : index
    %0 = vector.load %arg1[%c0, %c0_0] : memref<256x18xf32, #tpu.memory_space<vmem>>, vector<256x18xf32>
    %c0_1 = arith.constant 0 : index
    %c0_2 = arith.constant 0 : index
    %1 = vector.load %arg2[%c0_1, %c0_2] : memref<18x512xf32, #tpu.memory_space<vmem>>, vector<18x512xf32>
    %cst = arith.constant dense<0.000000e+00> : vector<256x512xf32>
    %2 = tpu.matmul %0, %1, %cst {dimension_numbers = #tpu.dot_dimension_numbers<[1], [0], [0], [1], [0, 0, 1, 1], [], []>} : vector<256x18xf32>, vector<18x512xf32>, vector<256x512xf32> -> vector<256x512xf32>
    %c0_3 = arith.constant 0 : index
    %c0_4 = arith.constant 0 : index
    %3 = vector.load %arg3[%c0_3, %c0_4] : memref<1x512xf32, #tpu.memory_space<vmem>>, vector<1x512xf32>
    %4 = vector.broadcast %3 : vector<1x512xf32> to vector<256x512xf32>
    %5 = arith.addf %2, %4 : vector<256x512xf32>
    %cst_5 = arith.constant 0.000000e+00 : f32
    %6 = vector.broadcast %cst_5 : f32 to vector<256x512xf32>
    %7 = arith.maximumf %5, %6 : vector<256x512xf32>
    %c0_6 = arith.constant 0 : index
    %c0_7 = arith.constant 0 : index
    %8 = vector.load %arg4[%c0_6, %c0_7] : memref<512x512xf32, #tpu.memory_space<vmem>>, vector<512x512xf32>
    %cst_8 = arith.constant dense<0.000000e+00> : vector<256x512xf32>
    %9 = tpu.matmul %7, %8, %cst_8 {dimension_numbers = #tpu.dot_dimension_numbers<[1], [0], [0], [1], [0, 0, 1, 1], [], []>} : vector<256x512xf32>, vector<512x512xf32>, vector<256x512xf32> -> vector<256x512xf32>
    %c0_9 = arith.constant 0 : index
    %c0_10 = arith.constant 0 : index
    %10 = vector.load %arg5[%c0_9, %c0_10] : memref<1x512xf32, #tpu.memory_space<vmem>>, vector<1x512xf32>
    %11 = vector.broadcast %10 : vector<1x512xf32> to vector<256x512xf32>
    %12 = arith.addf %9, %11 : vector<256x512xf32>
    %cst_11 = arith.constant 0.000000e+00 : f32
    %13 = vector.broadcast %cst_11 : f32 to vector<256x512xf32>
    %14 = arith.maximumf %12, %13 : vector<256x512xf32>
    %c0_12 = arith.constant 0 : index
    %c0_13 = arith.constant 0 : index
    %15 = vector.load %arg6[%c0_12, %c0_13] : memref<256x512xf32, #tpu.memory_space<vmem>>, vector<256x512xf32>
    tpu.vector_store %arg6[%c0_12, %c0_13], %14 {strides = array<i32>} : memref<256x512xf32, #tpu.memory_space<vmem>>, vector<256x512xf32>,
    return
  }
  func.func @transform_0(%arg0: i32) -> (i32, i32) {
    %c0_i32 = arith.constant 0 : i32
    %c0_i32_0 = arith.constant 0 : i32
    return %arg0, %c0_i32 : i32, i32
  }
  func.func @transform_1(%arg0: i32) -> (i32, i32) {
    %c0_i32 = arith.constant 0 : i32
    %c0_i32_0 = arith.constant 0 : i32
    %c0_i32_1 = arith.constant 0 : i32
    return %c0_i32, %c0_i32_0 : i32, i32
  }
  func.func @transform_2(%arg0: i32) -> (i32, i32) {
    %c0_i32 = arith.constant 0 : i32
    %c0_i32_0 = arith.constant 0 : i32
    %c0_i32_1 = arith.constant 0 : i32
    return %c0_i32, %c0_i32_0 : i32, i32
  }
  func.func @transform_3(%arg0: i32) -> (i32, i32) {
    %c0_i32 = arith.constant 0 : i32
    %c0_i32_0 = arith.constant 0 : i32
    %c0_i32_1 = arith.constant 0 : i32
    return %c0_i32, %c0_i32_0 : i32, i32
  }
  func.func @transform_4(%arg0: i32) -> (i32, i32) {
    %c0_i32 = arith.constant 0 : i32
    %c0_i32_0 = arith.constant 0 : i32
    %c0_i32_1 = arith.constant 0 : i32
    return %c0_i32, %c0_i32_0 : i32, i32
  }
  func.func @transform_5(%arg0: i32) -> (i32, i32) {
    %c0_i32 = arith.constant 0 : i32
    %c0_i32_0 = arith.constant 0 : i32
    return %arg0, %c0_i32 : i32, i32
  }
}

</mosaic_0001>

<bundles_post_ra>
// kernel: tpu_custom_call.1
= control target key start
LH: loop header
LB: loop body
LE: loop exit
PB: predicated region body
PF: predicated region fallthrough
CT: control target
= control target key end

     0   :  { %10 = vsyncpa [#allocation3], 0  ;;  %s5066_s0 = inlined_call_operand.vmem [shape: f32[256,18], index: 0, kind: input, shape index: {}]   ;;  %s5067_s1 = inlined_call_operand.vmem [shape: f32[18,512], index: 1, kind: input, shape index: {}]   ;;  %s5068_s2 = inlined_call_operand.vmem [shape: f32[1,512], index: 2, kind: input, shape index: {}]   ;;  %s5069_s3 = inlined_call_operand.hbm [shape: f32[512,512], index: 3, kind: input, shape index: {}]   ;;  %s5070_s4 = inlined_call_operand.vmem [shape: f32[1,512], index: 4, kind: input, shape index: {}]   ;;  %s5071_s5 = inlined_call_operand.hbm [shape: f32[256,512], index: 5, kind: output, shape index: {}]  }
   0x1   :  { %11 = vsyncpa [#allocation4], 0  ;;  %s22_s20 = sshll.u32 %s5069_s3, 4  ;;  %s3320_s21 = smov [#allocation2]   ;;  %s23_s20 = int_to_ptr.hbm [resolvable:$true] %s22_s20 }
   0x2   :  { %s24_s22 = sshll.u32 %s3320_s21, 4  ;;  %s3321_s23 = smov 512   ;;  %s25_s22 = int_to_ptr.vmem [resolvable:$true] %s24_s22 }
   0x3   :  { %s3322_s24 = smov 32  }
   0x4   :  { %30 = dma.hbm_to_vmem [thread:$0]  %s23_s20, 32768, %s25_s22, [#allocation3], %s3321_s23, %s3321_s23, %s3322_s24  }
   0x5   :  { %3316 = dma.done.wait [#allocation3], 32768  }
   0x6   :  { %3317 = vsyncadd [#allocation3], 4294934528  ;;  %vm188_vm0 = vcmask 1041408   ;;  %v77_v0 = vld [vmem:[%s5067_s1 + $0x40] sm:$0x3]  ;;  %v74_v5 = vld [vmem:[%s5067_s1 + $0x28] sm:$0xff] }
   0x7   :  { %v78_v1 = vld [vmem:[%s5067_s1 + $0x48] sm:$0x3]  ;;  %v79_v2 = vld [vmem:[%s5067_s1 + $0x50] sm:$0x3]  ;;  %3130 = vmatpush.msk.msra.mxu0 %vm188_vm0, %v77_v0  ;;  %v80_v3 = vld [vmem:[%s5067_s1 + $0x58] sm:$0x3] }
   0x8   :  { %3163 = vmatpush.msk.msra.mxu1 %vm188_vm0, %v78_v1  ;;  %v73_v4 = vld [vmem:[%s5067_s1 + $0x20] sm:$0xff]  ;;  %3196 = vmatpush.msk.msra.mxu2 %vm188_vm0, %v79_v2  ;;  %v75_v6 = vld [vmem:[%s5067_s1 + $0x30] sm:$0xff]  ;;  %v76_v7 = vld [vmem:[%s5067_s1 + $0x38] sm:$0xff]  ;;  %vm91_vm1 = vcmask 146432   ;;  %s3117_s21 = sshll.u32 %s5071_s5, 4  ;;  %s3118_s21 = int_to_ptr.hbm [resolvable:$true] %s3117_s21 }
   0x9   :  { %3229 = vmatpush.msk.msra.mxu3 %vm188_vm0, %v80_v3  ;;  %v69_v8 = vld [vmem:[%s5067_s1] sm:$0xff]  ;;  %215 = vmatpush.msra.mxu0 %v73_v4  ;;  %v70_v9 = vld [vmem:[%s5067_s1 + $0x8] sm:$0xff]  ;;  %v71_v10 = vld [vmem:[%s5067_s1 + $0x10] sm:$0xff] }
   0xa   :  { %328 = vmatpush.msra.mxu1 %v74_v5  ;;  %v72_v11 = vld [vmem:[%s5067_s1 + $0x18] sm:$0xff]  ;;  %441 = vmatpush.msra.mxu2 %v75_v6  ;;  %v37_v12 = vld [vmem:[%s5066_s0] sm:$0xff]  ;;  %v38_v25 = vld [vmem:[%s5066_s0 + $0x8] sm:$0xff] }
   0xb   :  { %554 = vmatpush.msra.mxu3 %v76_v7  ;;  %216 = vmatpush.msra.mxu0 %v69_v8  ;;  %v969_v13 = vld [vmem:[#allocation2 + $0x5e0] sm:$0xff]  ;;  %v39_v26 = vld [vmem:[%s5066_s0 + $0x10] sm:$0xff]  ;;  %v40_v31 = vld [vmem:[%s5066_s0 + $0x18] sm:$0xff] }
   0xc   :  { %329 = vmatpush.msra.mxu1 %v70_v9  ;;  %442 = vmatpush.msra.mxu2 %v71_v10  ;;  %v841_v14 = vld [vmem:[#allocation2 + $0x1e0] sm:$0xff]  ;;  %v42_v37 = vld [vmem:[%s5066_s0 + $0x28] sm:$0xff]  ;;  %v43_v38 = vld [vmem:[%s5066_s0 + $0x30] sm:$0xff] }
   0xd   :  { %555 = vmatpush.msra.mxu3 %v72_v11  ;;  %3131 = vmatmul.msk.f32.vlgmr.msra.gmra.mxu0 %vm91_vm1, %v37_v12  ;;  %v1033_v15 = vld [vmem:[#allocation2 + $0x7e0] sm:$0xff]  ;;  %v44_v43 = vld [vmem:[%s5066_s0 + $0x38] sm:$0xff]  ;;  %v46_v49 = vld [vmem:[%s5066_s0 + $0x48] sm:$0xff] }
   0xe   :  { %3164 = vmatmul.msk.f32.vlgmr.msra.gmra.mxu1 %vm91_vm1, %v37_v12  ;;  %v905_v16 = vld [vmem:[#allocation2 + $0x3e0] sm:$0xff]  ;;  %3197 = vmatmul.msk.f32.vlgmr.msra.gmra.mxu2 %vm91_vm1, %v37_v12  ;;  %v47_v50 = vld [vmem:[%s5066_s0 + $0x50] sm:$0xff]  ;;  %v48_v55 = vld [vmem:[%s5066_s0 + $0x58] sm:$0xff] }
   0xf   :  { %3230 = vmatmul.msk.f32.vlgmr.msra.gmra.mxu3 %vm91_vm1, %v37_v12  ;;  %v965_v17 = vld [vmem:[#allocation2 + $0x5c0] sm:$0xff]  ;;  %1273 = vmatpush.msrb.mxu2 %v969_v13  ;;  %v50_v60 = vld [vmem:[%s5066_s0 + $0x68] sm:$0xff]  ;;  %v51_v62 = vld [vmem:[%s5066_s0 + $0x70] sm:$0xff] }
  0x10   :  { %v837_v18 = vld [vmem:[#allocation2 + $0x1c0] sm:$0xff]  ;;  %1047 = vmatpush.msrb.mxu0 %v841_v14  ;;  %1386 = vmatpush.msrb.mxu3 %v1033_v15  ;;  %v52_v2 = vld [vmem:[%s5066_s0 + $0x78] sm:$0xff]  ;;  %v54_v14 = vld [vmem:[%s5066_s0 + $0x88] sm:$0xff] }
  0x11   :  { %v1029_v19 = vld [vmem:[#allocation2 + $0x7c0] sm:$0xff]  ;;  %1160 = vmatpush.msrb.mxu1 %v905_v16  ;;  %1274 = vmatpush.msrb.mxu2 %v965_v17 }
  0x12   :  { %v901_v20 = vld [vmem:[#allocation2 + $0x3c0] sm:$0xff]  ;;  %1048 = vmatpush.msrb.mxu0 %v837_v18  ;;  %1387 = vmatpush.msrb.mxu3 %v1029_v19 }
  0x13   :  { %v961_v21 = vld [vmem:[#allocation2 + $0x5a0] sm:$0xff]  ;;  %1161 = vmatpush.msrb.mxu1 %v901_v20  ;;  %v55_v20 = vld [vmem:[%s5066_s0 + $0x90] sm:$0xff] }
  0x14   :  { %v833_v22 = vld [vmem:[#allocation2 + $0x1a0] sm:$0xff]  ;;  %1275 = vmatpush.msrb.mxu2 %v961_v21 }
  0x15   :  { %v1025_v23 = vld [vmem:[#allocation2 + $0x7a0] sm:$0xff]  ;;  %1049 = vmatpush.msrb.mxu0 %v833_v22 }
  0x16   :  { %v897_v24 = vld [vmem:[#allocation2 + $0x3a0] sm:$0xff]  ;;  %1388 = vmatpush.msrb.mxu3 %v1025_v23  ;;  %3132 = vmatmul.msk.f32.gmra.mxu0 %vm91_vm1, %v38_v25 }
  0x17   :  { %1162 = vmatpush.msrb.mxu1 %v897_v24  ;;  %3198 = vmatmul.msk.f32.gmra.mxu2 %vm91_vm1, %v38_v25  ;;  %v957_v27 = vld [vmem:[#allocation2 + $0x580] sm:$0xff] }
  0x18   :  { %3165 = vmatmul.msk.f32.gmra.mxu1 %vm91_vm1, %v38_v25  ;;  %3231 = vmatmul.msk.f32.gmra.mxu3 %vm91_vm1, %v38_v25  ;;  %v829_v28 = vld [vmem:[#allocation2 + $0x180] sm:$0xff] }
  0x19   :  { %v1021_v29 = vld [vmem:[#allocation2 + $0x780] sm:$0xff]  ;;  %1276 = vmatpush.msrb.mxu2 %v957_v27  ;;  %1050 = vmatpush.msrb.mxu0 %v829_v28  ;;  %v56_v28 = vld [vmem:[%s5066_s0 + $0x98] sm:$0xff] }
  0x1a   :  { %v893_v30 = vld [vmem:[#allocation2 + $0x380] sm:$0xff]  ;;  %1389 = vmatpush.msrb.mxu3 %v1021_v29 }
  0x1b   :  { %1163 = vmatpush.msrb.mxu1 %v893_v30  ;;  %v41_v32 = vld [vmem:[%s5066_s0 + $0x20] sm:$0xff] }
  0x1c   :  { %v953_v33 = vld [vmem:[#allocation2 + $0x560] sm:$0xff] }
  0x1d   :  { %v825_v34 = vld [vmem:[#allocation2 + $0x160] sm:$0xff]  ;;  %1277 = vmatpush.msrb.mxu2 %v953_v33 }
  0x1e   :  { %3133 = vmatmul.msk.f32.gmra.mxu0 %vm91_vm1, %v39_v26  ;;  %v1017_v35 = vld [vmem:[#allocation2 + $0x760] sm:$0xff] }
  0x1f   :  { %3199 = vmatmul.msk.f32.gmra.mxu2 %vm91_vm1, %v39_v26  ;;  %1051 = vmatpush.msrb.mxu0 %v825_v34  ;;  %v889_v36 = vld [vmem:[#allocation2 + $0x360] sm:$0xff] }
  0x20   :  { %3166 = vmatmul.msk.f32.gmra.mxu1 %vm91_vm1, %v39_v26  ;;  %3232 = vmatmul.msk.f32.gmra.mxu3 %vm91_vm1, %v39_v26  ;;  %v949_v39 = vld [vmem:[#allocation2 + $0x540] sm:$0xff] }
  0x21   :  { %1390 = vmatpush.msrb.mxu3 %v1017_v35  ;;  %1164 = vmatpush.msrb.mxu1 %v889_v36  ;;  %v821_v40 = vld [vmem:[#allocation2 + $0x140] sm:$0xff] }
  0x22   :  { %v1013_v41 = vld [vmem:[#allocation2 + $0x740] sm:$0xff]  ;;  %1278 = vmatpush.msrb.mxu2 %v949_v39  ;;  %1052 = vmatpush.msrb.mxu0 %v821_v40 }
  0x23   :  { %v885_v42 = vld [vmem:[#allocation2 + $0x340] sm:$0xff]  ;;  %1391 = vmatpush.msrb.mxu3 %v1013_v41 }
  0x24   :  { %1165 = vmatpush.msrb.mxu1 %v885_v42  ;;  %v45_v44 = vld [vmem:[%s5066_s0 + $0x40] sm:$0xff]  ;;  %v58_v42 = vld [vmem:[%s5066_s0 + $0xa8] sm:$0xff] }
  0x25   :  { %v945_v45 = vld [vmem:[#allocation2 + $0x520] sm:$0xff] }
  0x26   :  { %3134 = vmatmul.msk.f32.gmra.mxu0 %vm91_vm1, %v40_v31  ;;  %v817_v46 = vld [vmem:[#allocation2 + $0x120] sm:$0xff]  ;;  %1279 = vmatpush.msrb.mxu2 %v945_v45 }
  0x27   :  { %3200 = vmatmul.msk.f32.gmra.mxu2 %vm91_vm1, %v40_v31  ;;  %v1009_v47 = vld [vmem:[#allocation2 + $0x720] sm:$0xff]  ;;  %1053 = vmatpush.msrb.mxu0 %v817_v46 }
  0x28   :  { %3167 = vmatmul.msk.f32.gmra.mxu1 %vm91_vm1, %v40_v31  ;;  %3233 = vmatmul.msk.f32.gmra.mxu3 %vm91_vm1, %v40_v31  ;;  %v881_v48 = vld [vmem:[#allocation2 + $0x320] sm:$0xff] }
  0x29   :  { %1392 = vmatpush.msrb.mxu3 %v1009_v47  ;;  %1166 = vmatpush.msrb.mxu1 %v881_v48  ;;  %v941_v51 = vld [vmem:[#allocation2 + $0x500] sm:$0xff]  ;;  %v59_v48 = vld [vmem:[%s5066_s0 + $0xb0] sm:$0xff] }
  0x2a   :  { %v813_v52 = vld [vmem:[#allocation2 + $0x100] sm:$0xff]  ;;  %1280 = vmatpush.msrb.mxu2 %v941_v51 }
  0x2b   :  { %v1005_v53 = vld [vmem:[#allocation2 + $0x700] sm:$0xff]  ;;  %1054 = vmatpush.msrb.mxu0 %v813_v52 }
  0x2c   :  { %v877_v54 = vld [vmem:[#allocation2 + $0x300] sm:$0xff]  ;;  %1393 = vmatpush.msrb.mxu3 %v1005_v53 }
  0x2d   :  { %1167 = vmatpush.msrb.mxu1 %v877_v54  ;;  %v49_v56 = vld [vmem:[%s5066_s0 + $0x60] sm:$0xff] }
  0x2e   :  { %3135 = vmatmul.msk.f32.gmra.mxu0 %vm91_vm1, %v41_v32  ;;  %v937_v57 = vld [vmem:[#allocation2 + $0x4e0] sm:$0xff] }
  0x2f   :  { %3201 = vmatmul.msk.f32.gmra.mxu2 %vm91_vm1, %v41_v32  ;;  %v809_v58 = vld [vmem:[#allocation2 + $0xe0] sm:$0xff] }
  0x30   :  { %3168 = vmatmul.msk.f32.gmra.mxu1 %vm91_vm1, %v41_v32  ;;  %3234 = vmatmul.msk.f32.gmra.mxu3 %vm91_vm1, %v41_v32  ;;  %v1001_v59 = vld [vmem:[#allocation2 + $0x6e0] sm:$0xff] }
  0x31   :  { %1281 = vmatpush.msrb.mxu2 %v937_v57  ;;  %1055 = vmatpush.msrb.mxu0 %v809_v58  ;;  %v873_v61 = vld [vmem:[#allocation2 + $0x2e0] sm:$0xff] }
  0x32   :  { %1394 = vmatpush.msrb.mxu3 %v1001_v59  ;;  %1168 = vmatpush.msrb.mxu1 %v873_v61  ;;  %v933_v63 = vld [vmem:[#allocation2 + $0x4c0] sm:$0xff] }
  0x33   :  { %v805_v0 = vld [vmem:[#allocation2 + $0xc0] sm:$0xff]  ;;  %1282 = vmatpush.msrb.mxu2 %v933_v63 }
  0x34   :  { %v997_v1 = vld [vmem:[#allocation2 + $0x6c0] sm:$0xff]  ;;  %1056 = vmatpush.msrb.mxu0 %v805_v0 }
  0x35   :  { %1395 = vmatpush.msrb.mxu3 %v997_v1  ;;  %v869_v3 = vld [vmem:[#allocation2 + $0x2c0] sm:$0xff] }
  0x36   :  { %3136 = vmatmul.msk.f32.gmra.mxu0 %vm91_vm1, %v42_v37  ;;  %1169 = vmatpush.msrb.mxu1 %v869_v3  ;;  %v53_v6 = vld [vmem:[%s5066_s0 + $0x80] sm:$0xff] }
  0x37   :  { %3202 = vmatmul.msk.f32.gmra.mxu2 %vm91_vm1, %v42_v37  ;;  %v929_v7 = vld [vmem:[#allocation2 + $0x4a0] sm:$0xff] }
  0x38   :  { %3169 = vmatmul.msk.f32.gmra.mxu1 %vm91_vm1, %v42_v37  ;;  %3235 = vmatmul.msk.f32.gmra.mxu3 %vm91_vm1, %v42_v37  ;;  %v801_v8 = vld [vmem:[#allocation2 + $0xa0] sm:$0xff] }
  0x39   :  { %v993_v9 = vld [vmem:[#allocation2 + $0x6a0] sm:$0xff]  ;;  %1283 = vmatpush.msrb.mxu2 %v929_v7  ;;  %1057 = vmatpush.msrb.mxu0 %v801_v8  ;;  %v62_v8 = vld [vmem:[%s5066_s0 + $0xc8] sm:$0xff] }
  0x3a   :  { %1396 = vmatpush.msrb.mxu3 %v993_v9  ;;  %v865_v15 = vld [vmem:[#allocation2 + $0x2a0] sm:$0xff] }
  0x3b   :  { %1170 = vmatpush.msrb.mxu1 %v865_v15  ;;  %v925_v21 = vld [vmem:[#allocation2 + $0x480] sm:$0xff] }
  0x3c   :  { %v797_v22 = vld [vmem:[#allocation2 + $0x80] sm:$0xff]  ;;  %1284 = vmatpush.msrb.mxu2 %v925_v21 }
  0x3d   :  { %v989_v23 = vld [vmem:[#allocation2 + $0x680] sm:$0xff]  ;;  %1058 = vmatpush.msrb.mxu0 %v797_v22  ;;  %v63_v22 = vld [vmem:[%s5066_s0 + $0xd0] sm:$0xff] }
  0x3e   :  { %3137 = vmatmul.msk.f32.gmra.mxu0 %vm91_vm1, %v43_v38  ;;  %1397 = vmatpush.msrb.mxu3 %v989_v23  ;;  %v861_v29 = vld [vmem:[#allocation2 + $0x280] sm:$0xff] }
  0x3f   :  { %3203 = vmatmul.msk.f32.gmra.mxu2 %vm91_vm1, %v43_v38  ;;  %1171 = vmatpush.msrb.mxu1 %v861_v29  ;;  %v57_v34 = vld [vmem:[%s5066_s0 + $0xa0] sm:$0xff] }
  0x40   :  { %3170 = vmatmul.msk.f32.gmra.mxu1 %vm91_vm1, %v43_v38  ;;  %3236 = vmatmul.msk.f32.gmra.mxu3 %vm91_vm1, %v43_v38  ;;  %v921_v35 = vld [vmem:[#allocation2 + $0x460] sm:$0xff] }
  0x41   :  { %v793_v36 = vld [vmem:[#allocation2 + $0x60] sm:$0xff]  ;;  %1285 = vmatpush.msrb.mxu2 %v921_v35 }
  0x42   :  { %v985_v37 = vld [vmem:[#allocation2 + $0x660] sm:$0xff]  ;;  %1059 = vmatpush.msrb.mxu0 %v793_v36 }
  0x43   :  { %1398 = vmatpush.msrb.mxu3 %v985_v37  ;;  %v981_v51 = vld [vmem:[#allocation2 + $0x640] sm:$0xff] }
  0x44   :  { %v853_v57 = vld [vmem:[#allocation2 + $0x240] sm:$0xff] }
  0x45   :  { %1399 = vmatpush.msrb.mxu3 %v981_v51  ;;  %v913_v63 = vld [vmem:[#allocation2 + $0x420] sm:$0xff] }
  0x46   :  { %3138 = vmatmul.msk.f32.gmra.mxu0 %vm91_vm1, %v44_v43  ;;  %v785_v0 = vld [vmem:[#allocation2 + $0x20] sm:$0xff] }
  0x47   :  { %3204 = vmatmul.msk.f32.gmra.mxu2 %vm91_vm1, %v44_v43  ;;  %v977_v1 = vld [vmem:[#allocation2 + $0x620] sm:$0xff] }
  0x48   :  { %3171 = vmatmul.msk.f32.gmra.mxu1 %vm91_vm1, %v44_v43  ;;  %3237 = vmatmul.msk.f32.gmra.mxu3 %vm91_vm1, %v44_v43  ;;  %v857_v43 = vld [vmem:[#allocation2 + $0x260] sm:$0xff] }
  0x49   :  { %1172 = vmatpush.msrb.mxu1 %v857_v43  ;;  %1400 = vmatpush.msrb.mxu3 %v977_v1  ;;  %v849_v9 = vld [vmem:[#allocation2 + $0x220] sm:$0xff] }
  0x4a   :  { %v909_v23 = vld [vmem:[#allocation2 + $0x400] sm:$0xff] }
  0x4b   :  { %1173 = vmatpush.msrb.mxu1 %v853_v57  ;;  %v973_v29 = vld [vmem:[#allocation2 + $0x600] sm:$0xff]  ;;  %v970_v57 = vld [vmem:[#allocation2 + $0x5e8] sm:$0xff] }
  0x4c   :  { %1401 = vmatpush.msrb.mxu3 %v973_v29  ;;  %v845_v43 = vld [vmem:[#allocation2 + $0x200] sm:$0xff] }
  0x4d   :  { %1174 = vmatpush.msrb.mxu1 %v849_v9 }
  0x4e   :  { %3139 = vmatmul.msk.f32.gmra.mxu0 %vm91_vm1, %v45_v44 }
  0x4f   :  { %3205 = vmatmul.msk.f32.gmra.mxu2 %vm91_vm1, %v45_v44  ;;  %1175 = vmatpush.msrb.mxu1 %v845_v43 }
  0x50   :  { %3172 = vmatmul.msk.f32.gmra.mxu1 %vm91_vm1, %v45_v44  ;;  %3238 = vmatmul.msk.f32.gmra.mxu3 %vm91_vm1, %v45_v44 }
  0x56   :  { %3140 = vmatmul.msk.f32.gmra.mxu0 %vm91_vm1, %v46_v49 }
  0x57   :  { %3206 = vmatmul.msk.f32.gmra.mxu2 %vm91_vm1, %v46_v49 }
  0x58   :  { %3173 = vmatmul.msk.f32.gmra.mxu1 %vm91_vm1, %v46_v49  ;;  %3239 = vmatmul.msk.f32.gmra.mxu3 %vm91_vm1, %v46_v49  ;;  %v917_v49 = vld [vmem:[#allocation2 + $0x440] sm:$0xff] }
  0x59   :  { %1286 = vmatpush.msrb.mxu2 %v917_v49 }
  0x5b   :  { %1287 = vmatpush.msrb.mxu2 %v913_v63  ;;  %v1034_v63 = vld [vmem:[#allocation2 + $0x7e8] sm:$0xff] }
  0x5c   :  { %1838 = vmatpush.msra.mxu3 %v1034_v63  ;;  %v1030_v63 = vld [vmem:[#allocation2 + $0x7c8] sm:$0xff] }
  0x5d   :  { %1288 = vmatpush.msrb.mxu2 %v909_v23  ;;  %v906_v23 = vld [vmem:[#allocation2 + $0x3e8] sm:$0xff] }
  0x5e   :  { %3141 = vmatmul.msk.f32.gmra.mxu0 %vm91_vm1, %v47_v50  ;;  %1612 = vmatpush.msra.mxu1 %v906_v23 }
  0x5f   :  { %3207 = vmatmul.msk.f32.gmra.mxu2 %vm91_vm1, %v47_v50  ;;  %1839 = vmatpush.msra.mxu3 %v1030_v63  ;;  %v902_v63 = vld [vmem:[#allocation2 + $0x3c8] sm:$0xff] }
  0x60   :  { %3174 = vmatmul.msk.f32.gmra.mxu1 %vm91_vm1, %v47_v50  ;;  %3240 = vmatmul.msk.f32.gmra.mxu3 %vm91_vm1, %v47_v50  ;;  %v789_v50 = vld [vmem:[#allocation2 + $0x40] sm:$0xff] }
  0x61   :  { %1060 = vmatpush.msrb.mxu0 %v789_v50  ;;  %1725 = vmatpush.msra.mxu2 %v970_v57  ;;  %v966_v57 = vld [vmem:[#allocation2 + $0x5c8] sm:$0xff] }
  0x62   :  { %1613 = vmatpush.msra.mxu1 %v902_v63 }
  0x63   :  { %1061 = vmatpush.msrb.mxu0 %v785_v0  ;;  %1726 = vmatpush.msra.mxu2 %v966_v57 }
  0x66   :  { %3142 = vmatmul.msk.f32.gmra.mxu0 %vm91_vm1, %v48_v55 }
  0x67   :  { %3208 = vmatmul.msk.f32.gmra.mxu2 %vm91_vm1, %v48_v55 }
  0x68   :  { %3175 = vmatmul.msk.f32.gmra.mxu1 %vm91_vm1, %v48_v55  ;;  %3241 = vmatmul.msk.f32.gmra.mxu3 %vm91_vm1, %v48_v55 }
  0x6e   :  { %3143 = vmatmul.msk.f32.gmra.mxu0 %vm91_vm1, %v49_v56 }
  0x6f   :  { %3209 = vmatmul.msk.f32.gmra.mxu2 %vm91_vm1, %v49_v56 }
  0x70   :  { %3176 = vmatmul.msk.f32.gmra.mxu1 %vm91_vm1, %v49_v56  ;;  %3242 = vmatmul.msk.f32.gmra.mxu3 %vm91_vm1, %v49_v56  ;;  %v60_v56 = vld [vmem:[%s5066_s0 + $0xb8] sm:$0xff] }
  0x76   :  { %3144 = vmatmul.msk.f32.gmra.mxu0 %vm91_vm1, %v50_v60 }
  0x77   :  { %3210 = vmatmul.msk.f32.gmra.mxu2 %vm91_vm1, %v50_v60 }
  0x78   :  { %3177 = vmatmul.msk.f32.gmra.mxu1 %vm91_vm1, %v50_v60  ;;  %3243 = vmatmul.msk.f32.gmra.mxu3 %vm91_vm1, %v50_v60 }
  0x7e   :  { %3145 = vmatmul.msk.f32.gmra.mxu0 %vm91_vm1, %v51_v62 }
  0x7f   :  { %3211 = vmatmul.msk.f32.gmra.mxu2 %vm91_vm1, %v51_v62 }
  0x80   :  { %3178 = vmatmul.msk.f32.gmra.mxu1 %vm91_vm1, %v51_v62  ;;  %3244 = vmatmul.msk.f32.gmra.mxu3 %vm91_vm1, %v51_v62  ;;  %v61_v62 = vld [vmem:[%s5066_s0 + $0xc0] sm:$0xff] }
  0x86   :  { %3146 = vmatmul.msk.f32.gmra.mxu0 %vm91_vm1, %v52_v2 }
  0x87   :  { %3212 = vmatmul.msk.f32.gmra.mxu2 %vm91_vm1, %v52_v2 }
  0x88   :  { %3179 = vmatmul.msk.f32.gmra.mxu1 %vm91_vm1, %v52_v2  ;;  %3245 = vmatmul.msk.f32.gmra.mxu3 %vm91_vm1, %v52_v2 }
  0x8a   :  { %v3508_v4 = vpop.f32.mrf.mxu0 }
  0x8b   :  { %v3510_v5 = vpop.f32.mrf.mxu1 }
  0x8e   :  { %3147 = vmatmul.msk.f32.gmra.mxu0 %vm91_vm1, %v53_v6 }
  0x8f   :  { %3213 = vmatmul.msk.f32.gmra.mxu2 %vm91_vm1, %v53_v6 }
  0x90   :  { %3180 = vmatmul.msk.f32.gmra.mxu1 %vm91_vm1, %v53_v6  ;;  %3246 = vmatmul.msk.f32.gmra.mxu3 %vm91_vm1, %v53_v6 }
  0x91   :  { %v3519_v10 = vpop.f32.mrf.mxu2 }
  0x92   :  { %v3521_v11 = vpop.f32.mrf.mxu3 }
  0x93   :  { %v3523_v12 = vpop.f32.mrf.mxu0 }
  0x95   :  { %v3525_v13 = vpop.f32.mrf.mxu1 }
  0x96   :  { %3148 = vmatmul.msk.f32.gmra.mxu0 %vm91_vm1, %v54_v14 }
  0x97   :  { %3214 = vmatmul.msk.f32.gmra.mxu2 %vm91_vm1, %v54_v14 }
  0x98   :  { %3181 = vmatmul.msk.f32.gmra.mxu1 %vm91_vm1, %v54_v14  ;;  %3247 = vmatmul.msk.f32.gmra.mxu3 %vm91_vm1, %v54_v14 }
  0x9a   :  { %v3534_v16 = vpop.f32.mrf.mxu2 }
  0x9b   :  { %v3536_v17 = vpop.f32.mrf.mxu3  ;;  %v3538_v18 = vpop.f32.mrf.mxu0 }
  0x9d   :  { %v3540_v19 = vpop.f32.mrf.mxu1 }
  0x9e   :  { %3149 = vmatmul.msk.f32.gmra.mxu0 %vm91_vm1, %v55_v20 }
  0x9f   :  { %3215 = vmatmul.msk.f32.gmra.mxu2 %vm91_vm1, %v55_v20 }
  0xa0   :  { %3182 = vmatmul.msk.f32.gmra.mxu1 %vm91_vm1, %v55_v20  ;;  %3248 = vmatmul.msk.f32.gmra.mxu3 %vm91_vm1, %v55_v20 }
  0xa2   :  { %v3549_v24 = vpop.f32.mrf.mxu2 }
  0xa3   :  { %v3551_v25 = vpop.f32.mrf.mxu3  ;;  %v3553_v26 = vpop.f32.mrf.mxu0 }
  0xa5   :  { %v3555_v27 = vpop.f32.mrf.mxu1 }
  0xa6   :  { %3150 = vmatmul.msk.f32.gmra.mxu0 %vm91_vm1, %v56_v28 }
  0xa7   :  { %3216 = vmatmul.msk.f32.gmra.mxu2 %vm91_vm1, %v56_v28 }
  0xa8   :  { %3183 = vmatmul.msk.f32.gmra.mxu1 %vm91_vm1, %v56_v28  ;;  %3249 = vmatmul.msk.f32.gmra.mxu3 %vm91_vm1, %v56_v28  ;;  %v781_v28 = vld [vmem:[#allocation2] sm:$0xff] }
  0xa9   :  { %1062 = vmatpush.msrb.mxu0 %v781_v28 }
  0xaa   :  { %v3564_v30 = vpop.f32.mrf.mxu2 }
  0xab   :  { %v3566_v31 = vpop.f32.mrf.mxu3  ;;  %v3568_v32 = vpop.f32.mrf.mxu0 }
  0xad   :  { %v3570_v33 = vpop.f32.mrf.mxu1 }
  0xae   :  { %3151 = vmatmul.msk.f32.gmra.mxu0 %vm91_vm1, %v57_v34 }
  0xaf   :  { %3217 = vmatmul.msk.f32.gmra.mxu2 %vm91_vm1, %v57_v34 }
  0xb0   :  { %3184 = vmatmul.msk.f32.gmra.mxu1 %vm91_vm1, %v57_v34  ;;  %3250 = vmatmul.msk.f32.gmra.mxu3 %vm91_vm1, %v57_v34 }
  0xb2   :  { %v3579_v38 = vpop.f32.mrf.mxu2 }
  0xb3   :  { %v3581_v39 = vpop.f32.mrf.mxu3  ;;  %v3583_v40 = vpop.f32.mrf.mxu0 }
  0xb5   :  { %v3585_v41 = vpop.f32.mrf.mxu1 }
  0xb6   :  { %3152 = vmatmul.msk.f32.gmra.mxu0 %vm91_vm1, %v58_v42 }
  0xb7   :  { %3218 = vmatmul.msk.f32.gmra.mxu2 %vm91_vm1, %v58_v42 }
  0xb8   :  { %3185 = vmatmul.msk.f32.gmra.mxu1 %vm91_vm1, %v58_v42  ;;  %3251 = vmatmul.msk.f32.gmra.mxu3 %vm91_vm1, %v58_v42  ;;  %v64_v42 = vld [vmem:[%s5066_s0 + $0xd8] sm:$0xff] }
  0xba   :  { %v3594_v44 = vpop.f32.mrf.mxu2 }
  0xbb   :  { %v3596_v45 = vpop.f32.mrf.mxu3  ;;  %v3598_v46 = vpop.f32.mrf.mxu0 }
  0xbd   :  { %v3600_v47 = vpop.f32.mrf.mxu1 }
  0xbe   :  { %3153 = vmatmul.msk.f32.gmra.mxu0 %vm91_vm1, %v59_v48 }
  0xbf   :  { %3219 = vmatmul.msk.f32.gmra.mxu2 %vm91_vm1, %v59_v48 }
  0xc0   :  { %3186 = vmatmul.msk.f32.gmra.mxu1 %vm91_vm1, %v59_v48  ;;  %3252 = vmatmul.msk.f32.gmra.mxu3 %vm91_vm1, %v59_v48 }
  0xc2   :  { %v3609_v52 = vpop.f32.mrf.mxu2 }
  0xc3   :  { %v3611_v53 = vpop.f32.mrf.mxu3  ;;  %v3613_v54 = vpop.f32.mrf.mxu0 }
  0xc5   :  { %v3615_v55 = vpop.f32.mrf.mxu1 }
  0xc6   :  { %3154 = vmatmul.msk.f32.gmra.mxu0 %vm91_vm1, %v60_v56 }
  0xc7   :  { %3220 = vmatmul.msk.f32.gmra.mxu2 %vm91_vm1, %v60_v56 }
  0xc8   :  { %3187 = vmatmul.msk.f32.gmra.mxu1 %vm91_vm1, %v60_v56  ;;  %3253 = vmatmul.msk.f32.gmra.mxu3 %vm91_vm1, %v60_v56  ;;  %v65_v56 = vld [vmem:[%s5066_s0 + $0xe0] sm:$0xff] }
  0xca   :  { %v3624_v58 = vpop.f32.mrf.mxu2 }
  0xcb   :  { %v3626_v59 = vpop.f32.mrf.mxu3  ;;  %v3628_v60 = vpop.f32.mrf.mxu0 }
  0xcd   :  { %v3630_v61 = vpop.f32.mrf.mxu1 }
  0xce   :  { %3155 = vmatmul.msk.f32.gmra.mxu0 %vm91_vm1, %v61_v62 }
  0xcf   :  { %3221 = vmatmul.msk.f32.gmra.mxu2 %vm91_vm1, %v61_v62 }
  0xd0   :  { %3188 = vmatmul.msk.f32.gmra.mxu1 %vm91_vm1, %v61_v62  ;;  %3254 = vmatmul.msk.f32.gmra.mxu3 %vm91_vm1, %v61_v62  ;;  %v842_v62 = vld [vmem:[#allocation2 + $0x1e8] sm:$0xff] }
  0xd1   :  { %1499 = vmatpush.msra.mxu0 %v842_v62  ;;  %v838_v62 = vld [vmem:[#allocation2 + $0x1c8] sm:$0xff] }
  0xd2   :  { %v3639_v2 = vpop.f32.mrf.mxu2 }
  0xd3   :  { %v3641_v3 = vpop.f32.mrf.mxu3  ;;  %v3643_v6 = vpop.f32.mrf.mxu0  ;;  %1500 = vmatpush.msra.mxu0 %v838_v62 }
  0xd5   :  { %v3645_v7 = vpop.f32.mrf.mxu1 }
  0xd6   :  { %3156 = vmatmul.msk.f32.gmra.mxu0 %vm91_vm1, %v62_v8 }
  0xd7   :  { %3222 = vmatmul.msk.f32.gmra.mxu2 %vm91_vm1, %v62_v8 }
  0xd8   :  { %3189 = vmatmul.msk.f32.gmra.mxu1 %vm91_vm1, %v62_v8  ;;  %3255 = vmatmul.msk.f32.gmra.mxu3 %vm91_vm1, %v62_v8 }
  0xda   :  { %v3654_v14 = vpop.f32.mrf.mxu2 }
  0xdb   :  { %v3656_v15 = vpop.f32.mrf.mxu3  ;;  %v3658_v20 = vpop.f32.mrf.mxu0 }
  0xdd   :  { %v3660_v21 = vpop.f32.mrf.mxu1 }
  0xde   :  { %3157 = vmatmul.msk.f32.gmra.mxu0 %vm91_vm1, %v63_v22 }
  0xdf   :  { %3223 = vmatmul.msk.f32.gmra.mxu2 %vm91_vm1, %v63_v22 }
  0xe0   :  { %3190 = vmatmul.msk.f32.gmra.mxu1 %vm91_vm1, %v63_v22  ;;  %3256 = vmatmul.msk.f32.gmra.mxu3 %vm91_vm1, %v63_v22  ;;  %v66_v22 = vld [vmem:[%s5066_s0 + $0xe8] sm:$0xff] }
  0xe2   :  { %v3669_v34 = vpop.f32.mrf.mxu2 }
  0xe3   :  { %v3671_v35 = vpop.f32.mrf.mxu3  ;;  %v3673_v36 = vpop.f32.mrf.mxu0 }
  0xe5   :  { %v3675_v37 = vpop.f32.mrf.mxu1 }
  0xe6   :  { %3158 = vmatmul.msk.f32.gmra.mxu0 %vm91_vm1, %v64_v42 }
  0xe7   :  { %3224 = vmatmul.msk.f32.gmra.mxu2 %vm91_vm1, %v64_v42 }
  0xe8   :  { %3191 = vmatmul.msk.f32.gmra.mxu1 %vm91_vm1, %v64_v42  ;;  %3257 = vmatmul.msk.f32.gmra.mxu3 %vm91_vm1, %v64_v42 }
  0xea   :  { %v3684_v48 = vpop.f32.mrf.mxu2 }
  0xeb   :  { %v3686_v49 = vpop.f32.mrf.mxu3  ;;  %v3688_v50 = vpop.f32.mrf.mxu0 }
  0xed   :  { %v3690_v51 = vpop.f32.mrf.mxu1 }
  0xee   :  { %3159 = vmatmul.msk.f32.gmra.mxu0 %vm91_vm1, %v65_v56 }
  0xef   :  { %3225 = vmatmul.msk.f32.gmra.mxu2 %vm91_vm1, %v65_v56 }
  0xf0   :  { %3192 = vmatmul.msk.f32.gmra.mxu1 %vm91_vm1, %v65_v56  ;;  %3258 = vmatmul.msk.f32.gmra.mxu3 %vm91_vm1, %v65_v56  ;;  %v67_v56 = vld [vmem:[%s5066_s0 + $0xf0] sm:$0xff] }
  0xf2   :  { %v3699_v0 = vpop.f32.mrf.mxu2 }
  0xf3   :  { %5262 = vst [vmem:[#allocation8_spill] sm:$0xff] %v3699_v0  ;;  %v3701_v1 = vpop.f32.mrf.mxu3  ;;  %v3703_v8 = vpop.f32.mrf.mxu0 }
  0xf4   :  { %5263 = vst [vmem:[#allocation9_spill] sm:$0xff] %v3701_v1 }
  0xf5   :  { %5264 = vst [vmem:[#allocation10_spill] sm:$0xff] %v3703_v8  ;;  %v3705_v9 = vpop.f32.mrf.mxu1 }
  0xf6   :  { %5265 = vst [vmem:[#allocation11_spill] sm:$0xff] %v3705_v9  ;;  %3160 = vmatmul.msk.f32.gmra.mxu0 %vm91_vm1, %v66_v22 }
  0xf7   :  { %3226 = vmatmul.msk.f32.gmra.mxu2 %vm91_vm1, %v66_v22 }
  0xf8   :  { %3193 = vmatmul.msk.f32.gmra.mxu1 %vm91_vm1, %v66_v22  ;;  %3259 = vmatmul.msk.f32.gmra.mxu3 %vm91_vm1, %v66_v22  ;;  %v81_v22 = vld [vmem:[%s5068_s2] sm:$0xf] }
  0xf9   :  { %v3745_v57 = vperm.slane %v81_v22, 1  ;;  %v3747_v62 = vperm.slane %v81_v22, 2  ;;  %v3749_v9 = vperm.slane %v81_v22, 3 }
  0xfa   :  { %v3714_v28 = vpop.f32.mrf.mxu2 }
  0xfb   :  { %5266 = vst [vmem:[#allocation12_spill] sm:$0xff] %v3714_v28  ;;  %v3716_v29 = vpop.f32.mrf.mxu3  ;;  %v3718_v42 = vpop.f32.mrf.mxu0  ;;  %v3743_v28 = vperm.slane %v81_v22, 0  ;;  %v445_v22 = vadd.f32 %v3519_v10, %v3747_v62  ;;  %v962_v10 = vld [vmem:[#allocation2 + $0x5a8] sm:$0xff] }
  0xfc   :  { %5267 = vst [vmem:[#allocation13_spill] sm:$0xff] %v3716_v29  ;;  %1727 = vmatpush.msra.mxu2 %v962_v10 }
  0xfd   :  { %5268 = vst [vmem:[#allocation14_spill] sm:$0xff] %v3718_v42  ;;  %v3720_v43 = vpop.f32.mrf.mxu1 }
  0xfe   :  { %5269 = vst [vmem:[#allocation15_spill] sm:$0xff] %v3720_v43  ;;  %3161 = vmatmul.msk.f32.gmra.mxu0 %vm91_vm1, %v67_v56 }
  0xff   :  { %3227 = vmatmul.msk.f32.gmra.mxu2 %vm91_vm1, %v67_v56 }
 0x100   :  { %3194 = vmatmul.msk.f32.gmra.mxu1 %vm91_vm1, %v67_v56  ;;  %3260 = vmatmul.msk.f32.gmra.mxu3 %vm91_vm1, %v67_v56  ;;  %v68_v56 = vld [vmem:[%s5066_s0 + $0xf8] sm:$0xff] }
 0x102   :  { %v3732_v23 = vpop.f32.mrf.mxu2 }
 0x103   :  { %5270 = vst [vmem:[#allocation16_spill] sm:$0xff] %v3732_v23  ;;  %v3734_v43 = vpop.f32.mrf.mxu3  ;;  %v3736_v42 = vpop.f32.mrf.mxu0 }
 0x104   :  { %5271 = vst [vmem:[#allocation17_spill] sm:$0xff] %v3734_v43  ;;  %v558_v43 = vadd.f32 %v3521_v11, %v3749_v9  ;;  %v834_v11 = vld [vmem:[#allocation2 + $0x1a8] sm:$0xff] }
 0x105   :  { %5272 = vst [vmem:[#allocation18_spill] sm:$0xff] %v3736_v42  ;;  %v3738_v29 = vpop.f32.mrf.mxu1  ;;  %v332_v42 = vadd.f32 %v3510_v5, %v3745_v57  ;;  %v3775_v5 = vmax.f32 %v445_v22, 0.0  ;;  %1501 = vmatpush.msra.mxu0 %v834_v11  ;;  %v561_v22 = vadd.f32 %v3536_v17, %v3749_v9  ;;  %v225_v17 = vadd.f32 %v3538_v18, %v3743_v28 }
 0x106   :  { %5273 = vst [vmem:[#allocation19_spill] sm:$0xff] %v3738_v29  ;;  %3162 = vmatmul.msk.f32.gmra.mxu0 %vm91_vm1, %v68_v56  ;;  %v219_v29 = vadd.f32 %v3508_v4, %v3743_v28  ;;  %v3777_v63 = vmax.f32 %v558_v43, 0.0  ;;  %v448_v43 = vadd.f32 %v3534_v16, %v3747_v62  ;;  %v898_v16 = vld [vmem:[#allocation2 + $0x3a8] sm:$0xff] }
 0x107   :  { %3228 = vmatmul.msk.f32.gmra.mxu2 %vm91_vm1, %v68_v56  ;;  %v3773_v4 = vmax.f32 %v332_v42, 0.0  ;;  %5277 = vst [vmem:[#allocation23_spill] sm:$0xff] %v3775_v5  ;;  %v335_v42 = vadd.f32 %v3525_v13, %v3745_v57  ;;  %v3805_v11 = vmax.f32 %v561_v22, 0.0  ;;  %1614 = vmatpush.msra.mxu1 %v898_v16 }
 0x108   :  { %3195 = vmatmul.msk.f32.gmra.mxu1 %vm91_vm1, %v68_v56  ;;  %3261 = vmatmul.msk.f32.gmra.mxu3 %vm91_vm1, %v68_v56  ;;  %v3771_v0 = vmax.f32 %v219_v29, 0.0  ;;  %5278 = vst [vmem:[#allocation24_spill] sm:$0xff] %v3777_v63  ;;  %v222_v29 = vadd.f32 %v3523_v12, %v3743_v28  ;;  %v3803_v10 = vmax.f32 %v448_v43, 0.0 }
 0x109   :  { %5276 = vst [vmem:[#allocation22_spill] sm:$0xff] %v3773_v4  ;;  %v3801_v13 = vmax.f32 %v335_v42, 0.0  ;;  %v564_v42 = vadd.f32 %v3551_v25, %v3749_v9  ;;  %v830_v25 = vld [vmem:[#allocation2 + $0x188] sm:$0xff] }
 0x10a   :  { %v3763_v23 = vpop.f32.mrf.mxu2  ;;  %5275 = vst [vmem:[#allocation21_spill] sm:$0xff] %v3771_v0  ;;  %v3799_v12 = vmax.f32 %v222_v29, 0.0  ;;  %v451_v29 = vadd.f32 %v3549_v24, %v3747_v62  ;;  %v958_v24 = vld [vmem:[#allocation2 + $0x588] sm:$0xff]  ;;  %1502 = vmatpush.msra.mxu0 %v830_v25 }
 0x10b   :  { %v3765_v8 = vpop.f32.mrf.mxu3  ;;  %v3767_v1 = vpop.f32.mrf.mxu0  ;;  %5280 = vst [vmem:[#allocation26_spill] sm:$0xff] %v3801_v13  ;;  %v3833_v16 = vmax.f32 %v564_v42, 0.0  ;;  %1728 = vmatpush.msra.mxu2 %v958_v24  ;;  %v567_v42 = vadd.f32 %v3566_v31, %v3749_v9  ;;  %v231_v31 = vadd.f32 %v3568_v32, %v3743_v28 }
 0x10c   :  { %5274 = vst [vmem:[#allocation20_spill] sm:$0xff] %v3767_v1  ;;  %v1026_v1 = vld [vmem:[#allocation2 + $0x7a8] sm:$0xff] }
 0x10d   :  { %v3769_v56 = vpop.f32.mrf.mxu1  ;;  %1840 = vmatpush.msra.mxu3 %v1026_v1  ;;  %5279 = vst [vmem:[#allocation25_spill] sm:$0xff] %v3799_v12  ;;  %v338_v1 = vadd.f32 %v3540_v19, %v3745_v57  ;;  %v3831_v19 = vmax.f32 %v451_v29, 0.0  ;;  %v454_v29 = vadd.f32 %v3564_v30, %v3747_v62  ;;  %v3861_v25 = vmax.f32 %v567_v42, 0.0  ;;  %v894_v30 = vld [vmem:[#allocation2 + $0x388] sm:$0xff] }
 0x10e   :  { %1063 = vmatmul.f32.vlgmr.msrb.gmra.mxu0 %v3771_v0  ;;  %5281 = vst [vmem:[#allocation27_spill] sm:$0xff] %v3803_v10  ;;  %1615 = vmatpush.msra.mxu1 %v894_v30 }
 0x10f   :  { %1289 = vmatmul.f32.vlgmr.msrb.gmra.mxu2 %v3775_v5  ;;  %5282 = vst [vmem:[#allocation28_spill] sm:$0xff] %v3805_v11  ;;  %v3829_v18 = vmax.f32 %v338_v1, 0.0  ;;  %v341_v1 = vadd.f32 %v3555_v27, %v3745_v57  ;;  %v3859_v24 = vmax.f32 %v454_v29, 0.0 }
 0x110   :  { %1176 = vmatmul.f32.vlgmr.msrb.gmra.mxu1 %v3773_v4  ;;  %1402 = vmatmul.f32.vlgmr.msrb.gmra.mxu3 %v3777_v63  ;;  %5285 = vst [vmem:[#allocation31_spill] sm:$0xff] %v3831_v19 }
 0x111   :  { %5284 = vst [vmem:[#allocation30_spill] sm:$0xff] %v3829_v18  ;;  %v3857_v27 = vmax.f32 %v341_v1, 0.0  ;;  %v570_v1 = vadd.f32 %v3581_v39, %v3749_v9  ;;  %v826_v39 = vld [vmem:[#allocation2 + $0x168] sm:$0xff] }
 0x112   :  { %v3791_v5 = vpop.f32.mrf.mxu2  ;;  %5286 = vst [vmem:[#allocation32_spill] sm:$0xff] %v3833_v16  ;;  %1503 = vmatpush.msra.mxu0 %v826_v39 }
 0x113   :  { %v3793_v63 = vpop.f32.mrf.mxu3  ;;  %v3795_v4 = vpop.f32.mrf.mxu0  ;;  %5288 = vst [vmem:[#allocation34_spill] sm:$0xff] %v3857_v27  ;;  %v3889_v30 = vmax.f32 %v570_v1, 0.0  ;;  %v573_v1 = vadd.f32 %v3596_v45, %v3749_v9  ;;  %v237_v45 = vadd.f32 %v3598_v46, %v3743_v28 }
 0x114   :  { %5289 = vst [vmem:[#allocation35_spill] sm:$0xff] %v3859_v24 }
 0x115   :  { %v3797_v0 = vpop.f32.mrf.mxu1  ;;  %5290 = vst [vmem:[#allocation36_spill] sm:$0xff] %v3861_v25  ;;  %v3917_v39 = vmax.f32 %v573_v1, 0.0 }
 0x116   :  { %1066 = vmatmul.f32.gmra.mxu0 %v3799_v12  ;;  %v1022_v12 = vld [vmem:[#allocation2 + $0x788] sm:$0xff]  ;;  %5294 = vst [vmem:[#allocation40_spill] sm:$0xff] %v3889_v30 }
 0x117   :  { %1292 = vmatmul.f32.gmra.mxu2 %v3803_v10  ;;  %1841 = vmatpush.msra.mxu3 %v1022_v12  ;;  %v344_v12 = vadd.f32 %v3570_v33, %v3745_v57  ;;  %5298 = vst [vmem:[#allocation44_spill] sm:$0xff] %v3917_v39 }
 0x118   :  { %1179 = vmatmul.f32.gmra.mxu1 %v3801_v13  ;;  %1405 = vmatmul.f32.gmra.mxu3 %v3805_v11  ;;  %v3827_v13 = vmax.f32 %v225_v17, 0.0  ;;  %v228_v17 = vadd.f32 %v3553_v26, %v3743_v28 }
 0x119   :  { %v3885_v32 = vmax.f32 %v344_v12, 0.0  ;;  %v347_v12 = vadd.f32 %v3585_v41, %v3745_v57 }
 0x11a   :  { %v3819_v43 = vpop.f32.mrf.mxu2  ;;  %5283 = vst [vmem:[#allocation29_spill] sm:$0xff] %v3827_v13  ;;  %v3855_v26 = vmax.f32 %v228_v17, 0.0  ;;  %v457_v17 = vadd.f32 %v3579_v38, %v3747_v62  ;;  %v954_v38 = vld [vmem:[#allocation2 + $0x568] sm:$0xff] }
 0x11b   :  { %v3821_v22 = vpop.f32.mrf.mxu3  ;;  %v3823_v10 = vpop.f32.mrf.mxu0  ;;  %5292 = vst [vmem:[#allocation38_spill] sm:$0xff] %v3885_v32  ;;  %1729 = vmatpush.msra.mxu2 %v954_v38  ;;  %v3913_v41 = vmax.f32 %v347_v12, 0.0  ;;  %v576_v12 = vadd.f32 %v3611_v53, %v3749_v9  ;;  %v822_v53 = vld [vmem:[#allocation2 + $0x148] sm:$0xff] }
 0x11c   :  { %5287 = vst [vmem:[#allocation33_spill] sm:$0xff] %v3855_v26  ;;  %v3887_v33 = vmax.f32 %v457_v17, 0.0  ;;  %v460_v17 = vadd.f32 %v3594_v44, %v3747_v62  ;;  %v890_v44 = vld [vmem:[#allocation2 + $0x368] sm:$0xff]  ;;  %1504 = vmatpush.msra.mxu0 %v822_v53 }
 0x11d   :  { %v3825_v11 = vpop.f32.mrf.mxu1  ;;  %5296 = vst [vmem:[#allocation42_spill] sm:$0xff] %v3913_v41  ;;  %1616 = vmatpush.msra.mxu1 %v890_v44  ;;  %v3945_v44 = vmax.f32 %v576_v12, 0.0  ;;  %v579_v12 = vadd.f32 %v3626_v59, %v3749_v9  ;;  %v243_v59 = vadd.f32 %v3628_v60, %v3743_v28 }
 0x11e   :  { %1069 = vmatmul.f32.gmra.mxu0 %v3827_v13  ;;  %5293 = vst [vmem:[#allocation39_spill] sm:$0xff] %v3887_v33  ;;  %v3915_v38 = vmax.f32 %v460_v17, 0.0 }
 0x11f   :  { %1295 = vmatmul.f32.gmra.mxu2 %v3831_v19  ;;  %5302 = vst [vmem:[#allocation48_spill] sm:$0xff] %v3945_v44  ;;  %v3973_v53 = vmax.f32 %v579_v12, 0.0 }
 0x120   :  { %1182 = vmatmul.f32.gmra.mxu1 %v3829_v18  ;;  %1408 = vmatmul.f32.gmra.mxu3 %v3833_v16  ;;  %5297 = vst [vmem:[#allocation43_spill] sm:$0xff] %v3915_v38 }
 0x121   :  { %5306 = vst [vmem:[#allocation52_spill] sm:$0xff] %v3973_v53 }
 0x122   :  { %v3847_v19 = vpop.f32.mrf.mxu2 }
 0x123   :  { %v3849_v16 = vpop.f32.mrf.mxu3  ;;  %v3851_v18 = vpop.f32.mrf.mxu0 }
 0x125   :  { %v3853_v13 = vpop.f32.mrf.mxu1 }
 0x126   :  { %1072 = vmatmul.f32.gmra.mxu0 %v3855_v26  ;;  %v1018_v26 = vld [vmem:[#allocation2 + $0x768] sm:$0xff] }
 0x127   :  { %1298 = vmatmul.f32.gmra.mxu2 %v3859_v24  ;;  %1842 = vmatpush.msra.mxu3 %v1018_v26  ;;  %v350_v26 = vadd.f32 %v3600_v47, %v3745_v57 }
 0x128   :  { %1185 = vmatmul.f32.gmra.mxu1 %v3857_v27  ;;  %1411 = vmatmul.f32.gmra.mxu3 %v3861_v25  ;;  %v3883_v27 = vmax.f32 %v231_v31, 0.0  ;;  %v234_v31 = vadd.f32 %v3583_v40, %v3743_v28 }
 0x129   :  { %v3941_v46 = vmax.f32 %v350_v26, 0.0  ;;  %v353_v26 = vadd.f32 %v3615_v55, %v3745_v57 }
 0x12a   :  { %v3875_v29 = vpop.f32.mrf.mxu2  ;;  %5291 = vst [vmem:[#allocation37_spill] sm:$0xff] %v3883_v27  ;;  %v3911_v40 = vmax.f32 %v234_v31, 0.0  ;;  %v463_v31 = vadd.f32 %v3609_v52, %v3747_v62  ;;  %v950_v52 = vld [vmem:[#allocation2 + $0x548] sm:$0xff] }
 0x12b   :  { %v3877_v42 = vpop.f32.mrf.mxu3  ;;  %v3879_v24 = vpop.f32.mrf.mxu0  ;;  %5300 = vst [vmem:[#allocation46_spill] sm:$0xff] %v3941_v46  ;;  %1730 = vmatpush.msra.mxu2 %v950_v52  ;;  %v3969_v55 = vmax.f32 %v353_v26, 0.0  ;;  %v582_v26 = vadd.f32 %v3641_v3, %v3749_v9  ;;  %v818_v3 = vld [vmem:[#allocation2 + $0x128] sm:$0xff] }
 0x12c   :  { %5295 = vst [vmem:[#allocation41_spill] sm:$0xff] %v3911_v40  ;;  %v3943_v47 = vmax.f32 %v463_v31, 0.0  ;;  %v466_v31 = vadd.f32 %v3624_v58, %v3747_v62  ;;  %v886_v58 = vld [vmem:[#allocation2 + $0x348] sm:$0xff]  ;;  %1505 = vmatpush.msra.mxu0 %v818_v3 }
 0x12d   :  { %v3881_v25 = vpop.f32.mrf.mxu1  ;;  %5304 = vst [vmem:[#allocation50_spill] sm:$0xff] %v3969_v55  ;;  %1617 = vmatpush.msra.mxu1 %v886_v58  ;;  %v4001_v58 = vmax.f32 %v582_v26, 0.0  ;;  %v585_v26 = vadd.f32 %v3656_v15, %v3749_v9  ;;  %v249_v15 = vadd.f32 %v3658_v20, %v3743_v28 }
 0x12e   :  { %1075 = vmatmul.f32.gmra.mxu0 %v3883_v27  ;;  %5301 = vst [vmem:[#allocation47_spill] sm:$0xff] %v3943_v47  ;;  %v3971_v52 = vmax.f32 %v466_v31, 0.0 }
 0x12f   :  { %1301 = vmatmul.f32.gmra.mxu2 %v3887_v33  ;;  %5310 = vst [vmem:[#allocation56_spill] sm:$0xff] %v4001_v58  ;;  %v4029_v3 = vmax.f32 %v585_v26, 0.0 }
 0x130   :  { %1188 = vmatmul.f32.gmra.mxu1 %v3885_v32  ;;  %1414 = vmatmul.f32.gmra.mxu3 %v3889_v30  ;;  %5305 = vst [vmem:[#allocation51_spill] sm:$0xff] %v3971_v52 }
 0x131   :  { %5314 = vst [vmem:[#allocation60_spill] sm:$0xff] %v4029_v3 }
 0x132   :  { %v3903_v33 = vpop.f32.mrf.mxu2 }
 0x133   :  { %v3905_v30 = vpop.f32.mrf.mxu3  ;;  %v3907_v32 = vpop.f32.mrf.mxu0 }
 0x135   :  { %v3909_v27 = vpop.f32.mrf.mxu1 }
 0x136   :  { %1078 = vmatmul.f32.gmra.mxu0 %v3911_v40  ;;  %v1014_v40 = vld [vmem:[#allocation2 + $0x748] sm:$0xff] }
 0x137   :  { %1304 = vmatmul.f32.gmra.mxu2 %v3915_v38  ;;  %1843 = vmatpush.msra.mxu3 %v1014_v40  ;;  %v356_v40 = vadd.f32 %v3630_v61, %v3745_v57 }
 0x138   :  { %1191 = vmatmul.f32.gmra.mxu1 %v3913_v41  ;;  %1417 = vmatmul.f32.gmra.mxu3 %v3917_v39  ;;  %v3939_v41 = vmax.f32 %v237_v45, 0.0  ;;  %v240_v45 = vadd.f32 %v3613_v54, %v3743_v28 }
 0x139   :  { %v3997_v60 = vmax.f32 %v356_v40, 0.0  ;;  %v359_v40 = vadd.f32 %v3645_v7, %v3745_v57 }
 0x13a   :  { %v3931_v17 = vpop.f32.mrf.mxu2  ;;  %5299 = vst [vmem:[#allocation45_spill] sm:$0xff] %v3939_v41  ;;  %v3967_v54 = vmax.f32 %v240_v45, 0.0  ;;  %v469_v45 = vadd.f32 %v3639_v2, %v3747_v62  ;;  %v946_v2 = vld [vmem:[#allocation2 + $0x528] sm:$0xff] }
 0x13b   :  { %v3933_v1 = vpop.f32.mrf.mxu3  ;;  %v3935_v38 = vpop.f32.mrf.mxu0  ;;  %5308 = vst [vmem:[#allocation54_spill] sm:$0xff] %v3997_v60  ;;  %1731 = vmatpush.msra.mxu2 %v946_v2  ;;  %v4025_v7 = vmax.f32 %v359_v40, 0.0  ;;  %v588_v40 = vadd.f32 %v3671_v35, %v3749_v9  ;;  %v814_v35 = vld [vmem:[#allocation2 + $0x108] sm:$0xff] }
 0x13c   :  { %5303 = vst [vmem:[#allocation49_spill] sm:$0xff] %v3967_v54  ;;  %v3999_v61 = vmax.f32 %v469_v45, 0.0  ;;  %v472_v45 = vadd.f32 %v3654_v14, %v3747_v62  ;;  %v882_v14 = vld [vmem:[#allocation2 + $0x328] sm:$0xff]  ;;  %1506 = vmatpush.msra.mxu0 %v814_v35 }
 0x13d   :  { %v3937_v39 = vpop.f32.mrf.mxu1  ;;  %5312 = vst [vmem:[#allocation58_spill] sm:$0xff] %v4025_v7  ;;  %1618 = vmatpush.msra.mxu1 %v882_v14  ;;  %v4057_v14 = vmax.f32 %v588_v40, 0.0  ;;  %v591_v40 = vadd.f32 %v3686_v49, %v3749_v9  ;;  %v255_v49 = vadd.f32 %v3688_v50, %v3743_v28 }
 0x13e   :  { %1081 = vmatmul.f32.gmra.mxu0 %v3939_v41  ;;  %5309 = vst [vmem:[#allocation55_spill] sm:$0xff] %v3999_v61  ;;  %v4027_v2 = vmax.f32 %v472_v45, 0.0 }
 0x13f   :  { %1307 = vmatmul.f32.gmra.mxu2 %v3943_v47  ;;  %5318 = vst [vmem:[#allocation64_spill] sm:$0xff] %v4057_v14  ;;  %v4085_v35 = vmax.f32 %v591_v40, 0.0 }
 0x140   :  { %1194 = vmatmul.f32.gmra.mxu1 %v3941_v46  ;;  %1420 = vmatmul.f32.gmra.mxu3 %v3945_v44  ;;  %5313 = vst [vmem:[#allocation59_spill] sm:$0xff] %v4027_v2 }
 0x141   :  { %5324 = vst [vmem:[#allocation70_spill] sm:$0xff] %v4085_v35 }
 0x142   :  { %v3959_v47 = vpop.f32.mrf.mxu2 }
 0x143   :  { %v3961_v44 = vpop.f32.mrf.mxu3  ;;  %v3963_v46 = vpop.f32.mrf.mxu0 }
 0x145   :  { %v3965_v41 = vpop.f32.mrf.mxu1 }
 0x146   :  { %1084 = vmatmul.f32.gmra.mxu0 %v3967_v54  ;;  %v1010_v54 = vld [vmem:[#allocation2 + $0x728] sm:$0xff] }
 0x147   :  { %1310 = vmatmul.f32.gmra.mxu2 %v3971_v52  ;;  %1844 = vmatpush.msra.mxu3 %v1010_v54  ;;  %v362_v54 = vadd.f32 %v3660_v21, %v3745_v57 }
 0x148   :  { %1197 = vmatmul.f32.gmra.mxu1 %v3969_v55  ;;  %1423 = vmatmul.f32.gmra.mxu3 %v3973_v53  ;;  %v3995_v55 = vmax.f32 %v243_v59, 0.0  ;;  %v246_v59 = vadd.f32 %v3643_v6, %v3743_v28 }
 0x149   :  { %v4053_v20 = vmax.f32 %v362_v54, 0.0  ;;  %v365_v54 = vadd.f32 %v3675_v37, %v3745_v57 }
 0x14a   :  { %v3987_v31 = vpop.f32.mrf.mxu2  ;;  %5307 = vst [vmem:[#allocation53_spill] sm:$0xff] %v3995_v55  ;;  %v4023_v6 = vmax.f32 %v246_v59, 0.0  ;;  %v475_v59 = vadd.f32 %v3669_v34, %v3747_v62  ;;  %v942_v34 = vld [vmem:[#allocation2 + $0x508] sm:$0xff] }
 0x14b   :  { %v3989_v12 = vpop.f32.mrf.mxu3  ;;  %v3991_v52 = vpop.f32.mrf.mxu0  ;;  %5316 = vst [vmem:[#allocation62_spill] sm:$0xff] %v4053_v20  ;;  %1732 = vmatpush.msra.mxu2 %v942_v34  ;;  %v4081_v37 = vmax.f32 %v365_v54, 0.0 }
 0x14c   :  { %5311 = vst [vmem:[#allocation57_spill] sm:$0xff] %v4023_v6  ;;  %v4055_v21 = vmax.f32 %v475_v59, 0.0  ;;  %v478_v59 = vadd.f32 %v3684_v48, %v3747_v62  ;;  %v878_v48 = vld [vmem:[#allocation2 + $0x308] sm:$0xff] }
 0x14d   :  { %v3993_v53 = vpop.f32.mrf.mxu1  ;;  %5322 = vst [vmem:[#allocation68_spill] sm:$0xff] %v4081_v37  ;;  %1619 = vmatpush.msra.mxu1 %v878_v48 }
 0x14e   :  { %1087 = vmatmul.f32.gmra.mxu0 %v3995_v55  ;;  %5317 = vst [vmem:[#allocation63_spill] sm:$0xff] %v4055_v21  ;;  %v4083_v34 = vmax.f32 %v478_v59, 0.0  ;;  %v5326_v59 = vld [vmem:[#allocation9_spill] sm:$0xff] }
 0x14f   :  { %1313 = vmatmul.f32.gmra.mxu2 %v3999_v61  ;;  %v594_v40 = vadd.f32 %v5326_v59, %v3749_v9  ;;  %v810_v59 = vld [vmem:[#allocation2 + $0xe8] sm:$0xff] }
 0x150   :  { %1200 = vmatmul.f32.gmra.mxu1 %v3997_v60  ;;  %1426 = vmatmul.f32.gmra.mxu3 %v4001_v58  ;;  %5323 = vst [vmem:[#allocation69_spill] sm:$0xff] %v4083_v34 }
 0x151   :  { %v4113_v48 = vmax.f32 %v594_v40, 0.0  ;;  %1507 = vmatpush.msra.mxu0 %v810_v59  ;;  %v5337_v40 = vld [vmem:[#allocation12_spill] sm:$0xff] }
 0x152   :  { %v4015_v61 = vpop.f32.mrf.mxu2 }
 0x153   :  { %v4017_v58 = vpop.f32.mrf.mxu3  ;;  %v4019_v60 = vpop.f32.mrf.mxu0  ;;  %5334 = vst [vmem:[#allocation76_spill] sm:$0xff] %v4113_v48 }
 0x155   :  { %v4021_v55 = vpop.f32.mrf.mxu1 }
 0x156   :  { %1090 = vmatmul.f32.gmra.mxu0 %v4023_v6  ;;  %v1006_v6 = vld [vmem:[#allocation2 + $0x708] sm:$0xff] }
 0x157   :  { %1316 = vmatmul.f32.gmra.mxu2 %v4027_v2  ;;  %1845 = vmatpush.msra.mxu3 %v1006_v6  ;;  %v368_v6 = vadd.f32 %v3690_v51, %v3745_v57 }
 0x158   :  { %1203 = vmatmul.f32.gmra.mxu1 %v4025_v7  ;;  %1429 = vmatmul.f32.gmra.mxu3 %v4029_v3  ;;  %v4051_v7 = vmax.f32 %v249_v15, 0.0  ;;  %v252_v15 = vadd.f32 %v3673_v36, %v3743_v28 }
 0x159   :  { %v4109_v50 = vmax.f32 %v368_v6, 0.0  ;;  %v5336_v6 = vld [vmem:[#allocation11_spill] sm:$0xff] }
 0x15a   :  { %v4043_v45 = vpop.f32.mrf.mxu2  ;;  %5315 = vst [vmem:[#allocation61_spill] sm:$0xff] %v4051_v7  ;;  %v4079_v36 = vmax.f32 %v252_v15, 0.0  ;;  %v5325_v15 = vld [vmem:[#allocation8_spill] sm:$0xff] }
 0x15b   :  { %v4045_v26 = vpop.f32.mrf.mxu3  ;;  %v4047_v2 = vpop.f32.mrf.mxu0  ;;  %v481_v54 = vadd.f32 %v5325_v15, %v3747_v62  ;;  %5332 = vst [vmem:[#allocation74_spill] sm:$0xff] %v4109_v50  ;;  %v938_v15 = vld [vmem:[#allocation2 + $0x4e8] sm:$0xff] }
 0x15c   :  { %5321 = vst [vmem:[#allocation67_spill] sm:$0xff] %v4079_v36  ;;  %1733 = vmatpush.msra.mxu2 %v938_v15 }
 0x15d   :  { %v4049_v3 = vpop.f32.mrf.mxu1  ;;  %v4111_v51 = vmax.f32 %v481_v54, 0.0  ;;  %v371_v54 = vadd.f32 %v5336_v6, %v3745_v57 }
 0x15e   :  { %1093 = vmatmul.f32.gmra.mxu0 %v4051_v7 }
 0x15f   :  { %1319 = vmatmul.f32.gmra.mxu2 %v4055_v21  ;;  %5333 = vst [vmem:[#allocation75_spill] sm:$0xff] %v4111_v51  ;;  %v4137_v6 = vmax.f32 %v371_v54, 0.0  ;;  %v5348_v54 = vld [vmem:[#allocation16_spill] sm:$0xff] }
 0x160   :  { %1206 = vmatmul.f32.gmra.mxu1 %v4053_v20  ;;  %1432 = vmatmul.f32.gmra.mxu3 %v4057_v14 }
 0x161   :  { %5343 = vst [vmem:[#allocation77_spill] sm:$0xff] %v4137_v6 }
 0x162   :  { %v4071_v21 = vpop.f32.mrf.mxu2 }
 0x163   :  { %v4073_v14 = vpop.f32.mrf.mxu3  ;;  %v4075_v20 = vpop.f32.mrf.mxu0 }
 0x164   :  { %5319 = vst [vmem:[#allocation65_spill] sm:$0xff] %v4075_v20 }
 0x165   :  { %v4077_v7 = vpop.f32.mrf.mxu1 }
 0x166   :  { %5320 = vst [vmem:[#allocation66_spill] sm:$0xff] %v4077_v7  ;;  %1096 = vmatmul.f32.gmra.mxu0 %v4079_v36  ;;  %v4107_v7 = vmax.f32 %v255_v49, 0.0  ;;  %v5335_v49 = vld [vmem:[#allocation10_spill] sm:$0xff] }
 0x167   :  { %1322 = vmatmul.f32.gmra.mxu2 %v4083_v34 }
 0x168   :  { %1209 = vmatmul.f32.gmra.mxu1 %v4081_v37  ;;  %1435 = vmatmul.f32.gmra.mxu3 %v4085_v35  ;;  %5331 = vst [vmem:[#allocation73_spill] sm:$0xff] %v4107_v7 }
 0x16a   :  { %v4099_v36 = vpop.f32.mrf.mxu2 }
 0x16b   :  { %5327 = vst [vmem:[#allocation8_spill] sm:$0xff] %v4099_v36  ;;  %v4101_v37 = vpop.f32.mrf.mxu3  ;;  %v4103_v34 = vpop.f32.mrf.mxu0 }
 0x16c   :  { %5328 = vst [vmem:[#allocation9_spill] sm:$0xff] %v4101_v37 }
 0x16d   :  { %5329 = vst [vmem:[#allocation71_spill] sm:$0xff] %v4103_v34  ;;  %v4105_v35 = vpop.f32.mrf.mxu1  ;;  %v1002_v34 = vld [vmem:[#allocation2 + $0x6e8] sm:$0xff] }
 0x16e   :  { %5330 = vst [vmem:[#allocation72_spill] sm:$0xff] %v4105_v35  ;;  %1099 = vmatmul.f32.gmra.mxu0 %v4107_v7  ;;  %v258_v35 = vadd.f32 %v5335_v49, %v3743_v28  ;;  %v484_v7 = vadd.f32 %v5337_v40, %v3747_v62  ;;  %1846 = vmatpush.msra.mxu3 %v1002_v34  ;;  %v5346_v34 = vld [vmem:[#allocation14_spill] sm:$0xff] }
 0x16f   :  { %1325 = vmatmul.f32.gmra.mxu2 %v4111_v51 }
 0x170   :  { %1212 = vmatmul.f32.gmra.mxu1 %v4109_v50  ;;  %1438 = vmatmul.f32.gmra.mxu3 %v4113_v48  ;;  %v5338_v50 = vld [vmem:[#allocation13_spill] sm:$0xff]  ;;  %v4135_v49 = vmax.f32 %v258_v35, 0.0  ;;  %v4139_v15 = vmax.f32 %v484_v7, 0.0  ;;  %v5347_v35 = vld [vmem:[#allocation15_spill] sm:$0xff]  ;;  %v487_v7 = vadd.f32 %v5348_v54, %v3747_v62 }
 0x171   :  { %v597_v37 = vadd.f32 %v5338_v50, %v3749_v9  ;;  %v261_v50 = vadd.f32 %v5346_v34, %v3743_v28  ;;  %v374_v40 = vadd.f32 %v5347_v35, %v3745_v57 }
 0x172   :  { %v4127_v51 = vpop.f32.mrf.mxu2  ;;  %5342 = vst [vmem:[#allocation13_spill] sm:$0xff] %v4135_v49  ;;  %v4167_v35 = vmax.f32 %v487_v7, 0.0  ;;  %v934_v7 = vld [vmem:[#allocation2 + $0x4c8] sm:$0xff] }
 0x173   :  { %v4129_v48 = vpop.f32.mrf.mxu3  ;;  %v4131_v36 = vpop.f32.mrf.mxu0  ;;  %5344 = vst [vmem:[#allocation78_spill] sm:$0xff] %v4139_v15  ;;  %v4141_v59 = vmax.f32 %v597_v37, 0.0  ;;  %v5349_v37 = vld [vmem:[#allocation17_spill] sm:$0xff]  ;;  %v4163_v34 = vmax.f32 %v261_v50, 0.0  ;;  %v5358_v50 = vld [vmem:[#allocation19_spill] sm:$0xff]  ;;  %1734 = vmatpush.msra.mxu2 %v934_v7 }
 0x174   :  { %5339 = vst [vmem:[#allocation10_spill] sm:$0xff] %v4129_v48  ;;  %v4165_v48 = vmax.f32 %v374_v40, 0.0  ;;  %v490_v40 = vadd.f32 %v3763_v23, %v3747_v62 }
 0x175   :  { %5340 = vst [vmem:[#allocation11_spill] sm:$0xff] %v4131_v36  ;;  %v4133_v20 = vpop.f32.mrf.mxu1  ;;  %v874_v36 = vld [vmem:[#allocation2 + $0x2e8] sm:$0xff] }
 0x176   :  { %5341 = vst [vmem:[#allocation12_spill] sm:$0xff] %v4133_v20  ;;  %1102 = vmatmul.f32.gmra.mxu0 %v4135_v49  ;;  %v600_v20 = vadd.f32 %v5349_v37, %v3749_v9  ;;  %1620 = vmatpush.msra.mxu1 %v874_v36  ;;  %v5357_v36 = vld [vmem:[#allocation18_spill] sm:$0xff] }
 0x177   :  { %5345 = vst [vmem:[#allocation79_spill] sm:$0xff] %v4141_v59  ;;  %1328 = vmatmul.f32.gmra.mxu2 %v4139_v15  ;;  %v264_v37 = vadd.f32 %v5357_v36, %v3743_v28 }
 0x178   :  { %1215 = vmatmul.f32.gmra.mxu1 %v4137_v6  ;;  %1441 = vmatmul.f32.gmra.mxu3 %v4141_v59  ;;  %5353 = vst [vmem:[#allocation17_spill] sm:$0xff] %v4163_v34  ;;  %v4169_v54 = vmax.f32 %v600_v20, 0.0  ;;  %v603_v20 = vadd.f32 %v3765_v8, %v3749_v9 }
 0x179   :  { %5354 = vst [vmem:[#allocation80_spill] sm:$0xff] %v4165_v48 }
 0x17a   :  { %v4155_v49 = vpop.f32.mrf.mxu2  ;;  %5355 = vst [vmem:[#allocation81_spill] sm:$0xff] %v4167_v35  ;;  %v4197_v8 = vmax.f32 %v603_v20, 0.0  ;;  %v606_v20 = vadd.f32 %v3793_v63, %v3749_v9 }
 0x17b   :  { %v4157_v6 = vpop.f32.mrf.mxu3  ;;  %v4159_v15 = vpop.f32.mrf.mxu0  ;;  %5356 = vst [vmem:[#allocation82_spill] sm:$0xff] %v4169_v54 }
 0x17c   :  { %5350 = vst [vmem:[#allocation14_spill] sm:$0xff] %v4157_v6  ;;  %v4195_v6 = vmax.f32 %v490_v40, 0.0  ;;  %v493_v40 = vadd.f32 %v3791_v5, %v3747_v62  ;;  %v4226_v5 = vmax.f32 %v606_v20, 0.0  ;;  %v802_v20 = vld [vmem:[#allocation2 + $0xa8] sm:$0xff] }
 0x17d   :  { %5351 = vst [vmem:[#allocation15_spill] sm:$0xff] %v4159_v15  ;;  %v4161_v59 = vpop.f32.mrf.mxu1  ;;  %v998_v15 = vld [vmem:[#allocation2 + $0x6c8] sm:$0xff] }
 0x17e   :  { %5352 = vst [vmem:[#allocation16_spill] sm:$0xff] %v4161_v59  ;;  %1105 = vmatmul.f32.gmra.mxu0 %v4163_v34  ;;  %v377_v59 = vadd.f32 %v5358_v50, %v3745_v57  ;;  %v806_v34 = vld [vmem:[#allocation2 + $0xc8] sm:$0xff]  ;;  %1847 = vmatpush.msra.mxu3 %v998_v15  ;;  %v4191_v50 = vmax.f32 %v264_v37, 0.0  ;;  %v5366_v15 = vld [vmem:[#allocation20_spill] sm:$0xff]  ;;  %v380_v37 = vadd.f32 %v3769_v56, %v3745_v57  ;;  %v4224_v56 = vmax.f32 %v493_v40, 0.0 }
 0x17f   :  { %1331 = vmatmul.f32.gmra.mxu2 %v4167_v35  ;;  %1508 = vmatpush.msra.mxu0 %v806_v34  ;;  %5364 = vst [vmem:[#allocation86_spill] sm:$0xff] %v4195_v6  ;;  %v1037_v34 = vld [vmem:[%s5070_s4] sm:$0xf]  ;;  %v930_v40 = vld [vmem:[#allocation2 + $0x4a8] sm:$0xff] }
 0x180   :  { %1218 = vmatmul.f32.gmra.mxu1 %v4165_v48  ;;  %1444 = vmatmul.f32.gmra.mxu3 %v4169_v54  ;;  %5362 = vst [vmem:[#allocation84_spill] sm:$0xff] %v4191_v50  ;;  %v4193_v23 = vmax.f32 %v377_v59, 0.0  ;;  %v267_v59 = vadd.f32 %v5366_v15, %v3743_v28  ;;  %v4214_v7 = vperm.slane %v1037_v34, 0  ;;  %v383_v34 = vadd.f32 %v3797_v0, %v3745_v57 }
 0x181   :  { %5365 = vst [vmem:[#allocation87_spill] sm:$0xff] %v4197_v8  ;;  %1735 = vmatpush.msra.mxu2 %v930_v40  ;;  %1509 = vmatpush.msra.mxu0 %v802_v20 }
 0x182   :  { %v4183_v48 = vpop.f32.mrf.mxu2  ;;  %5363 = vst [vmem:[#allocation85_spill] sm:$0xff] %v4193_v23  ;;  %v4220_v15 = vmax.f32 %v267_v59, 0.0  ;;  %v496_v59 = vadd.f32 %v3819_v43, %v3747_v62  ;;  %v4243_v0 = vmax.f32 %v383_v34, 0.0 }
 0x183   :  { %v4185_v35 = vpop.f32.mrf.mxu3  ;;  %v4187_v54 = vpop.f32.mrf.mxu0  ;;  %5371 = vst [vmem:[#allocation91_spill] sm:$0xff] %v4224_v56 }
 0x184   :  { %5359 = vst [vmem:[#allocation18_spill] sm:$0xff] %v4185_v35  ;;  %v4245_v43 = vmax.f32 %v496_v59, 0.0 }
 0x185   :  { %5360 = vst [vmem:[#allocation19_spill] sm:$0xff] %v4187_v54  ;;  %v4189_v36 = vpop.f32.mrf.mxu1  ;;  %v4222_v54 = vmax.f32 %v380_v37, 0.0 }
 0x186   :  { %5361 = vst [vmem:[#allocation83_spill] sm:$0xff] %v4189_v36  ;;  %1108 = vmatmul.f32.gmra.mxu0 %v4191_v50 }
 0x187   :  { %1334 = vmatmul.f32.gmra.mxu2 %v4195_v6  ;;  %5369 = vst [vmem:[#allocation89_spill] sm:$0xff] %v4220_v15 }
 0x188   :  { %1221 = vmatmul.f32.gmra.mxu1 %v4193_v23  ;;  %1447 = vmatmul.f32.gmra.mxu3 %v4197_v8  ;;  %v870_v23 = vld [vmem:[#allocation2 + $0x2c8] sm:$0xff]  ;;  %5370 = vst [vmem:[#allocation90_spill] sm:$0xff] %v4222_v54 }
 0x189   :  { %1621 = vmatpush.msra.mxu1 %v870_v23  ;;  %5372 = vst [vmem:[#allocation92_spill] sm:$0xff] %v4226_v5  ;;  %v270_v23 = vadd.f32 %v3795_v4, %v3743_v28 }
 0x18a   :  { %v4216_v50 = vpop.f32.mrf.mxu2 }
 0x18b   :  { %5367 = vst [vmem:[#allocation20_spill] sm:$0xff] %v4216_v50  ;;  %v4218_v6 = vpop.f32.mrf.mxu3  ;;  %v1064_v8 = vpop.f32.mrf.mxu0  ;;  %v4241_v50 = vmax.f32 %v270_v23, 0.0  ;;  %v866_v23 = vld [vmem:[#allocation2 + $0x2a8] sm:$0xff] }
 0x18c   :  { %5368 = vst [vmem:[#allocation88_spill] sm:$0xff] %v4218_v6  ;;  %v1065_v63 = vadd.f32 %v1064_v8, %v4214_v7  ;;  %v609_v8 = vadd.f32 %v3821_v22, %v3749_v9  ;;  %1622 = vmatpush.msra.mxu1 %v866_v23  ;;  %v990_v23 = vld [vmem:[#allocation2 + $0x688] sm:$0xff] }
 0x18d   :  { %v1177_v36 = vpop.f32.mrf.mxu1 }
 0x18e   :  { %1111 = vmatmul.f32.gmra.mxu0 %v4220_v15  ;;  %v1178_v37 = vadd.f32 %v1177_v36, %v1065_v63  ;;  %v4247_v35 = vmax.f32 %v609_v8, 0.0 }
 0x18f   :  { %1337 = vmatmul.f32.gmra.mxu2 %v4224_v56 }
 0x190   :  { %1224 = vmatmul.f32.gmra.mxu1 %v4222_v54  ;;  %1450 = vmatmul.f32.gmra.mxu3 %v4226_v5  ;;  %v994_v54 = vld [vmem:[#allocation2 + $0x6a8] sm:$0xff] }
 0x191   :  { %1848 = vmatpush.msra.mxu3 %v994_v54  ;;  %v273_v54 = vadd.f32 %v3823_v10, %v3743_v28 }
 0x192   :  { %v1290_v15 = vpop.f32.mrf.mxu2 }
 0x193   :  { %v1403_v56 = vpop.f32.mrf.mxu3  ;;  %v1291_v5 = vadd.f32 %v1290_v15, %v1178_v37  ;;  %v1067_v6 = vpop.f32.mrf.mxu0  ;;  %v386_v15 = vadd.f32 %v3825_v11, %v3745_v57  ;;  %v4262_v20 = vmax.f32 %v273_v54, 0.0  ;;  %v502_v54 = vadd.f32 %v3875_v29, %v3747_v62  ;;  %1849 = vmatpush.msra.mxu3 %v990_v23 }
 0x194   :  { %v1068_v36 = vadd.f32 %v1067_v6, %v4214_v7  ;;  %v612_v6 = vadd.f32 %v3849_v16, %v3749_v9 }
 0x195   :  { %v1180_v4 = vpop.f32.mrf.mxu1  ;;  %v1404_v22 = vadd.f32 %v1403_v56, %v1291_v5  ;;  %v499_v56 = vadd.f32 %v3847_v19, %v3747_v62  ;;  %v4264_v10 = vmax.f32 %v386_v15, 0.0  ;;  %v615_v15 = vadd.f32 %v3877_v42, %v3749_v9 }
 0x196   :  { %1114 = vmatmul.f32.gmra.mxu0 %v4241_v50  ;;  %v1181_v5 = vadd.f32 %v1180_v4, %v1068_v36  ;;  %v276_v36 = vadd.f32 %v3851_v18, %v3743_v28  ;;  %v4287_v29 = vmax.f32 %v502_v54, 0.0  ;;  %v505_v54 = vadd.f32 %v3903_v33, %v3747_v62 }
 0x197   :  { %v2855_v63 = vmax.f32 %v1404_v22, 0.0  ;;  %1340 = vmatmul.f32.gmra.mxu2 %v4245_v43  ;;  %v4266_v11 = vmax.f32 %v499_v56, 0.0  ;;  %v4268_v22 = vmax.f32 %v612_v6, 0.0  ;;  %v926_v6 = vld [vmem:[#allocation2 + $0x488] sm:$0xff]  ;;  %v4289_v42 = vmax.f32 %v615_v15, 0.0 }
 0x198   :  { %1227 = vmatmul.f32.gmra.mxu1 %v4243_v0  ;;  %1453 = vmatmul.f32.gmra.mxu3 %v4247_v35  ;;  %v618_v15 = vadd.f32 %v3905_v30, %v3749_v9 }
 0x199   :  { %2983 = vst [vmem:[#allocation5] sm:$0xff] %v2855_v63  ;;  %v389_v63 = vadd.f32 %v3853_v13, %v3745_v57  ;;  %1736 = vmatpush.msra.mxu2 %v926_v6  ;;  %v4283_v13 = vmax.f32 %v276_v36, 0.0  ;;  %v279_v36 = vadd.f32 %v3879_v24, %v3743_v28  ;;  %v862_v6 = vld [vmem:[#allocation2 + $0x288] sm:$0xff] }
 0x19a   :  { %v1293_v34 = vpop.f32.mrf.mxu2  ;;  %1623 = vmatpush.msra.mxu1 %v862_v6  ;;  %v986_v6 = vld [vmem:[#allocation2 + $0x668] sm:$0xff] }
 0x19b   :  { %v1406_v59 = vpop.f32.mrf.mxu3  ;;  %v1294_v8 = vadd.f32 %v1293_v34, %v1181_v5  ;;  %v1070_v37 = vpop.f32.mrf.mxu0  ;;  %v798_v5 = vld [vmem:[#allocation2 + $0x88] sm:$0xff]  ;;  %1850 = vmatpush.msra.mxu3 %v986_v6 }
 0x19c   :  { %v1071_v16 = vadd.f32 %v1070_v37, %v4214_v7  ;;  %1510 = vmatpush.msra.mxu0 %v798_v5 }
 0x19d   :  { %v1183_v40 = vpop.f32.mrf.mxu1  ;;  %v1407_v19 = vadd.f32 %v1406_v59, %v1294_v8 }
 0x19e   :  { %1117 = vmatmul.f32.gmra.mxu0 %v4262_v20  ;;  %v1184_v56 = vadd.f32 %v1183_v40, %v1071_v16 }
 0x19f   :  { %v2859_v4 = vmax.f32 %v1407_v19, 0.0  ;;  %1343 = vmatmul.f32.gmra.mxu2 %v4266_v11  ;;  %v4285_v19 = vmax.f32 %v389_v63, 0.0  ;;  %v392_v63 = vadd.f32 %v3881_v25, %v3745_v57  ;;  %v4308_v25 = vmax.f32 %v505_v54, 0.0 }
 0x1a0   :  { %1230 = vmatmul.f32.gmra.mxu1 %v4264_v10  ;;  %1456 = vmatmul.f32.gmra.mxu3 %v4268_v22 }
 0x1a1   :  { %2987 = vst [vmem:[#allocation5 + $0x20] sm:$0xff] %v2859_v4  ;;  %v4306_v24 = vmax.f32 %v392_v63, 0.0  ;;  %v621_v63 = vadd.f32 %v3933_v1, %v3749_v9 }
 0x1a2   :  { %v1296_v34 = vpop.f32.mrf.mxu2 }
 0x1a3   :  { %v1409_v59 = vpop.f32.mrf.mxu3  ;;  %v1297_v8 = vadd.f32 %v1296_v34, %v1184_v56  ;;  %v1073_v18 = vpop.f32.mrf.mxu0  ;;  %v4331_v1 = vmax.f32 %v621_v63, 0.0  ;;  %v624_v63 = vadd.f32 %v3961_v44, %v3749_v9 }
 0x1a4   :  { %v1074_v16 = vadd.f32 %v1073_v18, %v4214_v7  ;;  %v4304_v18 = vmax.f32 %v279_v36, 0.0  ;;  %v508_v36 = vadd.f32 %v3931_v17, %v3747_v62 }
 0x1a5   :  { %v1186_v37 = vpop.f32.mrf.mxu1  ;;  %v1410_v40 = vadd.f32 %v1409_v59, %v1297_v8 }
 0x1a6   :  { %1120 = vmatmul.f32.gmra.mxu0 %v4283_v13  ;;  %v1187_v56 = vadd.f32 %v1186_v37, %v1074_v16  ;;  %v282_v16 = vadd.f32 %v3907_v32, %v3743_v28  ;;  %v4329_v17 = vmax.f32 %v508_v36, 0.0  ;;  %v511_v36 = vadd.f32 %v3959_v47, %v3747_v62 }
 0x1a7   :  { %v2863_v4 = vmax.f32 %v1410_v40, 0.0  ;;  %1346 = vmatmul.f32.gmra.mxu2 %v4287_v29  ;;  %v4310_v40 = vmax.f32 %v618_v15, 0.0  ;;  %v922_v15 = vld [vmem:[#allocation2 + $0x468] sm:$0xff] }
 0x1a8   :  { %1233 = vmatmul.f32.gmra.mxu1 %v4285_v19  ;;  %1459 = vmatmul.f32.gmra.mxu3 %v4289_v42 }
 0x1a9   :  { %2991 = vst [vmem:[#allocation5 + $0x40] sm:$0xff] %v2863_v4  ;;  %v395_v4 = vadd.f32 %v3909_v27, %v3745_v57  ;;  %1737 = vmatpush.msra.mxu2 %v922_v15  ;;  %v4325_v27 = vmax.f32 %v282_v16, 0.0  ;;  %v285_v16 = vadd.f32 %v3935_v38, %v3743_v28  ;;  %v858_v15 = vld [vmem:[#allocation2 + $0x268] sm:$0xff] }
 0x1aa   :  { %v1299_v5 = vpop.f32.mrf.mxu2  ;;  %1624 = vmatpush.msra.mxu1 %v858_v15  ;;  %v982_v15 = vld [vmem:[#allocation2 + $0x648] sm:$0xff] }
 0x1ab   :  { %v1412_v23 = vpop.f32.mrf.mxu3  ;;  %v1300_v34 = vadd.f32 %v1299_v5, %v1187_v56  ;;  %v1076_v59 = vpop.f32.mrf.mxu0  ;;  %v794_v56 = vld [vmem:[#allocation2 + $0x68] sm:$0xff]  ;;  %1851 = vmatpush.msra.mxu3 %v982_v15 }
 0x1ac   :  { %v1077_v30 = vadd.f32 %v1076_v59, %v4214_v7  ;;  %1511 = vmatpush.msra.mxu0 %v794_v56 }
 0x1ad   :  { %v1189_v8 = vpop.f32.mrf.mxu1  ;;  %v1413_v33 = vadd.f32 %v1412_v23, %v1300_v34 }
 0x1ae   :  { %1123 = vmatmul.f32.gmra.mxu0 %v4304_v18  ;;  %v1190_v54 = vadd.f32 %v1189_v8, %v1077_v30 }
 0x1af   :  { %v2867_v37 = vmax.f32 %v1413_v33, 0.0  ;;  %1349 = vmatmul.f32.gmra.mxu2 %v4308_v25  ;;  %v4327_v33 = vmax.f32 %v395_v4, 0.0  ;;  %v398_v4 = vadd.f32 %v3937_v39, %v3745_v57  ;;  %v4350_v39 = vmax.f32 %v511_v36, 0.0 }
 0x1b0   :  { %1236 = vmatmul.f32.gmra.mxu1 %v4306_v24  ;;  %1462 = vmatmul.f32.gmra.mxu3 %v4310_v40 }
 0x1b1   :  { %2995 = vst [vmem:[#allocation5 + $0x60] sm:$0xff] %v2867_v37  ;;  %v4348_v38 = vmax.f32 %v398_v4, 0.0  ;;  %v627_v4 = vadd.f32 %v3989_v12, %v3749_v9 }
 0x1b2   :  { %v1302_v5 = vpop.f32.mrf.mxu2 }
 0x1b3   :  { %v1415_v23 = vpop.f32.mrf.mxu3  ;;  %v1303_v34 = vadd.f32 %v1302_v5, %v1190_v54  ;;  %v1079_v32 = vpop.f32.mrf.mxu0  ;;  %v4373_v12 = vmax.f32 %v627_v4, 0.0  ;;  %v630_v4 = vadd.f32 %v4017_v58, %v3749_v9 }
 0x1b4   :  { %v1080_v30 = vadd.f32 %v1079_v32, %v4214_v7  ;;  %v4346_v32 = vmax.f32 %v285_v16, 0.0  ;;  %v514_v16 = vadd.f32 %v3987_v31, %v3747_v62 }
 0x1b5   :  { %v1192_v59 = vpop.f32.mrf.mxu1  ;;  %v1416_v8 = vadd.f32 %v1415_v23, %v1303_v34 }
 0x1b6   :  { %1126 = vmatmul.f32.gmra.mxu0 %v4325_v27  ;;  %v1193_v54 = vadd.f32 %v1192_v59, %v1080_v30  ;;  %v288_v30 = vadd.f32 %v3963_v46, %v3743_v28  ;;  %v4371_v31 = vmax.f32 %v514_v16, 0.0  ;;  %v517_v16 = vadd.f32 %v4015_v61, %v3747_v62 }
 0x1b7   :  { %v2871_v37 = vmax.f32 %v1416_v8, 0.0  ;;  %1352 = vmatmul.f32.gmra.mxu2 %v4329_v17  ;;  %v4352_v8 = vmax.f32 %v624_v63, 0.0  ;;  %v918_v63 = vld [vmem:[#allocation2 + $0x448] sm:$0xff] }
 0x1b8   :  { %1239 = vmatmul.f32.gmra.mxu1 %v4327_v33  ;;  %1465 = vmatmul.f32.gmra.mxu3 %v4331_v1 }
 0x1b9   :  { %2999 = vst [vmem:[#allocation5 + $0x80] sm:$0xff] %v2871_v37  ;;  %v401_v37 = vadd.f32 %v3965_v41, %v3745_v57  ;;  %1738 = vmatpush.msra.mxu2 %v918_v63  ;;  %v4367_v41 = vmax.f32 %v288_v30, 0.0  ;;  %v291_v30 = vadd.f32 %v3991_v52, %v3743_v28  ;;  %v854_v63 = vld [vmem:[#allocation2 + $0x248] sm:$0xff] }
 0x1ba   :  { %v1305_v56 = vpop.f32.mrf.mxu2  ;;  %1625 = vmatpush.msra.mxu1 %v854_v63  ;;  %v978_v63 = vld [vmem:[#allocation2 + $0x628] sm:$0xff] }
 0x1bb   :  { %v1418_v6 = vpop.f32.mrf.mxu3  ;;  %v1306_v5 = vadd.f32 %v1305_v56, %v1193_v54  ;;  %v1082_v23 = vpop.f32.mrf.mxu0  ;;  %v790_v54 = vld [vmem:[#allocation2 + $0x48] sm:$0xff]  ;;  %1852 = vmatpush.msra.mxu3 %v978_v63 }
 0x1bc   :  { %v1083_v44 = vadd.f32 %v1082_v23, %v4214_v7  ;;  %1512 = vmatpush.msra.mxu0 %v790_v54 }
 0x1bd   :  { %v1195_v34 = vpop.f32.mrf.mxu1  ;;  %v1419_v47 = vadd.f32 %v1418_v6, %v1306_v5 }
 0x1be   :  { %1129 = vmatmul.f32.gmra.mxu0 %v4346_v32  ;;  %v1196_v36 = vadd.f32 %v1195_v34, %v1083_v44 }
 0x1bf   :  { %v2875_v59 = vmax.f32 %v1419_v47, 0.0  ;;  %1355 = vmatmul.f32.gmra.mxu2 %v4350_v39  ;;  %v4369_v47 = vmax.f32 %v401_v37, 0.0  ;;  %v404_v37 = vadd.f32 %v3993_v53, %v3745_v57  ;;  %v4392_v53 = vmax.f32 %v517_v16, 0.0 }
 0x1c0   :  { %1242 = vmatmul.f32.gmra.mxu1 %v4348_v38  ;;  %1468 = vmatmul.f32.gmra.mxu3 %v4352_v8 }
 0x1c1   :  { %3003 = vst [vmem:[#allocation5 + $0xa0] sm:$0xff] %v2875_v59  ;;  %v4390_v52 = vmax.f32 %v404_v37, 0.0  ;;  %v633_v37 = vadd.f32 %v4045_v26, %v3749_v9 }
 0x1c2   :  { %v1308_v56 = vpop.f32.mrf.mxu2  ;;  %5373 = vst [vmem:[#allocation93_spill] sm:$0xff] %v4392_v53 }
 0x1c3   :  { %v1421_v6 = vpop.f32.mrf.mxu3  ;;  %v1309_v5 = vadd.f32 %v1308_v56, %v1196_v36  ;;  %v1085_v46 = vpop.f32.mrf.mxu0  ;;  %v4415_v26 = vmax.f32 %v633_v37, 0.0  ;;  %v636_v37 = vadd.f32 %v4073_v14, %v3749_v9 }
 0x1c4   :  { %v1086_v44 = vadd.f32 %v1085_v46, %v4214_v7  ;;  %v4388_v46 = vmax.f32 %v291_v30, 0.0  ;;  %v520_v30 = vadd.f32 %v4043_v45, %v3747_v62 }
 0x1c5   :  { %v1198_v23 = vpop.f32.mrf.mxu1  ;;  %v1422_v34 = vadd.f32 %v1421_v6, %v1309_v5  ;;  %5378 = vst [vmem:[#allocation98_spill] sm:$0xff] %v4415_v26 }
 0x1c6   :  { %1132 = vmatmul.f32.gmra.mxu0 %v4367_v41  ;;  %v1199_v36 = vadd.f32 %v1198_v23, %v1086_v44  ;;  %v294_v44 = vadd.f32 %v4019_v60, %v3743_v28  ;;  %v4413_v45 = vmax.f32 %v520_v30, 0.0  ;;  %v523_v30 = vadd.f32 %v4071_v21, %v3747_v62 }
 0x1c7   :  { %v2879_v59 = vmax.f32 %v1422_v34, 0.0  ;;  %1358 = vmatmul.f32.gmra.mxu2 %v4371_v31  ;;  %v4394_v34 = vmax.f32 %v630_v4, 0.0  ;;  %v914_v4 = vld [vmem:[#allocation2 + $0x428] sm:$0xff] }
 0x1c8   :  { %1245 = vmatmul.f32.gmra.mxu1 %v4369_v47  ;;  %1471 = vmatmul.f32.gmra.mxu3 %v4373_v12  ;;  %5377 = vst [vmem:[#allocation97_spill] sm:$0xff] %v4413_v45 }
 0x1c9   :  { %3007 = vst [vmem:[#allocation5 + $0xc0] sm:$0xff] %v2879_v59  ;;  %v407_v59 = vadd.f32 %v4021_v55, %v3745_v57  ;;  %1739 = vmatpush.msra.mxu2 %v914_v4  ;;  %v4409_v55 = vmax.f32 %v294_v44, 0.0  ;;  %v297_v44 = vadd.f32 %v4047_v2, %v3743_v28  ;;  %v850_v4 = vld [vmem:[#allocation2 + $0x228] sm:$0xff] }
 0x1ca   :  { %v1311_v54 = vpop.f32.mrf.mxu2  ;;  %5374 = vst [vmem:[#allocation94_spill] sm:$0xff] %v4394_v34  ;;  %1626 = vmatpush.msra.mxu1 %v850_v4 }
 0x1cb   :  { %v1424_v15 = vpop.f32.mrf.mxu3  ;;  %v1312_v56 = vadd.f32 %v1311_v54, %v1199_v36  ;;  %v1088_v6 = vpop.f32.mrf.mxu0  ;;  %v786_v36 = vld [vmem:[#allocation2 + $0x28] sm:$0xff]  ;;  %5375 = vst [vmem:[#allocation95_spill] sm:$0xff] %v4409_v55 }
 0x1cc   :  { %v1089_v58 = vadd.f32 %v1088_v6, %v4214_v7  ;;  %1513 = vmatpush.msra.mxu0 %v786_v36 }
 0x1cd   :  { %v1201_v5 = vpop.f32.mrf.mxu1  ;;  %v1425_v61 = vadd.f32 %v1424_v15, %v1312_v56 }
 0x1ce   :  { %1135 = vmatmul.f32.gmra.mxu0 %v4388_v46  ;;  %v1202_v16 = vadd.f32 %v1201_v5, %v1089_v58 }
 0x1cf   :  { %v2883_v23 = vmax.f32 %v1425_v61, 0.0  ;;  %1361 = vmatmul.f32.gmra.mxu2 %v4392_v53  ;;  %v4411_v61 = vmax.f32 %v407_v59, 0.0  ;;  %v410_v59 = vadd.f32 %v4049_v3, %v3745_v57  ;;  %v4434_v3 = vmax.f32 %v523_v30, 0.0  ;;  %v5385_v30 = vld [vmem:[#allocation8_spill] sm:$0xff] }
 0x1d0   :  { %1248 = vmatmul.f32.gmra.mxu1 %v4390_v52  ;;  %1474 = vmatmul.f32.gmra.mxu3 %v4394_v34 }
 0x1d1   :  { %3011 = vst [vmem:[#allocation5 + $0xe0] sm:$0xff] %v2883_v23  ;;  %v4432_v2 = vmax.f32 %v410_v59, 0.0 }
 0x1d2   :  { %v1314_v54 = vpop.f32.mrf.mxu2  ;;  %5376 = vst [vmem:[#allocation96_spill] sm:$0xff] %v4411_v61 }
 0x1d3   :  { %v1427_v15 = vpop.f32.mrf.mxu3  ;;  %v1315_v56 = vadd.f32 %v1314_v54, %v1202_v16  ;;  %v1091_v60 = vpop.f32.mrf.mxu0  ;;  %5380 = vst [vmem:[#allocation100_spill] sm:$0xff] %v4432_v2 }
 0x1d4   :  { %v1092_v58 = vadd.f32 %v1091_v60, %v4214_v7  ;;  %v4430_v60 = vmax.f32 %v297_v44, 0.0  ;;  %5381 = vst [vmem:[#allocation101_spill] sm:$0xff] %v4434_v3  ;;  %v5384_v44 = vld [vmem:[#allocation66_spill] sm:$0xff] }
 0x1d5   :  { %v1204_v6 = vpop.f32.mrf.mxu1  ;;  %v1428_v5 = vadd.f32 %v1427_v15, %v1315_v56  ;;  %v413_v59 = vadd.f32 %v5384_v44, %v3745_v57 }
 0x1d6   :  { %1138 = vmatmul.f32.gmra.mxu0 %v4409_v55  ;;  %v1205_v16 = vadd.f32 %v1204_v6, %v1092_v58  ;;  %5379 = vst [vmem:[#allocation99_spill] sm:$0xff] %v4430_v60  ;;  %v5383_v58 = vld [vmem:[#allocation65_spill] sm:$0xff] }
 0x1d7   :  { %v2887_v23 = vmax.f32 %v1428_v5, 0.0  ;;  %1364 = vmatmul.f32.gmra.mxu2 %v4413_v45  ;;  %v4436_v5 = vmax.f32 %v636_v37, 0.0  ;;  %v526_v37 = vadd.f32 %v5385_v30, %v3747_v62 }
 0x1d8   :  { %1251 = vmatmul.f32.gmra.mxu1 %v4411_v61  ;;  %1477 = vmatmul.f32.gmra.mxu3 %v4415_v26 }
 0x1d9   :  { %3015 = vst [vmem:[#allocation5 + $0x100] sm:$0xff] %v2887_v23  ;;  %v300_v23 = vadd.f32 %v5383_v58, %v3743_v28  ;;  %v4455_v30 = vmax.f32 %v526_v37, 0.0  ;;  %v5392_v37 = vld [vmem:[#allocation72_spill] sm:$0xff] }
 0x1da   :  { %v1317_v36 = vpop.f32.mrf.mxu2  ;;  %5382 = vst [vmem:[#allocation102_spill] sm:$0xff] %v4436_v5 }
 0x1db   :  { %v1430_v63 = vpop.f32.mrf.mxu3  ;;  %v1318_v54 = vadd.f32 %v1317_v36, %v1205_v16  ;;  %v1094_v15 = vpop.f32.mrf.mxu0  ;;  %v5386_v16 = vld [vmem:[#allocation9_spill] sm:$0xff]  ;;  %v4451_v44 = vmax.f32 %v300_v23, 0.0  ;;  %5389 = vst [vmem:[#allocation8_spill] sm:$0xff] %v4455_v30  ;;  %v5391_v23 = vld [vmem:[#allocation71_spill] sm:$0xff] }
 0x1dc   :  { %v1095_v14 = vadd.f32 %v1094_v15, %v4214_v7  ;;  %v639_v4 = vadd.f32 %v5386_v16, %v3749_v9  ;;  %v974_v15 = vld [vmem:[#allocation2 + $0x608] sm:$0xff] }
 0x1dd   :  { %v1207_v56 = vpop.f32.mrf.mxu1  ;;  %v1431_v21 = vadd.f32 %v1430_v63, %v1318_v54  ;;  %v910_v63 = vld [vmem:[#allocation2 + $0x408] sm:$0xff]  ;;  %1853 = vmatpush.msra.mxu3 %v974_v15  ;;  %5387 = vst [vmem:[#allocation65_spill] sm:$0xff] %v4451_v44 }
 0x1de   :  { %1141 = vmatmul.f32.gmra.mxu0 %v4430_v60  ;;  %v1208_v36 = vadd.f32 %v1207_v56, %v1095_v14  ;;  %v782_v54 = vld [vmem:[#allocation2 + $0x8] sm:$0xff]  ;;  %1740 = vmatpush.msra.mxu2 %v910_v63  ;;  %v4453_v60 = vmax.f32 %v413_v59, 0.0  ;;  %v4457_v16 = vmax.f32 %v639_v4, 0.0  ;;  %v303_v59 = vadd.f32 %v5391_v23, %v3743_v28 }
 0x1df   :  { %v2891_v6 = vmax.f32 %v1431_v21, 0.0  ;;  %1367 = vmatmul.f32.gmra.mxu2 %v4434_v3  ;;  %1514 = vmatpush.msra.mxu0 %v782_v54  ;;  %v846_v54 = vld [vmem:[#allocation2 + $0x208] sm:$0xff] }
 0x1e0   :  { %1254 = vmatmul.f32.gmra.mxu1 %v4432_v2  ;;  %1480 = vmatmul.f32.gmra.mxu3 %v4436_v5  ;;  %5388 = vst [vmem:[#allocation66_spill] sm:$0xff] %v4453_v60 }
 0x1e1   :  { %3019 = vst [vmem:[#allocation5 + $0x120] sm:$0xff] %v2891_v6  ;;  %1627 = vmatpush.msra.mxu1 %v846_v54 }
 0x1e2   :  { %v1320_v21 = vpop.f32.mrf.mxu2  ;;  %5390 = vst [vmem:[#allocation9_spill] sm:$0xff] %v4457_v16 }
 0x1e3   :  { %v1433_v3 = vpop.f32.mrf.mxu3  ;;  %v1321_v5 = vadd.f32 %v1320_v21, %v1208_v36  ;;  %v1097_v58 = vpop.f32.mrf.mxu0  ;;  %v416_v36 = vadd.f32 %v5392_v37, %v3745_v57 }
 0x1e4   :  { %v1098_v14 = vadd.f32 %v1097_v58, %v4214_v7 }
 0x1e5   :  { %v1210_v2 = vpop.f32.mrf.mxu1  ;;  %v1434_v56 = vadd.f32 %v1433_v3, %v1321_v5  ;;  %v529_v3 = vadd.f32 %v4127_v51, %v3747_v62  ;;  %v5393_v5 = vld [vmem:[#allocation10_spill] sm:$0xff]  ;;  %v4474_v23 = vmax.f32 %v416_v36, 0.0 }
 0x1e6   :  { %1144 = vmatmul.f32.gmra.mxu0 %v4451_v44  ;;  %v642_v4 = vadd.f32 %v5393_v5, %v3749_v9  ;;  %v1211_v63 = vadd.f32 %v1210_v2, %v1098_v14  ;;  %v5398_v14 = vld [vmem:[#allocation11_spill] sm:$0xff] }
 0x1e7   :  { %v2895_v6 = vmax.f32 %v1434_v56, 0.0  ;;  %1370 = vmatmul.f32.gmra.mxu2 %v4455_v30  ;;  %v4472_v30 = vmax.f32 %v303_v59, 0.0  ;;  %5395 = vst [vmem:[#allocation72_spill] sm:$0xff] %v4474_v23  ;;  %v4476_v37 = vmax.f32 %v529_v3, 0.0  ;;  %v5399_v59 = vld [vmem:[#allocation12_spill] sm:$0xff]  ;;  %v532_v3 = vadd.f32 %v4155_v49, %v3747_v62 }
 0x1e8   :  { %1257 = vmatmul.f32.gmra.mxu1 %v4453_v60  ;;  %1483 = vmatmul.f32.gmra.mxu3 %v4457_v16  ;;  %v4478_v60 = vmax.f32 %v642_v4, 0.0  ;;  %v419_v36 = vadd.f32 %v5399_v59, %v3745_v57  ;;  %v5400_v4 = vld [vmem:[#allocation14_spill] sm:$0xff] }
 0x1e9   :  { %3023 = vst [vmem:[#allocation5 + $0x140] sm:$0xff] %v2895_v6  ;;  %v306_v6 = vadd.f32 %v5398_v14, %v3743_v28  ;;  %v4497_v49 = vmax.f32 %v532_v3, 0.0  ;;  %v5405_v3 = vld [vmem:[#allocation16_spill] sm:$0xff] }
 0x1ea   :  { %v1323_v15 = vpop.f32.mrf.mxu2  ;;  %5394 = vst [vmem:[#allocation71_spill] sm:$0xff] %v4472_v30 }
 0x1eb   :  { %v1436_v21 = vpop.f32.mrf.mxu3  ;;  %v1324_v58 = vadd.f32 %v1323_v15, %v1211_v63  ;;  %v1100_v56 = vpop.f32.mrf.mxu0  ;;  %5396 = vst [vmem:[#allocation10_spill] sm:$0xff] %v4476_v37  ;;  %v645_v63 = vadd.f32 %v5400_v4, %v3749_v9  ;;  %v971_v15 = vld [vmem:[#allocation2 + $0x5f0] sm:$0xff]  ;;  %v4493_v59 = vmax.f32 %v306_v6, 0.0  ;;  %v5404_v6 = vld [vmem:[#allocation15_spill] sm:$0xff] }
 0x1ec   :  { %5397 = vst [vmem:[#allocation103_spill] sm:$0xff] %v4478_v60  ;;  %v1101_v5 = vadd.f32 %v1100_v56, %v4214_v7  ;;  %2177 = vmatpush.msrb.mxu2 %v971_v15 }
 0x1ed   :  { %v1213_v16 = vpop.f32.mrf.mxu1  ;;  %v1437_v51 = vadd.f32 %v1436_v21, %v1324_v58  ;;  %v843_v21 = vld [vmem:[#allocation2 + $0x1f0] sm:$0xff]  ;;  %5402 = vst [vmem:[#allocation12_spill] sm:$0xff] %v4497_v49  ;;  %v4499_v4 = vmax.f32 %v645_v63, 0.0 }
 0x1ee   :  { %1147 = vmatmul.f32.gmra.mxu0 %v4472_v30  ;;  %v1214_v54 = vadd.f32 %v1213_v16, %v1101_v5  ;;  %v1035_v58 = vld [vmem:[#allocation2 + $0x7f0] sm:$0xff] }
 0x1ef   :  { %v2899_v2 = vmax.f32 %v1437_v51, 0.0  ;;  %1373 = vmatmul.f32.gmra.mxu2 %v4476_v37  ;;  %1951 = vmatpush.msrb.mxu0 %v843_v21  ;;  %5403 = vst [vmem:[#allocation14_spill] sm:$0xff] %v4499_v4  ;;  %v5406_v63 = vld [vmem:[#allocation18_spill] sm:$0xff] }
 0x1f0   :  { %1260 = vmatmul.f32.gmra.mxu1 %v4474_v23  ;;  %1486 = vmatmul.f32.gmra.mxu3 %v4478_v60  ;;  %v4495_v23 = vmax.f32 %v419_v36, 0.0  ;;  %v309_v36 = vadd.f32 %v5404_v6, %v3743_v28  ;;  %v648_v15 = vadd.f32 %v5406_v63, %v3749_v9 }
 0x1f1   :  { %3027 = vst [vmem:[#allocation5 + $0x160] sm:$0xff] %v2899_v2  ;;  %2290 = vmatpush.msrb.mxu3 %v1035_v58  ;;  %v907_v58 = vld [vmem:[#allocation2 + $0x3f0] sm:$0xff] }
 0x1f2   :  { %v1326_v56 = vpop.f32.mrf.mxu2  ;;  %5401 = vst [vmem:[#allocation11_spill] sm:$0xff] %v4495_v23  ;;  %2064 = vmatpush.msrb.mxu1 %v907_v58 }
 0x1f3   :  { %v1439_v51 = vpop.f32.mrf.mxu3  ;;  %v1327_v60 = vadd.f32 %v1326_v56, %v1214_v54  ;;  %v1103_v14 = vpop.f32.mrf.mxu0  ;;  %v422_v54 = vadd.f32 %v5405_v3, %v3745_v57 }
 0x1f4   :  { %v1104_v5 = vadd.f32 %v1103_v14, %v4214_v7 }
 0x1f5   :  { %v1216_v37 = vpop.f32.mrf.mxu1  ;;  %v1440_v16 = vadd.f32 %v1439_v51, %v1327_v60  ;;  %v535_v60 = vadd.f32 %v4183_v48, %v3747_v62  ;;  %v4516_v6 = vmax.f32 %v422_v54, 0.0 }
 0x1f6   :  { %1150 = vmatmul.f32.gmra.mxu0 %v4493_v59  ;;  %v1217_v21 = vadd.f32 %v1216_v37, %v1104_v5  ;;  %v5410_v5 = vld [vmem:[#allocation19_spill] sm:$0xff] }
 0x1f7   :  { %v2903_v2 = vmax.f32 %v1440_v16, 0.0  ;;  %1376 = vmatmul.f32.gmra.mxu2 %v4497_v49  ;;  %v4514_v49 = vmax.f32 %v309_v36, 0.0  ;;  %v4518_v3 = vmax.f32 %v535_v60, 0.0  ;;  %v5411_v36 = vld [vmem:[#allocation83_spill] sm:$0xff]  ;;  %v5412_v60 = vld [vmem:[#allocation20_spill] sm:$0xff] }
 0x1f8   :  { %1263 = vmatmul.f32.gmra.mxu1 %v4495_v23  ;;  %1489 = vmatmul.f32.gmra.mxu3 %v4499_v4  ;;  %v4520_v23 = vmax.f32 %v648_v15, 0.0  ;;  %v425_v54 = vadd.f32 %v5411_v36, %v3745_v57  ;;  %v538_v15 = vadd.f32 %v5412_v60, %v3747_v62 }
 0x1f9   :  { %3031 = vst [vmem:[#allocation5 + $0x180] sm:$0xff] %v2903_v2  ;;  %v312_v2 = vadd.f32 %v5410_v5, %v3743_v28 }
 0x1fa   :  { %v1329_v56 = vpop.f32.mrf.mxu2  ;;  %5407 = vst [vmem:[#allocation15_spill] sm:$0xff] %v4514_v49  ;;  %v4537_v36 = vmax.f32 %v425_v54, 0.0  ;;  %v4539_v62 = vmax.f32 %v538_v15, 0.0  ;;  %v903_v54 = vld [vmem:[#allocation2 + $0x3d0] sm:$0xff] }
 0x1fb   :  { %v1442_v51 = vpop.f32.mrf.mxu3  ;;  %v1330_v14 = vadd.f32 %v1329_v56, %v1217_v21  ;;  %v1106_v16 = vpop.f32.mrf.mxu0  ;;  %5408 = vst [vmem:[#allocation16_spill] sm:$0xff] %v4518_v3  ;;  %v5413_v21 = vld [vmem:[#allocation88_spill] sm:$0xff]  ;;  %v4535_v57 = vmax.f32 %v312_v2, 0.0  ;;  %2065 = vmatpush.msrb.mxu1 %v903_v54 }
 0x1fc   :  { %5409 = vst [vmem:[#allocation18_spill] sm:$0xff] %v4520_v23  ;;  %v1107_v63 = vadd.f32 %v1106_v16, %v4214_v7  ;;  %v651_v58 = vadd.f32 %v5413_v21, %v3749_v9  ;;  %v1031_v16 = vld [vmem:[#allocation2 + $0x7d0] sm:$0xff] }
 0x1fd   :  { %v1219_v4 = vpop.f32.mrf.mxu1  ;;  %v1443_v48 = vadd.f32 %v1442_v51, %v1330_v14  ;;  %v967_v51 = vld [vmem:[#allocation2 + $0x5d0] sm:$0xff]  ;;  %2291 = vmatpush.msrb.mxu3 %v1031_v16  ;;  %5414 = vst [vmem:[#allocation19_spill] sm:$0xff] %v4535_v57 }
 0x1fe   :  { %1153 = vmatmul.f32.gmra.mxu0 %v4514_v49  ;;  %v1220_v56 = vadd.f32 %v1219_v4, %v1107_v63  ;;  %v839_v14 = vld [vmem:[#allocation2 + $0x1d0] sm:$0xff]  ;;  %2178 = vmatpush.msrb.mxu2 %v967_v51  ;;  %5415 = vst [vmem:[#allocation83_spill] sm:$0xff] %v4537_v36  ;;  %v4541_v9 = vmax.f32 %v651_v58, 0.0  ;;  %v5418_v51 = vld [vmem:[#allocation21_spill] sm:$0xff] }
 0x1ff   :  { %v2907_v37 = vmax.f32 %v1443_v48, 0.0  ;;  %1379 = vmatmul.f32.gmra.mxu2 %v4518_v3  ;;  %1952 = vmatpush.msrb.mxu0 %v839_v14  ;;  %5416 = vst [vmem:[#allocation20_spill] sm:$0xff] %v4539_v62  ;;  %v5419_v14 = vld [vmem:[#allocation22_spill] sm:$0xff] }
 0x200   :  { %1266 = vmatmul.f32.gmra.mxu1 %v4516_v6  ;;  %1492 = vmatmul.f32.gmra.mxu3 %v4520_v23  ;;  %5417 = vst [vmem:[#allocation88_spill] sm:$0xff] %v4541_v9 }
 0x201   :  { %3035 = vst [vmem:[#allocation5 + $0x1a0] sm:$0xff] %v2907_v37 }
 0x202   :  { %v1332_v48 = vpop.f32.mrf.mxu2 }
 0x203   :  { %v1445_v3 = vpop.f32.mrf.mxu3  ;;  %v1333_v23 = vadd.f32 %v1332_v48, %v1220_v56  ;;  %v1109_v28 = vpop.f32.mrf.mxu0  ;;  %v5420_v48 = vld [vmem:[#allocation23_spill] sm:$0xff] }
 0x204   :  { %v1110_v63 = vadd.f32 %v1109_v28, %v4214_v7  ;;  %v5421_v28 = vld [vmem:[#allocation24_spill] sm:$0xff] }
 0x205   :  { %v1222_v5 = vpop.f32.mrf.mxu1  ;;  %v1446_v4 = vadd.f32 %v1445_v3, %v1333_v23 }
 0x206   :  { %1156 = vmatmul.f32.gmra.mxu0 %v4535_v57  ;;  %v1223_v2 = vadd.f32 %v1222_v5, %v1110_v63  ;;  %v835_v63 = vld [vmem:[#allocation2 + $0x1b0] sm:$0xff] }
 0x207   :  { %v2911_v37 = vmax.f32 %v1446_v4, 0.0  ;;  %1382 = vmatmul.f32.gmra.mxu2 %v4539_v62  ;;  %v963_v4 = vld [vmem:[#allocation2 + $0x5b0] sm:$0xff]  ;;  %1953 = vmatpush.msrb.mxu0 %v835_v63 }
 0x208   :  { %1269 = vmatmul.f32.gmra.mxu1 %v4537_v36  ;;  %1495 = vmatmul.f32.gmra.mxu3 %v4541_v9 }
 0x209   :  { %3039 = vst [vmem:[#allocation5 + $0x1c0] sm:$0xff] %v2911_v37  ;;  %v1027_v37 = vld [vmem:[#allocation2 + $0x7b0] sm:$0xff]  ;;  %2179 = vmatpush.msrb.mxu2 %v963_v4 }
 0x20a   :  { %v1335_v60 = vpop.f32.mrf.mxu2  ;;  %2292 = vmatpush.msrb.mxu3 %v1027_v37  ;;  %v899_v4 = vld [vmem:[#allocation2 + $0x3b0] sm:$0xff] }
 0x20b   :  { %v1448_v15 = vpop.f32.mrf.mxu3  ;;  %v1336_v21 = vadd.f32 %v1335_v60, %v1223_v2  ;;  %v1112_v58 = vpop.f32.mrf.mxu0  ;;  %2066 = vmatpush.msrb.mxu1 %v899_v4  ;;  %v1023_v4 = vld [vmem:[#allocation2 + $0x790] sm:$0xff] }
 0x20c   :  { %v1113_v56 = vadd.f32 %v1112_v58, %v4214_v7  ;;  %2293 = vmatpush.msrb.mxu3 %v1023_v4 }
 0x20d   :  { %v1225_v23 = vpop.f32.mrf.mxu1  ;;  %v1449_v3 = vadd.f32 %v1448_v15, %v1336_v21 }
 0x20e   :  { %1515 = vmatmul.f32.vlgmr.msra.gmra.mxu0 %v5418_v51  ;;  %v1226_v5 = vadd.f32 %v1225_v23, %v1113_v56  ;;  %v5424_v23 = vld [vmem:[#allocation27_spill] sm:$0xff]  ;;  %v5425_v56 = vld [vmem:[#allocation28_spill] sm:$0xff] }
 0x20f   :  { %v2915_v16 = vmax.f32 %v1449_v3, 0.0  ;;  %1741 = vmatmul.f32.vlgmr.msra.gmra.mxu2 %v5420_v48  ;;  %v5423_v48 = vld [vmem:[#allocation26_spill] sm:$0xff] }
 0x210   :  { %1628 = vmatmul.f32.vlgmr.msra.gmra.mxu1 %v5419_v14  ;;  %1854 = vmatmul.f32.vlgmr.msra.gmra.mxu3 %v5421_v28  ;;  %v5422_v14 = vld [vmem:[#allocation25_spill] sm:$0xff] }
 0x211   :  { %3043 = vst [vmem:[#allocation5 + $0x1e0] sm:$0xff] %v2915_v16 }
 0x212   :  { %v1338_v2 = vpop.f32.mrf.mxu2 }
 0x213   :  { %v1451_v54 = vpop.f32.mrf.mxu3  ;;  %v1339_v60 = vadd.f32 %v1338_v2, %v1226_v5  ;;  %v1115_v15 = vpop.f32.mrf.mxu0 }
 0x214   :  { %v1116_v3 = vadd.f32 %v1115_v15, %v4214_v7 }
 0x215   :  { %v1228_v21 = vpop.f32.mrf.mxu1  ;;  %v1452_v58 = vadd.f32 %v1451_v54, %v1339_v60 }
 0x216   :  { %1518 = vmatmul.f32.gmra.mxu0 %v5422_v14  ;;  %v1229_v28 = vadd.f32 %v1228_v21, %v1116_v3  ;;  %v5426_v14 = vld [vmem:[#allocation29_spill] sm:$0xff]  ;;  %v959_v3 = vld [vmem:[#allocation2 + $0x590] sm:$0xff] }
 0x217   :  { %v2919_v16 = vmax.f32 %v1452_v58, 0.0  ;;  %1744 = vmatmul.f32.gmra.mxu2 %v5424_v23  ;;  %v5428_v23 = vld [vmem:[#allocation31_spill] sm:$0xff] }
 0x218   :  { %1631 = vmatmul.f32.gmra.mxu1 %v5423_v48  ;;  %1857 = vmatmul.f32.gmra.mxu3 %v5425_v56  ;;  %v5427_v48 = vld [vmem:[#allocation30_spill] sm:$0xff]  ;;  %v5429_v56 = vld [vmem:[#allocation32_spill] sm:$0xff] }
 0x219   :  { %3047 = vst [vmem:[#allocation5 + $0x200] sm:$0xff] %v2919_v16  ;;  %v831_v16 = vld [vmem:[#allocation2 + $0x190] sm:$0xff]  ;;  %2180 = vmatpush.msrb.mxu2 %v959_v3 }
 0x21a   :  { %v1341_v63 = vpop.f32.mrf.mxu2  ;;  %1954 = vmatpush.msrb.mxu0 %v831_v16  ;;  %v895_v3 = vld [vmem:[#allocation2 + $0x390] sm:$0xff] }
 0x21b   :  { %v1454_v5 = vpop.f32.mrf.mxu3  ;;  %v1342_v2 = vadd.f32 %v1341_v63, %v1229_v28  ;;  %v1118_v37 = vpop.f32.mrf.mxu0  ;;  %2067 = vmatpush.msrb.mxu1 %v895_v3  ;;  %v1019_v3 = vld [vmem:[#allocation2 + $0x770] sm:$0xff] }
 0x21c   :  { %v1119_v15 = vadd.f32 %v1118_v37, %v4214_v7  ;;  %2294 = vmatpush.msrb.mxu3 %v1019_v3 }
 0x21d   :  { %v1231_v54 = vpop.f32.mrf.mxu1  ;;  %v1455_v60 = vadd.f32 %v1454_v5, %v1342_v2 }
 0x21e   :  { %1521 = vmatmul.f32.gmra.mxu0 %v5426_v14  ;;  %v1232_v21 = vadd.f32 %v1231_v54, %v1119_v15  ;;  %v5432_v54 = vld [vmem:[#allocation35_spill] sm:$0xff]  ;;  %v5433_v15 = vld [vmem:[#allocation36_spill] sm:$0xff] }
 0x21f   :  { %v2923_v58 = vmax.f32 %v1455_v60, 0.0  ;;  %1747 = vmatmul.f32.gmra.mxu2 %v5428_v23  ;;  %v5431_v23 = vld [vmem:[#allocation34_spill] sm:$0xff] }
 0x220   :  { %1634 = vmatmul.f32.gmra.mxu1 %v5427_v48  ;;  %1860 = vmatmul.f32.gmra.mxu3 %v5429_v56  ;;  %v5430_v48 = vld [vmem:[#allocation33_spill] sm:$0xff] }
 0x221   :  { %3051 = vst [vmem:[#allocation5 + $0x220] sm:$0xff] %v2923_v58 }
 0x222   :  { %v1344_v28 = vpop.f32.mrf.mxu2 }
 0x223   :  { %v1457_v63 = vpop.f32.mrf.mxu3  ;;  %v1345_v5 = vadd.f32 %v1344_v28, %v1232_v21  ;;  %v1121_v2 = vpop.f32.mrf.mxu0 }
 0x224   :  { %v1122_v60 = vadd.f32 %v1121_v2, %v4214_v7 }
 0x225   :  { %v1234_v37 = vpop.f32.mrf.mxu1  ;;  %v1458_v14 = vadd.f32 %v1457_v63, %v1345_v5 }
 0x226   :  { %1524 = vmatmul.f32.gmra.mxu0 %v5430_v48  ;;  %v1235_v56 = vadd.f32 %v1234_v37, %v1122_v60  ;;  %v5434_v48 = vld [vmem:[#allocation37_spill] sm:$0xff]  ;;  %v955_v60 = vld [vmem:[#allocation2 + $0x570] sm:$0xff] }
 0x227   :  { %v2927_v58 = vmax.f32 %v1458_v14, 0.0  ;;  %1750 = vmatmul.f32.gmra.mxu2 %v5432_v54  ;;  %v5436_v54 = vld [vmem:[#allocation39_spill] sm:$0xff] }
 0x228   :  { %1637 = vmatmul.f32.gmra.mxu1 %v5431_v23  ;;  %1863 = vmatmul.f32.gmra.mxu3 %v5433_v15  ;;  %v5435_v23 = vld [vmem:[#allocation38_spill] sm:$0xff]  ;;  %v5437_v15 = vld [vmem:[#allocation40_spill] sm:$0xff] }
 0x229   :  { %3055 = vst [vmem:[#allocation5 + $0x240] sm:$0xff] %v2927_v58  ;;  %v827_v58 = vld [vmem:[#allocation2 + $0x170] sm:$0xff]  ;;  %2181 = vmatpush.msrb.mxu2 %v955_v60 }
 0x22a   :  { %v1347_v16 = vpop.f32.mrf.mxu2  ;;  %1955 = vmatpush.msrb.mxu0 %v827_v58  ;;  %v891_v60 = vld [vmem:[#allocation2 + $0x370] sm:$0xff] }
 0x22b   :  { %v1460_v21 = vpop.f32.mrf.mxu3  ;;  %v1348_v28 = vadd.f32 %v1347_v16, %v1235_v56  ;;  %v1124_v4 = vpop.f32.mrf.mxu0  ;;  %2068 = vmatpush.msrb.mxu1 %v891_v60  ;;  %v1015_v60 = vld [vmem:[#allocation2 + $0x750] sm:$0xff] }
 0x22c   :  { %v1125_v2 = vadd.f32 %v1124_v4, %v4214_v7  ;;  %2295 = vmatpush.msrb.mxu3 %v1015_v60 }
 0x22d   :  { %v1237_v63 = vpop.f32.mrf.mxu1  ;;  %v1461_v5 = vadd.f32 %v1460_v21, %v1348_v28 }
 0x22e   :  { %1527 = vmatmul.f32.gmra.mxu0 %v5434_v48  ;;  %v1238_v37 = vadd.f32 %v1237_v63, %v1125_v2  ;;  %v5440_v63 = vld [vmem:[#allocation43_spill] sm:$0xff]  ;;  %v5441_v2 = vld [vmem:[#allocation44_spill] sm:$0xff] }
 0x22f   :  { %v2931_v14 = vmax.f32 %v1461_v5, 0.0  ;;  %1753 = vmatmul.f32.gmra.mxu2 %v5436_v54  ;;  %v5439_v54 = vld [vmem:[#allocation42_spill] sm:$0xff] }
 0x230   :  { %1640 = vmatmul.f32.gmra.mxu1 %v5435_v23  ;;  %1866 = vmatmul.f32.gmra.mxu3 %v5437_v15  ;;  %v5438_v23 = vld [vmem:[#allocation41_spill] sm:$0xff] }
 0x231   :  { %3059 = vst [vmem:[#allocation5 + $0x260] sm:$0xff] %v2931_v14 }
 0x232   :  { %v1350_v56 = vpop.f32.mrf.mxu2 }
 0x233   :  { %v1463_v16 = vpop.f32.mrf.mxu3  ;;  %v1351_v21 = vadd.f32 %v1350_v56, %v1238_v37  ;;  %v1127_v28 = vpop.f32.mrf.mxu0 }
 0x234   :  { %v1128_v5 = vadd.f32 %v1127_v28, %v4214_v7 }
 0x235   :  { %v1240_v4 = vpop.f32.mrf.mxu1  ;;  %v1464_v48 = vadd.f32 %v1463_v16, %v1351_v21 }
 0x236   :  { %1530 = vmatmul.f32.gmra.mxu0 %v5438_v23  ;;  %v1241_v15 = vadd.f32 %v1240_v4, %v1128_v5  ;;  %v5442_v23 = vld [vmem:[#allocation45_spill] sm:$0xff]  ;;  %v951_v5 = vld [vmem:[#allocation2 + $0x550] sm:$0xff] }
 0x237   :  { %v2935_v14 = vmax.f32 %v1464_v48, 0.0  ;;  %1756 = vmatmul.f32.gmra.mxu2 %v5440_v63  ;;  %v5444_v63 = vld [vmem:[#allocation47_spill] sm:$0xff] }
 0x238   :  { %1643 = vmatmul.f32.gmra.mxu1 %v5439_v54  ;;  %1869 = vmatmul.f32.gmra.mxu3 %v5441_v2  ;;  %v5443_v54 = vld [vmem:[#allocation46_spill] sm:$0xff]  ;;  %v5445_v2 = vld [vmem:[#allocation48_spill] sm:$0xff] }
 0x239   :  { %3063 = vst [vmem:[#allocation5 + $0x280] sm:$0xff] %v2935_v14  ;;  %v823_v14 = vld [vmem:[#allocation2 + $0x150] sm:$0xff]  ;;  %2182 = vmatpush.msrb.mxu2 %v951_v5 }
 0x23a   :  { %v1353_v58 = vpop.f32.mrf.mxu2  ;;  %1956 = vmatpush.msrb.mxu0 %v823_v14  ;;  %v887_v5 = vld [vmem:[#allocation2 + $0x350] sm:$0xff] }
 0x23b   :  { %v1466_v37 = vpop.f32.mrf.mxu3  ;;  %v1354_v56 = vadd.f32 %v1353_v58, %v1241_v15  ;;  %v1130_v3 = vpop.f32.mrf.mxu0  ;;  %2069 = vmatpush.msrb.mxu1 %v887_v5  ;;  %v1011_v5 = vld [vmem:[#allocation2 + $0x730] sm:$0xff] }
 0x23c   :  { %v1131_v28 = vadd.f32 %v1130_v3, %v4214_v7  ;;  %2296 = vmatpush.msrb.mxu3 %v1011_v5 }
 0x23d   :  { %v1243_v16 = vpop.f32.mrf.mxu1  ;;  %v1467_v21 = vadd.f32 %v1466_v37, %v1354_v56 }
 0x23e   :  { %1533 = vmatmul.f32.gmra.mxu0 %v5442_v23  ;;  %v1244_v4 = vadd.f32 %v1243_v16, %v1131_v28  ;;  %v5448_v16 = vld [vmem:[#allocation51_spill] sm:$0xff]  ;;  %v5449_v28 = vld [vmem:[#allocation52_spill] sm:$0xff] }
 0x23f   :  { %v2939_v48 = vmax.f32 %v1467_v21, 0.0  ;;  %1759 = vmatmul.f32.gmra.mxu2 %v5444_v63  ;;  %v5447_v63 = vld [vmem:[#allocation50_spill] sm:$0xff] }
 0x240   :  { %1646 = vmatmul.f32.gmra.mxu1 %v5443_v54  ;;  %1872 = vmatmul.f32.gmra.mxu3 %v5445_v2  ;;  %v5446_v54 = vld [vmem:[#allocation49_spill] sm:$0xff] }
 0x241   :  { %3067 = vst [vmem:[#allocation5 + $0x2a0] sm:$0xff] %v2939_v48 }
 0x242   :  { %v1356_v15 = vpop.f32.mrf.mxu2 }
 0x243   :  { %v1469_v58 = vpop.f32.mrf.mxu3  ;;  %v1357_v37 = vadd.f32 %v1356_v15, %v1244_v4  ;;  %v1133_v56 = vpop.f32.mrf.mxu0 }
 0x244   :  { %v1134_v21 = vadd.f32 %v1133_v56, %v4214_v7 }
 0x245   :  { %v1246_v3 = vpop.f32.mrf.mxu1  ;;  %v1470_v23 = vadd.f32 %v1469_v58, %v1357_v37 }
 0x246   :  { %1536 = vmatmul.f32.gmra.mxu0 %v5446_v54  ;;  %v1247_v2 = vadd.f32 %v1246_v3, %v1134_v21  ;;  %v5450_v54 = vld [vmem:[#allocation53_spill] sm:$0xff]  ;;  %v947_v21 = vld [vmem:[#allocation2 + $0x530] sm:$0xff] }
 0x247   :  { %v2943_v48 = vmax.f32 %v1470_v23, 0.0  ;;  %1762 = vmatmul.f32.gmra.mxu2 %v5448_v16  ;;  %v5452_v16 = vld [vmem:[#allocation55_spill] sm:$0xff] }
 0x248   :  { %1649 = vmatmul.f32.gmra.mxu1 %v5447_v63  ;;  %1875 = vmatmul.f32.gmra.mxu3 %v5449_v28  ;;  %v5451_v63 = vld [vmem:[#allocation54_spill] sm:$0xff]  ;;  %v5453_v28 = vld [vmem:[#allocation56_spill] sm:$0xff] }
 0x249   :  { %3071 = vst [vmem:[#allocation5 + $0x2c0] sm:$0xff] %v2943_v48  ;;  %v819_v48 = vld [vmem:[#allocation2 + $0x130] sm:$0xff]  ;;  %2183 = vmatpush.msrb.mxu2 %v947_v21 }
 0x24a   :  { %v1359_v14 = vpop.f32.mrf.mxu2  ;;  %1957 = vmatpush.msrb.mxu0 %v819_v48  ;;  %v883_v21 = vld [vmem:[#allocation2 + $0x330] sm:$0xff] }
 0x24b   :  { %v1472_v4 = vpop.f32.mrf.mxu3  ;;  %v1360_v15 = vadd.f32 %v1359_v14, %v1247_v2  ;;  %v1136_v60 = vpop.f32.mrf.mxu0  ;;  %2070 = vmatpush.msrb.mxu1 %v883_v21  ;;  %v1007_v21 = vld [vmem:[#allocation2 + $0x710] sm:$0xff] }
 0x24c   :  { %v1137_v56 = vadd.f32 %v1136_v60, %v4214_v7  ;;  %2297 = vmatpush.msrb.mxu3 %v1007_v21 }
 0x24d   :  { %v1249_v58 = vpop.f32.mrf.mxu1  ;;  %v1473_v37 = vadd.f32 %v1472_v4, %v1360_v15 }
 0x24e   :  { %1539 = vmatmul.f32.gmra.mxu0 %v5450_v54  ;;  %v1250_v3 = vadd.f32 %v1249_v58, %v1137_v56  ;;  %v5456_v58 = vld [vmem:[#allocation59_spill] sm:$0xff]  ;;  %v5457_v56 = vld [vmem:[#allocation60_spill] sm:$0xff] }
 0x24f   :  { %v2947_v23 = vmax.f32 %v1473_v37, 0.0  ;;  %1765 = vmatmul.f32.gmra.mxu2 %v5452_v16  ;;  %v5455_v16 = vld [vmem:[#allocation58_spill] sm:$0xff] }
 0x250   :  { %1652 = vmatmul.f32.gmra.mxu1 %v5451_v63  ;;  %1878 = vmatmul.f32.gmra.mxu3 %v5453_v28  ;;  %v5454_v63 = vld [vmem:[#allocation57_spill] sm:$0xff] }
 0x251   :  { %3075 = vst [vmem:[#allocation5 + $0x2e0] sm:$0xff] %v2947_v23 }
 0x252   :  { %v1362_v2 = vpop.f32.mrf.mxu2 }
 0x253   :  { %v1475_v14 = vpop.f32.mrf.mxu3  ;;  %v1363_v4 = vadd.f32 %v1362_v2, %v1250_v3  ;;  %v1139_v15 = vpop.f32.mrf.mxu0 }
 0x254   :  { %v1140_v37 = vadd.f32 %v1139_v15, %v4214_v7 }
 0x255   :  { %v1252_v60 = vpop.f32.mrf.mxu1  ;;  %v1476_v54 = vadd.f32 %v1475_v14, %v1363_v4 }
 0x256   :  { %1542 = vmatmul.f32.gmra.mxu0 %v5454_v63  ;;  %v1253_v28 = vadd.f32 %v1252_v60, %v1140_v37  ;;  %v5458_v63 = vld [vmem:[#allocation61_spill] sm:$0xff]  ;;  %v943_v37 = vld [vmem:[#allocation2 + $0x510] sm:$0xff] }
 0x257   :  { %v2951_v23 = vmax.f32 %v1476_v54, 0.0  ;;  %1768 = vmatmul.f32.gmra.mxu2 %v5456_v58  ;;  %v5460_v58 = vld [vmem:[#allocation63_spill] sm:$0xff] }
 0x258   :  { %1655 = vmatmul.f32.gmra.mxu1 %v5455_v16  ;;  %1881 = vmatmul.f32.gmra.mxu3 %v5457_v56  ;;  %v5459_v16 = vld [vmem:[#allocation62_spill] sm:$0xff]  ;;  %v5461_v56 = vld [vmem:[#allocation64_spill] sm:$0xff] }
 0x259   :  { %3079 = vst [vmem:[#allocation5 + $0x300] sm:$0xff] %v2951_v23  ;;  %v815_v23 = vld [vmem:[#allocation2 + $0x110] sm:$0xff]  ;;  %2184 = vmatpush.msrb.mxu2 %v943_v37 }
 0x25a   :  { %v1365_v48 = vpop.f32.mrf.mxu2  ;;  %1958 = vmatpush.msrb.mxu0 %v815_v23  ;;  %v879_v37 = vld [vmem:[#allocation2 + $0x310] sm:$0xff] }
 0x25b   :  { %v1478_v3 = vpop.f32.mrf.mxu3  ;;  %v1366_v2 = vadd.f32 %v1365_v48, %v1253_v28  ;;  %v1142_v5 = vpop.f32.mrf.mxu0  ;;  %2071 = vmatpush.msrb.mxu1 %v879_v37  ;;  %v1003_v37 = vld [vmem:[#allocation2 + $0x6f0] sm:$0xff] }
 0x25c   :  { %v1143_v15 = vadd.f32 %v1142_v5, %v4214_v7  ;;  %2298 = vmatpush.msrb.mxu3 %v1003_v37 }
 0x25d   :  { %v1255_v14 = vpop.f32.mrf.mxu1  ;;  %v1479_v4 = vadd.f32 %v1478_v3, %v1366_v2 }
 0x25e   :  { %1545 = vmatmul.f32.gmra.mxu0 %v5458_v63  ;;  %v1256_v60 = vadd.f32 %v1255_v14, %v1143_v15  ;;  %v5464_v14 = vld [vmem:[#allocation69_spill] sm:$0xff]  ;;  %v5465_v15 = vld [vmem:[#allocation70_spill] sm:$0xff] }
 0x25f   :  { %v2955_v54 = vmax.f32 %v1479_v4, 0.0  ;;  %1771 = vmatmul.f32.gmra.mxu2 %v5460_v58  ;;  %v5463_v58 = vld [vmem:[#allocation68_spill] sm:$0xff] }
 0x260   :  { %1658 = vmatmul.f32.gmra.mxu1 %v5459_v16  ;;  %1884 = vmatmul.f32.gmra.mxu3 %v5461_v56  ;;  %v5462_v16 = vld [vmem:[#allocation67_spill] sm:$0xff] }
 0x261   :  { %3083 = vst [vmem:[#allocation5 + $0x320] sm:$0xff] %v2955_v54 }
 0x262   :  { %v1368_v28 = vpop.f32.mrf.mxu2 }
 0x263   :  { %v1481_v48 = vpop.f32.mrf.mxu3  ;;  %v1369_v3 = vadd.f32 %v1368_v28, %v1256_v60  ;;  %v1145_v2 = vpop.f32.mrf.mxu0 }
 0x264   :  { %v1146_v4 = vadd.f32 %v1145_v2, %v4214_v7 }
 0x265   :  { %v1258_v5 = vpop.f32.mrf.mxu1  ;;  %v1482_v63 = vadd.f32 %v1481_v48, %v1369_v3 }
 0x266   :  { %1548 = vmatmul.f32.gmra.mxu0 %v5462_v16  ;;  %v1259_v56 = vadd.f32 %v1258_v5, %v1146_v4  ;;  %v5466_v16 = vld [vmem:[#allocation73_spill] sm:$0xff]  ;;  %v939_v4 = vld [vmem:[#allocation2 + $0x4f0] sm:$0xff] }
 0x267   :  { %v2959_v54 = vmax.f32 %v1482_v63, 0.0  ;;  %1774 = vmatmul.f32.gmra.mxu2 %v5464_v14  ;;  %v5468_v14 = vld [vmem:[#allocation75_spill] sm:$0xff] }
 0x268   :  { %1661 = vmatmul.f32.gmra.mxu1 %v5463_v58  ;;  %1887 = vmatmul.f32.gmra.mxu3 %v5465_v15  ;;  %v5467_v58 = vld [vmem:[#allocation74_spill] sm:$0xff]  ;;  %v5469_v15 = vld [vmem:[#allocation76_spill] sm:$0xff] }
 0x269   :  { %3087 = vst [vmem:[#allocation5 + $0x340] sm:$0xff] %v2959_v54  ;;  %v811_v54 = vld [vmem:[#allocation2 + $0xf0] sm:$0xff]  ;;  %2185 = vmatpush.msrb.mxu2 %v939_v4 }
 0x26a   :  { %v1371_v23 = vpop.f32.mrf.mxu2  ;;  %1959 = vmatpush.msrb.mxu0 %v811_v54  ;;  %v875_v4 = vld [vmem:[#allocation2 + $0x2f0] sm:$0xff] }
 0x26b   :  { %v1484_v60 = vpop.f32.mrf.mxu3  ;;  %v1372_v28 = vadd.f32 %v1371_v23, %v1259_v56  ;;  %v1148_v21 = vpop.f32.mrf.mxu0  ;;  %2072 = vmatpush.msrb.mxu1 %v875_v4  ;;  %v999_v4 = vld [vmem:[#allocation2 + $0x6d0] sm:$0xff] }
 0x26c   :  { %v1149_v2 = vadd.f32 %v1148_v21, %v4214_v7  ;;  %2299 = vmatpush.msrb.mxu3 %v999_v4 }
 0x26d   :  { %v1261_v48 = vpop.f32.mrf.mxu1  ;;  %v1485_v3 = vadd.f32 %v1484_v60, %v1372_v28 }
 0x26e   :  { %1551 = vmatmul.f32.gmra.mxu0 %v5466_v16  ;;  %v1262_v5 = vadd.f32 %v1261_v48, %v1149_v2  ;;  %v5472_v48 = vld [vmem:[#allocation78_spill] sm:$0xff]  ;;  %v5473_v2 = vld [vmem:[#allocation79_spill] sm:$0xff] }
 0x26f   :  { %v2963_v63 = vmax.f32 %v1485_v3, 0.0  ;;  %1777 = vmatmul.f32.gmra.mxu2 %v5468_v14  ;;  %v5471_v14 = vld [vmem:[#allocation77_spill] sm:$0xff] }
 0x270   :  { %1664 = vmatmul.f32.gmra.mxu1 %v5467_v58  ;;  %1890 = vmatmul.f32.gmra.mxu3 %v5469_v15  ;;  %v5470_v58 = vld [vmem:[#allocation13_spill] sm:$0xff] }
 0x271   :  { %3091 = vst [vmem:[#allocation5 + $0x360] sm:$0xff] %v2963_v63 }
 0x272   :  { %v1374_v56 = vpop.f32.mrf.mxu2 }
 0x273   :  { %v1487_v23 = vpop.f32.mrf.mxu3  ;;  %v1375_v60 = vadd.f32 %v1374_v56, %v1262_v5  ;;  %v1151_v28 = vpop.f32.mrf.mxu0 }
 0x274   :  { %v1152_v3 = vadd.f32 %v1151_v28, %v4214_v7 }
 0x275   :  { %v1264_v21 = vpop.f32.mrf.mxu1  ;;  %v1488_v16 = vadd.f32 %v1487_v23, %v1375_v60 }
 0x276   :  { %1554 = vmatmul.f32.gmra.mxu0 %v5470_v58  ;;  %v1265_v15 = vadd.f32 %v1264_v21, %v1152_v3  ;;  %v5474_v58 = vld [vmem:[#allocation17_spill] sm:$0xff]  ;;  %v935_v3 = vld [vmem:[#allocation2 + $0x4d0] sm:$0xff] }
 0x277   :  { %v2967_v63 = vmax.f32 %v1488_v16, 0.0  ;;  %1780 = vmatmul.f32.gmra.mxu2 %v5472_v48  ;;  %v5476_v48 = vld [vmem:[#allocation81_spill] sm:$0xff] }
 0x278   :  { %1667 = vmatmul.f32.gmra.mxu1 %v5471_v14  ;;  %1893 = vmatmul.f32.gmra.mxu3 %v5473_v2  ;;  %v5475_v14 = vld [vmem:[#allocation80_spill] sm:$0xff]  ;;  %v5477_v2 = vld [vmem:[#allocation82_spill] sm:$0xff] }
 0x279   :  { %3095 = vst [vmem:[#allocation5 + $0x380] sm:$0xff] %v2967_v63  ;;  %v807_v63 = vld [vmem:[#allocation2 + $0xd0] sm:$0xff]  ;;  %2186 = vmatpush.msrb.mxu2 %v935_v3 }
 0x27a   :  { %v1377_v54 = vpop.f32.mrf.mxu2  ;;  %1960 = vmatpush.msrb.mxu0 %v807_v63  ;;  %v871_v63 = vld [vmem:[#allocation2 + $0x2d0] sm:$0xff] }
 0x27b   :  { %v1490_v5 = vpop.f32.mrf.mxu3  ;;  %v1378_v56 = vadd.f32 %v1377_v54, %v1265_v15  ;;  %v1154_v37 = vpop.f32.mrf.mxu0  ;;  %2073 = vmatpush.msrb.mxu1 %v871_v63  ;;  %v995_v63 = vld [vmem:[#allocation2 + $0x6b0] sm:$0xff] }
 0x27c   :  { %v1155_v28 = vadd.f32 %v1154_v37, %v4214_v7  ;;  %2300 = vmatpush.msrb.mxu3 %v995_v63 }
 0x27d   :  { %v1267_v23 = vpop.f32.mrf.mxu1  ;;  %v1491_v60 = vadd.f32 %v1490_v5, %v1378_v56 }
 0x27e   :  { %1557 = vmatmul.f32.gmra.mxu0 %v5474_v58  ;;  %v1268_v21 = vadd.f32 %v1267_v23, %v1155_v28  ;;  %v5480_v23 = vld [vmem:[#allocation86_spill] sm:$0xff]  ;;  %v5481_v28 = vld [vmem:[#allocation87_spill] sm:$0xff] }
 0x27f   :  { %v2971_v16 = vmax.f32 %v1491_v60, 0.0  ;;  %1783 = vmatmul.f32.gmra.mxu2 %v5476_v48  ;;  %v5479_v48 = vld [vmem:[#allocation85_spill] sm:$0xff] }
 0x280   :  { %1670 = vmatmul.f32.gmra.mxu1 %v5475_v14  ;;  %1896 = vmatmul.f32.gmra.mxu3 %v5477_v2  ;;  %v5478_v14 = vld [vmem:[#allocation84_spill] sm:$0xff] }
 0x281   :  { %3099 = vst [vmem:[#allocation5 + $0x3a0] sm:$0xff] %v2971_v16 }
 0x282   :  { %v1380_v15 = vpop.f32.mrf.mxu2 }
 0x283   :  { %v1493_v54 = vpop.f32.mrf.mxu3  ;;  %v1381_v5 = vadd.f32 %v1380_v15, %v1268_v21  ;;  %v1157_v56 = vpop.f32.mrf.mxu0  ;;  %v3266_v21 = vld [vmem:[%s5070_s4] sm:$0xf] }
 0x284   :  { %v1158_v60 = vadd.f32 %v1157_v56, %v4214_v7  ;;  %v4631_v3 = vperm.slane %v3266_v21, 1 }
 0x285   :  { %v1270_v37 = vpop.f32.mrf.mxu1  ;;  %v1494_v58 = vadd.f32 %v1493_v54, %v1381_v5 }
 0x286   :  { %1560 = vmatmul.f32.gmra.mxu0 %v5478_v14  ;;  %v1271_v2 = vadd.f32 %v1270_v37, %v1158_v60  ;;  %v5484_v60 = vld [vmem:[#allocation91_spill] sm:$0xff]  ;;  %v803_v14 = vld [vmem:[#allocation2 + $0xb0] sm:$0xff] }
 0x287   :  { %v2975_v16 = vmax.f32 %v1494_v58, 0.0  ;;  %1786 = vmatmul.f32.gmra.mxu2 %v5480_v23  ;;  %v5482_v23 = vld [vmem:[#allocation89_spill] sm:$0xff]  ;;  %1961 = vmatpush.msrb.mxu0 %v803_v14 }
 0x288   :  { %1673 = vmatmul.f32.gmra.mxu1 %v5479_v48  ;;  %1899 = vmatmul.f32.gmra.mxu3 %v5481_v28  ;;  %v5485_v28 = vld [vmem:[#allocation92_spill] sm:$0xff]  ;;  %v931_v48 = vld [vmem:[#allocation2 + $0x4b0] sm:$0xff] }
 0x289   :  { %3103 = vst [vmem:[#allocation5 + $0x3c0] sm:$0xff] %v2975_v16  ;;  %v5483_v16 = vld [vmem:[#allocation90_spill] sm:$0xff]  ;;  %2187 = vmatpush.msrb.mxu2 %v931_v48 }
 0x28a   :  { %v1383_v4 = vpop.f32.mrf.mxu2  ;;  %v867_v48 = vld [vmem:[#allocation2 + $0x2b0] sm:$0xff] }
 0x28b   :  { %v1496_v7 = vpop.f32.mrf.mxu3  ;;  %v1384_v15 = vadd.f32 %v1383_v4, %v1271_v2  ;;  %v1516_v54 = vpop.f32.mrf.mxu0  ;;  %2074 = vmatpush.msrb.mxu1 %v867_v48 }
 0x28c   :  { %v1517_v56 = vadd.f32 %v1516_v54, %v4631_v3 }
 0x28d   :  { %v1629_v5 = vpop.f32.mrf.mxu1  ;;  %v1497_v58 = vadd.f32 %v1496_v7, %v1384_v15 }
 0x28e   :  { %1563 = vmatmul.f32.gmra.mxu0 %v5482_v23  ;;  %v1630_v21 = vadd.f32 %v1629_v5, %v1517_v56 }
 0x28f   :  { %v2979_v37 = vmax.f32 %v1497_v58, 0.0  ;;  %1789 = vmatmul.f32.gmra.mxu2 %v5484_v60 }
 0x290   :  { %1676 = vmatmul.f32.gmra.mxu1 %v5483_v16  ;;  %1902 = vmatmul.f32.gmra.mxu3 %v5485_v28 }
 0x291   :  { %3107 = vst [vmem:[#allocation5 + $0x3e0] sm:$0xff] %v2979_v37 }
 0x292   :  { %v1742_v2 = vpop.f32.mrf.mxu2 }
 0x293   :  { %v1855_v4 = vpop.f32.mrf.mxu3  ;;  %v1743_v7 = vadd.f32 %v1742_v2, %v1630_v21  ;;  %v1519_v15 = vpop.f32.mrf.mxu0 }
 0x294   :  { %v1520_v58 = vadd.f32 %v1519_v15, %v4631_v3 }
 0x295   :  { %v1632_v54 = vpop.f32.mrf.mxu1  ;;  %v1856_v23 = vadd.f32 %v1855_v4, %v1743_v7 }
 0x296   :  { %1566 = vmatmul.f32.gmra.mxu0 %v4241_v50  ;;  %v1633_v5 = vadd.f32 %v1632_v54, %v1520_v58  ;;  %v927_v54 = vld [vmem:[#allocation2 + $0x490] sm:$0xff] }
 0x297   :  { %v2856_v37 = vmax.f32 %v1856_v23, 0.0  ;;  %1792 = vmatmul.f32.gmra.mxu2 %v4245_v43  ;;  %v799_v58 = vld [vmem:[#allocation2 + $0x90] sm:$0xff] }
 0x298   :  { %1679 = vmatmul.f32.gmra.mxu1 %v4243_v0  ;;  %1905 = vmatmul.f32.gmra.mxu3 %v4247_v35 }
 0x299   :  { %2984 = vst [vmem:[#allocation5 + $0x8] sm:$0xff] %v2856_v37  ;;  %v991_v37 = vld [vmem:[#allocation2 + $0x690] sm:$0xff]  ;;  %2188 = vmatpush.msrb.mxu2 %v927_v54  ;;  %1962 = vmatpush.msrb.mxu0 %v799_v58 }
 0x29a   :  { %v1745_v14 = vpop.f32.mrf.mxu2  ;;  %2301 = vmatpush.msrb.mxu3 %v991_v37 }
 0x29b   :  { %v1858_v56 = vpop.f32.mrf.mxu3  ;;  %v1746_v21 = vadd.f32 %v1745_v14, %v1633_v5  ;;  %v1522_v63 = vpop.f32.mrf.mxu0 }
 0x29c   :  { %v1523_v7 = vadd.f32 %v1522_v63, %v4631_v3 }
 0x29d   :  { %v1635_v2 = vpop.f32.mrf.mxu1  ;;  %v1859_v4 = vadd.f32 %v1858_v56, %v1746_v21 }
 0x29e   :  { %1569 = vmatmul.f32.gmra.mxu0 %v4262_v20  ;;  %v1636_v15 = vadd.f32 %v1635_v2, %v1523_v7  ;;  %v863_v7 = vld [vmem:[#allocation2 + $0x290] sm:$0xff] }
 0x29f   :  { %v2860_v23 = vmax.f32 %v1859_v4, 0.0  ;;  %1795 = vmatmul.f32.gmra.mxu2 %v4266_v11  ;;  %2075 = vmatpush.msrb.mxu1 %v863_v7 }
 0x2a0   :  { %1682 = vmatmul.f32.gmra.mxu1 %v4264_v10  ;;  %1908 = vmatmul.f32.gmra.mxu3 %v4268_v22 }
 0x2a1   :  { %2988 = vst [vmem:[#allocation5 + $0x28] sm:$0xff] %v2860_v23 }
 0x2a2   :  { %v1748_v5 = vpop.f32.mrf.mxu2 }
 0x2a3   :  { %v1861_v48 = vpop.f32.mrf.mxu3  ;;  %v1749_v14 = vadd.f32 %v1748_v5, %v1636_v15  ;;  %v1525_v56 = vpop.f32.mrf.mxu0 }
 0x2a4   :  { %v1526_v4 = vadd.f32 %v1525_v56, %v4631_v3 }
 0x2a5   :  { %v1638_v21 = vpop.f32.mrf.mxu1  ;;  %v1862_v63 = vadd.f32 %v1861_v48, %v1749_v14 }
 0x2a6   :  { %1572 = vmatmul.f32.gmra.mxu0 %v4283_v13  ;;  %v1639_v2 = vadd.f32 %v1638_v21, %v1526_v4  ;;  %v795_v4 = vld [vmem:[#allocation2 + $0x70] sm:$0xff] }
 0x2a7   :  { %v2864_v23 = vmax.f32 %v1862_v63, 0.0  ;;  %1798 = vmatmul.f32.gmra.mxu2 %v4287_v29  ;;  %v923_v63 = vld [vmem:[#allocation2 + $0x470] sm:$0xff]  ;;  %1963 = vmatpush.msrb.mxu0 %v795_v4 }
 0x2a8   :  { %1685 = vmatmul.f32.gmra.mxu1 %v4285_v19  ;;  %1911 = vmatmul.f32.gmra.mxu3 %v4289_v42 }
 0x2a9   :  { %2992 = vst [vmem:[#allocation5 + $0x48] sm:$0xff] %v2864_v23  ;;  %v987_v23 = vld [vmem:[#allocation2 + $0x670] sm:$0xff]  ;;  %2189 = vmatpush.msrb.mxu2 %v923_v63 }
 0x2aa   :  { %v1751_v54 = vpop.f32.mrf.mxu2  ;;  %2302 = vmatpush.msrb.mxu3 %v987_v23 }
 0x2ab   :  { %v1864_v15 = vpop.f32.mrf.mxu3  ;;  %v1752_v58 = vadd.f32 %v1751_v54, %v1639_v2  ;;  %v1528_v37 = vpop.f32.mrf.mxu0 }
 0x2ac   :  { %v1529_v14 = vadd.f32 %v1528_v37, %v4631_v3 }
 0x2ad   :  { %v1641_v5 = vpop.f32.mrf.mxu1  ;;  %v1865_v48 = vadd.f32 %v1864_v15, %v1752_v58 }
 0x2ae   :  { %1575 = vmatmul.f32.gmra.mxu0 %v4304_v18  ;;  %v1642_v21 = vadd.f32 %v1641_v5, %v1529_v14  ;;  %v859_v14 = vld [vmem:[#allocation2 + $0x270] sm:$0xff] }
 0x2af   :  { %v2868_v56 = vmax.f32 %v1865_v48, 0.0  ;;  %1801 = vmatmul.f32.gmra.mxu2 %v4308_v25  ;;  %2076 = vmatpush.msrb.mxu1 %v859_v14 }
 0x2b0   :  { %1688 = vmatmul.f32.gmra.mxu1 %v4306_v24  ;;  %1914 = vmatmul.f32.gmra.mxu3 %v4310_v40 }
 0x2b1   :  { %2996 = vst [vmem:[#allocation5 + $0x68] sm:$0xff] %v2868_v56 }
 0x2b2   :  { %v1754_v2 = vpop.f32.mrf.mxu2 }
 0x2b3   :  { %v1867_v7 = vpop.f32.mrf.mxu3  ;;  %v1755_v54 = vadd.f32 %v1754_v2, %v1642_v21  ;;  %v1531_v15 = vpop.f32.mrf.mxu0 }
 0x2b4   :  { %v1532_v48 = vadd.f32 %v1531_v15, %v4631_v3 }
 0x2b5   :  { %v1644_v58 = vpop.f32.mrf.mxu1  ;;  %v1868_v37 = vadd.f32 %v1867_v7, %v1755_v54 }
 0x2b6   :  { %1578 = vmatmul.f32.gmra.mxu0 %v4325_v27  ;;  %v1645_v5 = vadd.f32 %v1644_v58, %v1532_v48  ;;  %v791_v48 = vld [vmem:[#allocation2 + $0x50] sm:$0xff] }
 0x2b7   :  { %v2872_v56 = vmax.f32 %v1868_v37, 0.0  ;;  %1804 = vmatmul.f32.gmra.mxu2 %v4329_v17  ;;  %v919_v37 = vld [vmem:[#allocation2 + $0x450] sm:$0xff]  ;;  %1964 = vmatpush.msrb.mxu0 %v791_v48 }
 0x2b8   :  { %1691 = vmatmul.f32.gmra.mxu1 %v4327_v33  ;;  %1917 = vmatmul.f32.gmra.mxu3 %v4331_v1 }
 0x2b9   :  { %3000 = vst [vmem:[#allocation5 + $0x88] sm:$0xff] %v2872_v56  ;;  %v983_v56 = vld [vmem:[#allocation2 + $0x650] sm:$0xff]  ;;  %2190 = vmatpush.msrb.mxu2 %v919_v37 }
 0x2ba   :  { %v1757_v63 = vpop.f32.mrf.mxu2  ;;  %2303 = vmatpush.msrb.mxu3 %v983_v56 }
 0x2bb   :  { %v1870_v21 = vpop.f32.mrf.mxu3  ;;  %v1758_v4 = vadd.f32 %v1757_v63, %v1645_v5  ;;  %v1534_v23 = vpop.f32.mrf.mxu0 }
 0x2bc   :  { %v1535_v54 = vadd.f32 %v1534_v23, %v4631_v3 }
 0x2bd   :  { %v1647_v2 = vpop.f32.mrf.mxu1  ;;  %v1871_v7 = vadd.f32 %v1870_v21, %v1758_v4 }
 0x2be   :  { %1581 = vmatmul.f32.gmra.mxu0 %v4346_v32  ;;  %v1648_v58 = vadd.f32 %v1647_v2, %v1535_v54  ;;  %v855_v54 = vld [vmem:[#allocation2 + $0x250] sm:$0xff] }
 0x2bf   :  { %v2876_v15 = vmax.f32 %v1871_v7, 0.0  ;;  %1807 = vmatmul.f32.gmra.mxu2 %v4350_v39  ;;  %2077 = vmatpush.msrb.mxu1 %v855_v54 }
 0x2c0   :  { %1694 = vmatmul.f32.gmra.mxu1 %v4348_v38  ;;  %1920 = vmatmul.f32.gmra.mxu3 %v4352_v8 }
 0x2c1   :  { %3004 = vst [vmem:[#allocation5 + $0xa8] sm:$0xff] %v2876_v15 }
 0x2c2   :  { %v1760_v5 = vpop.f32.mrf.mxu2 }
 0x2c3   :  { %v1873_v14 = vpop.f32.mrf.mxu3  ;;  %v1761_v63 = vadd.f32 %v1760_v5, %v1648_v58  ;;  %v1537_v21 = vpop.f32.mrf.mxu0 }
 0x2c4   :  { %v1538_v7 = vadd.f32 %v1537_v21, %v4631_v3 }
 0x2c5   :  { %v1650_v4 = vpop.f32.mrf.mxu1  ;;  %v1874_v23 = vadd.f32 %v1873_v14, %v1761_v63 }
 0x2c6   :  { %1584 = vmatmul.f32.gmra.mxu0 %v4367_v41  ;;  %v1651_v2 = vadd.f32 %v1650_v4, %v1538_v7  ;;  %v787_v7 = vld [vmem:[#allocation2 + $0x30] sm:$0xff] }
 0x2c7   :  { %v2880_v15 = vmax.f32 %v1874_v23, 0.0  ;;  %1810 = vmatmul.f32.gmra.mxu2 %v4371_v31  ;;  %v915_v23 = vld [vmem:[#allocation2 + $0x430] sm:$0xff]  ;;  %1965 = vmatpush.msrb.mxu0 %v787_v7 }
 0x2c8   :  { %1697 = vmatmul.f32.gmra.mxu1 %v4369_v47  ;;  %1923 = vmatmul.f32.gmra.mxu3 %v4373_v12 }
 0x2c9   :  { %3008 = vst [vmem:[#allocation5 + $0xc8] sm:$0xff] %v2880_v15  ;;  %v979_v15 = vld [vmem:[#allocation2 + $0x630] sm:$0xff]  ;;  %2191 = vmatpush.msrb.mxu2 %v915_v23 }
 0x2ca   :  { %v1763_v37 = vpop.f32.mrf.mxu2  ;;  %2304 = vmatpush.msrb.mxu3 %v979_v15 }
 0x2cb   :  { %v1876_v58 = vpop.f32.mrf.mxu3  ;;  %v1764_v48 = vadd.f32 %v1763_v37, %v1651_v2  ;;  %v1540_v56 = vpop.f32.mrf.mxu0 }
 0x2cc   :  { %v1541_v63 = vadd.f32 %v1540_v56, %v4631_v3 }
 0x2cd   :  { %v1653_v5 = vpop.f32.mrf.mxu1  ;;  %v1877_v14 = vadd.f32 %v1876_v58, %v1764_v48 }
 0x2ce   :  { %1587 = vmatmul.f32.gmra.mxu0 %v4388_v46  ;;  %v1654_v4 = vadd.f32 %v1653_v5, %v1541_v63  ;;  %v851_v63 = vld [vmem:[#allocation2 + $0x230] sm:$0xff] }
 0x2cf   :  { %v2884_v21 = vmax.f32 %v1877_v14, 0.0  ;;  %1813 = vmatmul.f32.gmra.mxu2 %v4392_v53  ;;  %2078 = vmatpush.msrb.mxu1 %v851_v63  ;;  %v975_v63 = vld [vmem:[#allocation2 + $0x610] sm:$0xff] }
 0x2d0   :  { %1700 = vmatmul.f32.gmra.mxu1 %v4390_v52  ;;  %1926 = vmatmul.f32.gmra.mxu3 %v4394_v34 }
 0x2d1   :  { %3012 = vst [vmem:[#allocation5 + $0xe8] sm:$0xff] %v2884_v21  ;;  %2305 = vmatpush.msrb.mxu3 %v975_v63 }
 0x2d2   :  { %v1766_v2 = vpop.f32.mrf.mxu2 }
 0x2d3   :  { %v1879_v54 = vpop.f32.mrf.mxu3  ;;  %v1767_v37 = vadd.f32 %v1766_v2, %v1654_v4  ;;  %v1543_v58 = vpop.f32.mrf.mxu0 }
 0x2d4   :  { %v1544_v14 = vadd.f32 %v1543_v58, %v4631_v3  ;;  %v5486_v58 = vld [vmem:[#allocation99_spill] sm:$0xff] }
 0x2d5   :  { %v1656_v48 = vpop.f32.mrf.mxu1  ;;  %v1880_v56 = vadd.f32 %v1879_v54, %v1767_v37 }
 0x2d6   :  { %1590 = vmatmul.f32.gmra.mxu0 %v4409_v55  ;;  %v1657_v5 = vadd.f32 %v1656_v48, %v1544_v14  ;;  %v911_v14 = vld [vmem:[#allocation2 + $0x410] sm:$0xff] }
 0x2d7   :  { %v2888_v21 = vmax.f32 %v1880_v56, 0.0  ;;  %1816 = vmatmul.f32.gmra.mxu2 %v4413_v45  ;;  %v5488_v45 = vld [vmem:[#allocation101_spill] sm:$0xff] }
 0x2d8   :  { %1703 = vmatmul.f32.gmra.mxu1 %v4411_v61  ;;  %1929 = vmatmul.f32.gmra.mxu3 %v4415_v26  ;;  %v5487_v61 = vld [vmem:[#allocation100_spill] sm:$0xff]  ;;  %v5489_v26 = vld [vmem:[#allocation102_spill] sm:$0xff] }
 0x2d9   :  { %3016 = vst [vmem:[#allocation5 + $0x108] sm:$0xff] %v2888_v21  ;;  %v783_v21 = vld [vmem:[#allocation2 + $0x10] sm:$0xff]  ;;  %2192 = vmatpush.msrb.mxu2 %v911_v14 }
 0x2da   :  { %v1769_v23 = vpop.f32.mrf.mxu2  ;;  %1966 = vmatpush.msrb.mxu0 %v783_v21  ;;  %v847_v14 = vld [vmem:[#allocation2 + $0x210] sm:$0xff] }
 0x2db   :  { %v1882_v4 = vpop.f32.mrf.mxu3  ;;  %v1770_v7 = vadd.f32 %v1769_v23, %v1657_v5  ;;  %v1546_v15 = vpop.f32.mrf.mxu0  ;;  %2079 = vmatpush.msrb.mxu1 %v847_v14  ;;  %v1036_v14 = vld [vmem:[#allocation2 + $0x7f8] sm:$0xff] }
 0x2dc   :  { %v1547_v37 = vadd.f32 %v1546_v15, %v4631_v3  ;;  %2742 = vmatpush.msra.mxu3 %v1036_v14 }
 0x2dd   :  { %v1659_v2 = vpop.f32.mrf.mxu1  ;;  %v1883_v54 = vadd.f32 %v1882_v4, %v1770_v7 }
 0x2de   :  { %1593 = vmatmul.f32.gmra.mxu0 %v5486_v58  ;;  %v1660_v48 = vadd.f32 %v1659_v2, %v1547_v37  ;;  %v5491_v2 = vld [vmem:[#allocation8_spill] sm:$0xff]  ;;  %v5492_v37 = vld [vmem:[#allocation9_spill] sm:$0xff] }
 0x2df   :  { %v2892_v56 = vmax.f32 %v1883_v54, 0.0  ;;  %1819 = vmatmul.f32.gmra.mxu2 %v5488_v45  ;;  %v5490_v45 = vld [vmem:[#allocation66_spill] sm:$0xff] }
 0x2e0   :  { %1706 = vmatmul.f32.gmra.mxu1 %v5487_v61  ;;  %1932 = vmatmul.f32.gmra.mxu3 %v5489_v26 }
 0x2e1   :  { %3020 = vst [vmem:[#allocation5 + $0x128] sm:$0xff] %v2892_v56 }
 0x2e2   :  { %v1772_v5 = vpop.f32.mrf.mxu2 }
 0x2e3   :  { %v1885_v23 = vpop.f32.mrf.mxu3  ;;  %v1773_v4 = vadd.f32 %v1772_v5, %v1660_v48  ;;  %v1549_v7 = vpop.f32.mrf.mxu0 }
 0x2e4   :  { %v1550_v54 = vadd.f32 %v1549_v7, %v4631_v3 }
 0x2e5   :  { %v1662_v15 = vpop.f32.mrf.mxu1  ;;  %v1886_v58 = vadd.f32 %v1885_v23, %v1773_v4 }
 0x2e6   :  { %1596 = vmatmul.f32.gmra.mxu0 %v4451_v44  ;;  %v1663_v26 = vadd.f32 %v1662_v15, %v1550_v54  ;;  %v972_v54 = vld [vmem:[#allocation2 + $0x5f8] sm:$0xff] }
 0x2e7   :  { %v2896_v56 = vmax.f32 %v1886_v58, 0.0  ;;  %1822 = vmatmul.f32.gmra.mxu2 %v5491_v2  ;;  %v5494_v2 = vld [vmem:[#allocation10_spill] sm:$0xff] }
 0x2e8   :  { %1709 = vmatmul.f32.gmra.mxu1 %v5490_v45  ;;  %1935 = vmatmul.f32.gmra.mxu3 %v5492_v37  ;;  %v5493_v45 = vld [vmem:[#allocation72_spill] sm:$0xff]  ;;  %v5495_v37 = vld [vmem:[#allocation103_spill] sm:$0xff] }
 0x2e9   :  { %3024 = vst [vmem:[#allocation5 + $0x148] sm:$0xff] %v2896_v56  ;;  %v844_v56 = vld [vmem:[#allocation2 + $0x1f8] sm:$0xff]  ;;  %2629 = vmatpush.msra.mxu2 %v972_v54 }
 0x2ea   :  { %v1775_v21 = vpop.f32.mrf.mxu2  ;;  %2403 = vmatpush.msra.mxu0 %v844_v56  ;;  %v908_v54 = vld [vmem:[#allocation2 + $0x3f8] sm:$0xff] }
 0x2eb   :  { %v1888_v48 = vpop.f32.mrf.mxu3  ;;  %v1776_v5 = vadd.f32 %v1775_v21, %v1663_v26  ;;  %v1552_v63 = vpop.f32.mrf.mxu0  ;;  %2516 = vmatpush.msra.mxu1 %v908_v54  ;;  %v1032_v54 = vld [vmem:[#allocation2 + $0x7d8] sm:$0xff] }
 0x2ec   :  { %v1553_v7 = vadd.f32 %v1552_v63, %v4631_v3  ;;  %2743 = vmatpush.msra.mxu3 %v1032_v54 }
 0x2ed   :  { %v1665_v23 = vpop.f32.mrf.mxu1  ;;  %v1889_v4 = vadd.f32 %v1888_v48, %v1776_v5 }
 0x2ee   :  { %1599 = vmatmul.f32.gmra.mxu0 %v4472_v30  ;;  %v1666_v15 = vadd.f32 %v1665_v23, %v1553_v7  ;;  %v5497_v23 = vld [vmem:[#allocation12_spill] sm:$0xff]  ;;  %v5498_v7 = vld [vmem:[#allocation14_spill] sm:$0xff] }
 0x2ef   :  { %v2900_v58 = vmax.f32 %v1889_v4, 0.0  ;;  %1825 = vmatmul.f32.gmra.mxu2 %v5494_v2  ;;  %v5496_v2 = vld [vmem:[#allocation11_spill] sm:$0xff] }
 0x2f0   :  { %1712 = vmatmul.f32.gmra.mxu1 %v5493_v45  ;;  %1938 = vmatmul.f32.gmra.mxu3 %v5495_v37 }
 0x2f1   :  { %3028 = vst [vmem:[#allocation5 + $0x168] sm:$0xff] %v2900_v58 }
 0x2f2   :  { %v1778_v26 = vpop.f32.mrf.mxu2 }
 0x2f3   :  { %v1891_v21 = vpop.f32.mrf.mxu3  ;;  %v1779_v48 = vadd.f32 %v1778_v26, %v1666_v15  ;;  %v1555_v5 = vpop.f32.mrf.mxu0 }
 0x2f4   :  { %v1556_v4 = vadd.f32 %v1555_v5, %v4631_v3 }
 0x2f5   :  { %v1668_v63 = vpop.f32.mrf.mxu1  ;;  %v1892_v30 = vadd.f32 %v1891_v21, %v1779_v48 }
 0x2f6   :  { %1602 = vmatmul.f32.gmra.mxu0 %v4493_v59  ;;  %v1669_v37 = vadd.f32 %v1668_v63, %v1556_v4  ;;  %v968_v4 = vld [vmem:[#allocation2 + $0x5d8] sm:$0xff] }
 0x2f7   :  { %v2904_v58 = vmax.f32 %v1892_v30, 0.0  ;;  %1828 = vmatmul.f32.gmra.mxu2 %v5497_v23  ;;  %v5499_v23 = vld [vmem:[#allocation16_spill] sm:$0xff] }
 0x2f8   :  { %1715 = vmatmul.f32.gmra.mxu1 %v5496_v2  ;;  %1941 = vmatmul.f32.gmra.mxu3 %v5498_v7  ;;  %v5500_v7 = vld [vmem:[#allocation18_spill] sm:$0xff] }
 0x2f9   :  { %3032 = vst [vmem:[#allocation5 + $0x188] sm:$0xff] %v2904_v58  ;;  %v840_v58 = vld [vmem:[#allocation2 + $0x1d8] sm:$0xff]  ;;  %2630 = vmatpush.msra.mxu2 %v968_v4 }
 0x2fa   :  { %v1781_v56 = vpop.f32.mrf.mxu2  ;;  %2404 = vmatpush.msra.mxu0 %v840_v58 }
 0x2fb   :  { %v1894_v15 = vpop.f32.mrf.mxu3  ;;  %v1782_v26 = vadd.f32 %v1781_v56, %v1669_v37  ;;  %v1558_v14 = vpop.f32.mrf.mxu0 }
 0x2fc   :  { %v1559_v5 = vadd.f32 %v1558_v14, %v4631_v3 }
 0x2fd   :  { %v1671_v21 = vpop.f32.mrf.mxu1  ;;  %v1895_v48 = vadd.f32 %v1894_v15, %v1782_v26 }
 0x2fe   :  { %1605 = vmatmul.f32.gmra.mxu0 %v4514_v49  ;;  %v1672_v63 = vadd.f32 %v1671_v21, %v1559_v5  ;;  %v904_v5 = vld [vmem:[#allocation2 + $0x3d8] sm:$0xff] }
 0x2ff   :  { %v2908_v30 = vmax.f32 %v1895_v48, 0.0  ;;  %1831 = vmatmul.f32.gmra.mxu2 %v5499_v23  ;;  %2517 = vmatpush.msra.mxu1 %v904_v5  ;;  %v1028_v5 = vld [vmem:[#allocation2 + $0x7b8] sm:$0xff] }
 0x300   :  { %1718 = vmatmul.f32.gmra.mxu1 %v4516_v6  ;;  %1944 = vmatmul.f32.gmra.mxu3 %v5500_v7 }
 0x301   :  { %3036 = vst [vmem:[#allocation5 + $0x1a8] sm:$0xff] %v2908_v30  ;;  %2744 = vmatpush.msra.mxu3 %v1028_v5 }
 0x302   :  { %v1784_v37 = vpop.f32.mrf.mxu2 }
 0x303   :  { %v1897_v56 = vpop.f32.mrf.mxu3  ;;  %v1785_v15 = vadd.f32 %v1784_v37, %v1672_v63  ;;  %v1561_v26 = vpop.f32.mrf.mxu0 }
 0x304   :  { %v1562_v48 = vadd.f32 %v1561_v26, %v4631_v3  ;;  %v5501_v26 = vld [vmem:[#allocation22_spill] sm:$0xff] }
 0x305   :  { %v1674_v14 = vpop.f32.mrf.mxu1  ;;  %v1898_v49 = vadd.f32 %v1897_v56, %v1785_v15 }
 0x306   :  { %1608 = vmatmul.f32.gmra.mxu0 %v4535_v57  ;;  %v1675_v21 = vadd.f32 %v1674_v14, %v1562_v48  ;;  %v964_v48 = vld [vmem:[#allocation2 + $0x5b8] sm:$0xff] }
 0x307   :  { %v2912_v30 = vmax.f32 %v1898_v49, 0.0  ;;  %1834 = vmatmul.f32.gmra.mxu2 %v4539_v62  ;;  %v5502_v62 = vld [vmem:[#allocation23_spill] sm:$0xff] }
 0x308   :  { %1721 = vmatmul.f32.gmra.mxu1 %v4537_v36  ;;  %1947 = vmatmul.f32.gmra.mxu3 %v4541_v9  ;;  %v5503_v9 = vld [vmem:[#allocation24_spill] sm:$0xff] }
 0x309   :  { %3040 = vst [vmem:[#allocation5 + $0x1c8] sm:$0xff] %v2912_v30  ;;  %v836_v30 = vld [vmem:[#allocation2 + $0x1b8] sm:$0xff]  ;;  %2631 = vmatpush.msra.mxu2 %v964_v48 }
 0x30a   :  { %v1787_v4 = vpop.f32.mrf.mxu2  ;;  %2405 = vmatpush.msra.mxu0 %v836_v30  ;;  %v900_v48 = vld [vmem:[#allocation2 + $0x3b8] sm:$0xff] }
 0x30b   :  { %v1900_v63 = vpop.f32.mrf.mxu3  ;;  %v1788_v58 = vadd.f32 %v1787_v4, %v1675_v21  ;;  %v1564_v54 = vpop.f32.mrf.mxu0  ;;  %2518 = vmatpush.msra.mxu1 %v900_v48  ;;  %v1024_v48 = vld [vmem:[#allocation2 + $0x798] sm:$0xff] }
 0x30c   :  { %v1565_v15 = vadd.f32 %v1564_v54, %v4631_v3  ;;  %2745 = vmatpush.msra.mxu3 %v1024_v48 }
 0x30d   :  { %v1677_v37 = vpop.f32.mrf.mxu1  ;;  %v1901_v56 = vadd.f32 %v1900_v63, %v1788_v58 }
 0x30e   :  { %1967 = vmatmul.f32.vlgmr.msrb.gmra.mxu0 %v5418_v51  ;;  %v1678_v14 = vadd.f32 %v1677_v37, %v1565_v15  ;;  %v5506_v37 = vld [vmem:[#allocation27_spill] sm:$0xff]  ;;  %v5507_v15 = vld [vmem:[#allocation28_spill] sm:$0xff] }
 0x30f   :  { %v2916_v49 = vmax.f32 %v1901_v56, 0.0  ;;  %2193 = vmatmul.f32.vlgmr.msrb.gmra.mxu2 %v5502_v62  ;;  %v5505_v62 = vld [vmem:[#allocation26_spill] sm:$0xff] }
 0x310   :  { %2080 = vmatmul.f32.vlgmr.msrb.gmra.mxu1 %v5501_v26  ;;  %2306 = vmatmul.f32.vlgmr.msrb.gmra.mxu3 %v5503_v9  ;;  %v5504_v26 = vld [vmem:[#allocation25_spill] sm:$0xff] }
 0x311   :  { %3044 = vst [vmem:[#allocation5 + $0x1e8] sm:$0xff] %v2916_v49 }
 0x312   :  { %v1790_v21 = vpop.f32.mrf.mxu2 }
 0x313   :  { %v1903_v4 = vpop.f32.mrf.mxu3  ;;  %v1791_v63 = vadd.f32 %v1790_v21, %v1678_v14  ;;  %v1567_v58 = vpop.f32.mrf.mxu0 }
 0x314   :  { %v1568_v56 = vadd.f32 %v1567_v58, %v4631_v3 }
 0x315   :  { %v1680_v54 = vpop.f32.mrf.mxu1  ;;  %v1904_v51 = vadd.f32 %v1903_v4, %v1791_v63 }
 0x316   :  { %1970 = vmatmul.f32.gmra.mxu0 %v5504_v26  ;;  %v1681_v9 = vadd.f32 %v1680_v54, %v1568_v56  ;;  %v5508_v26 = vld [vmem:[#allocation29_spill] sm:$0xff]  ;;  %v960_v56 = vld [vmem:[#allocation2 + $0x598] sm:$0xff] }
 0x317   :  { %v2920_v49 = vmax.f32 %v1904_v51, 0.0  ;;  %2196 = vmatmul.f32.gmra.mxu2 %v5506_v37  ;;  %v5510_v37 = vld [vmem:[#allocation31_spill] sm:$0xff] }
 0x318   :  { %2083 = vmatmul.f32.gmra.mxu1 %v5505_v62  ;;  %2309 = vmatmul.f32.gmra.mxu3 %v5507_v15  ;;  %v5509_v62 = vld [vmem:[#allocation30_spill] sm:$0xff]  ;;  %v5511_v15 = vld [vmem:[#allocation32_spill] sm:$0xff] }
 0x319   :  { %3048 = vst [vmem:[#allocation5 + $0x208] sm:$0xff] %v2920_v49  ;;  %v832_v49 = vld [vmem:[#allocation2 + $0x198] sm:$0xff]  ;;  %2632 = vmatpush.msra.mxu2 %v960_v56 }
 0x31a   :  { %v1793_v30 = vpop.f32.mrf.mxu2  ;;  %2406 = vmatpush.msra.mxu0 %v832_v49  ;;  %v896_v56 = vld [vmem:[#allocation2 + $0x398] sm:$0xff] }
 0x31b   :  { %v1906_v14 = vpop.f32.mrf.mxu3  ;;  %v1794_v21 = vadd.f32 %v1793_v30, %v1681_v9  ;;  %v1570_v5 = vpop.f32.mrf.mxu0  ;;  %2519 = vmatpush.msra.mxu1 %v896_v56  ;;  %v1020_v56 = vld [vmem:[#allocation2 + $0x778] sm:$0xff] }
 0x31c   :  { %v1571_v58 = vadd.f32 %v1570_v5, %v4631_v3  ;;  %2746 = vmatpush.msra.mxu3 %v1020_v56 }
 0x31d   :  { %v1683_v4 = vpop.f32.mrf.mxu1  ;;  %v1907_v63 = vadd.f32 %v1906_v14, %v1794_v21 }
 0x31e   :  { %1973 = vmatmul.f32.gmra.mxu0 %v5508_v26  ;;  %v1684_v54 = vadd.f32 %v1683_v4, %v1571_v58  ;;  %v5514_v4 = vld [vmem:[#allocation35_spill] sm:$0xff]  ;;  %v5515_v58 = vld [vmem:[#allocation36_spill] sm:$0xff] }
 0x31f   :  { %v2924_v51 = vmax.f32 %v1907_v63, 0.0  ;;  %2199 = vmatmul.f32.gmra.mxu2 %v5510_v37  ;;  %v5513_v37 = vld [vmem:[#allocation34_spill] sm:$0xff] }
 0x320   :  { %2086 = vmatmul.f32.gmra.mxu1 %v5509_v62  ;;  %2312 = vmatmul.f32.gmra.mxu3 %v5511_v15  ;;  %v5512_v62 = vld [vmem:[#allocation33_spill] sm:$0xff] }
 0x321   :  { %3052 = vst [vmem:[#allocation5 + $0x228] sm:$0xff] %v2924_v51 }
 0x322   :  { %v1796_v9 = vpop.f32.mrf.mxu2 }
 0x323   :  { %v1909_v30 = vpop.f32.mrf.mxu3  ;;  %v1797_v14 = vadd.f32 %v1796_v9, %v1684_v54  ;;  %v1573_v21 = vpop.f32.mrf.mxu0 }
 0x324   :  { %v1574_v63 = vadd.f32 %v1573_v21, %v4631_v3 }
 0x325   :  { %v1686_v5 = vpop.f32.mrf.mxu1  ;;  %v1910_v26 = vadd.f32 %v1909_v30, %v1797_v14 }
 0x326   :  { %1976 = vmatmul.f32.gmra.mxu0 %v5512_v62  ;;  %v1687_v15 = vadd.f32 %v1686_v5, %v1574_v63  ;;  %v5516_v62 = vld [vmem:[#allocation37_spill] sm:$0xff]  ;;  %v956_v63 = vld [vmem:[#allocation2 + $0x578] sm:$0xff] }
 0x327   :  { %v2928_v51 = vmax.f32 %v1910_v26, 0.0  ;;  %2202 = vmatmul.f32.gmra.mxu2 %v5514_v4  ;;  %v5518_v4 = vld [vmem:[#allocation39_spill] sm:$0xff] }
 0x328   :  { %2089 = vmatmul.f32.gmra.mxu1 %v5513_v37  ;;  %2315 = vmatmul.f32.gmra.mxu3 %v5515_v58  ;;  %v5517_v37 = vld [vmem:[#allocation38_spill] sm:$0xff]  ;;  %v5519_v58 = vld [vmem:[#allocation40_spill] sm:$0xff] }
 0x329   :  { %3056 = vst [vmem:[#allocation5 + $0x248] sm:$0xff] %v2928_v51  ;;  %v828_v51 = vld [vmem:[#allocation2 + $0x178] sm:$0xff]  ;;  %2633 = vmatpush.msra.mxu2 %v956_v63 }
 0x32a   :  { %v1799_v49 = vpop.f32.mrf.mxu2  ;;  %2407 = vmatpush.msra.mxu0 %v828_v51  ;;  %v892_v63 = vld [vmem:[#allocation2 + $0x378] sm:$0xff] }
 0x32b   :  { %v1912_v54 = vpop.f32.mrf.mxu3  ;;  %v1800_v9 = vadd.f32 %v1799_v49, %v1687_v15  ;;  %v1576_v48 = vpop.f32.mrf.mxu0  ;;  %2520 = vmatpush.msra.mxu1 %v892_v63  ;;  %v1016_v63 = vld [vmem:[#allocation2 + $0x758] sm:$0xff] }
 0x32c   :  { %v1577_v21 = vadd.f32 %v1576_v48, %v4631_v3  ;;  %2747 = vmatpush.msra.mxu3 %v1016_v63 }
 0x32d   :  { %v1689_v30 = vpop.f32.mrf.mxu1  ;;  %v1913_v14 = vadd.f32 %v1912_v54, %v1800_v9 }
 0x32e   :  { %1979 = vmatmul.f32.gmra.mxu0 %v5516_v62  ;;  %v1690_v5 = vadd.f32 %v1689_v30, %v1577_v21  ;;  %v5522_v30 = vld [vmem:[#allocation43_spill] sm:$0xff]  ;;  %v5523_v21 = vld [vmem:[#allocation44_spill] sm:$0xff] }
 0x32f   :  { %v2932_v26 = vmax.f32 %v1913_v14, 0.0  ;;  %2205 = vmatmul.f32.gmra.mxu2 %v5518_v4  ;;  %v5521_v4 = vld [vmem:[#allocation42_spill] sm:$0xff] }
 0x330   :  { %2092 = vmatmul.f32.gmra.mxu1 %v5517_v37  ;;  %2318 = vmatmul.f32.gmra.mxu3 %v5519_v58  ;;  %v5520_v37 = vld [vmem:[#allocation41_spill] sm:$0xff] }
 0x331   :  { %3060 = vst [vmem:[#allocation5 + $0x268] sm:$0xff] %v2932_v26 }
 0x332   :  { %v1802_v15 = vpop.f32.mrf.mxu2 }
 0x333   :  { %v1915_v49 = vpop.f32.mrf.mxu3  ;;  %v1803_v54 = vadd.f32 %v1802_v15, %v1690_v5  ;;  %v1579_v9 = vpop.f32.mrf.mxu0 }
 0x334   :  { %v1580_v14 = vadd.f32 %v1579_v9, %v4631_v3 }
 0x335   :  { %v1692_v48 = vpop.f32.mrf.mxu1  ;;  %v1916_v62 = vadd.f32 %v1915_v49, %v1803_v54 }
 0x336   :  { %1982 = vmatmul.f32.gmra.mxu0 %v5520_v37  ;;  %v1693_v58 = vadd.f32 %v1692_v48, %v1580_v14  ;;  %v5524_v37 = vld [vmem:[#allocation45_spill] sm:$0xff]  ;;  %v952_v14 = vld [vmem:[#allocation2 + $0x558] sm:$0xff] }
 0x337   :  { %v2936_v26 = vmax.f32 %v1916_v62, 0.0  ;;  %2208 = vmatmul.f32.gmra.mxu2 %v5522_v30  ;;  %v5526_v30 = vld [vmem:[#allocation47_spill] sm:$0xff] }
 0x338   :  { %2095 = vmatmul.f32.gmra.mxu1 %v5521_v4  ;;  %2321 = vmatmul.f32.gmra.mxu3 %v5523_v21  ;;  %v5525_v4 = vld [vmem:[#allocation46_spill] sm:$0xff]  ;;  %v5527_v21 = vld [vmem:[#allocation48_spill] sm:$0xff] }
 0x339   :  { %3064 = vst [vmem:[#allocation5 + $0x288] sm:$0xff] %v2936_v26  ;;  %v824_v26 = vld [vmem:[#allocation2 + $0x158] sm:$0xff]  ;;  %2634 = vmatpush.msra.mxu2 %v952_v14 }
 0x33a   :  { %v1805_v51 = vpop.f32.mrf.mxu2  ;;  %2408 = vmatpush.msra.mxu0 %v824_v26  ;;  %v888_v14 = vld [vmem:[#allocation2 + $0x358] sm:$0xff] }
 0x33b   :  { %v1918_v5 = vpop.f32.mrf.mxu3  ;;  %v1806_v15 = vadd.f32 %v1805_v51, %v1693_v58  ;;  %v1582_v56 = vpop.f32.mrf.mxu0  ;;  %2521 = vmatpush.msra.mxu1 %v888_v14  ;;  %v1012_v14 = vld [vmem:[#allocation2 + $0x738] sm:$0xff] }
 0x33c   :  { %v1583_v9 = vadd.f32 %v1582_v56, %v4631_v3  ;;  %2748 = vmatpush.msra.mxu3 %v1012_v14 }
 0x33d   :  { %v1695_v49 = vpop.f32.mrf.mxu1  ;;  %v1919_v54 = vadd.f32 %v1918_v5, %v1806_v15 }
 0x33e   :  { %1985 = vmatmul.f32.gmra.mxu0 %v5524_v37  ;;  %v1696_v48 = vadd.f32 %v1695_v49, %v1583_v9  ;;  %v5530_v49 = vld [vmem:[#allocation51_spill] sm:$0xff]  ;;  %v5531_v9 = vld [vmem:[#allocation52_spill] sm:$0xff] }
 0x33f   :  { %v2940_v62 = vmax.f32 %v1919_v54, 0.0  ;;  %2211 = vmatmul.f32.gmra.mxu2 %v5526_v30  ;;  %v5529_v30 = vld [vmem:[#allocation50_spill] sm:$0xff] }
 0x340   :  { %2098 = vmatmul.f32.gmra.mxu1 %v5525_v4  ;;  %2324 = vmatmul.f32.gmra.mxu3 %v5527_v21  ;;  %v5528_v4 = vld [vmem:[#allocation49_spill] sm:$0xff] }
 0x341   :  { %3068 = vst [vmem:[#allocation5 + $0x2a8] sm:$0xff] %v2940_v62 }
 0x342   :  { %v1808_v58 = vpop.f32.mrf.mxu2 }
 0x343   :  { %v1921_v51 = vpop.f32.mrf.mxu3  ;;  %v1809_v5 = vadd.f32 %v1808_v58, %v1696_v48  ;;  %v1585_v15 = vpop.f32.mrf.mxu0 }
 0x344   :  { %v1586_v54 = vadd.f32 %v1585_v15, %v4631_v3 }
 0x345   :  { %v1698_v56 = vpop.f32.mrf.mxu1  ;;  %v1922_v37 = vadd.f32 %v1921_v51, %v1809_v5 }
 0x346   :  { %1988 = vmatmul.f32.gmra.mxu0 %v5528_v4  ;;  %v1699_v21 = vadd.f32 %v1698_v56, %v1586_v54  ;;  %v5532_v4 = vld [vmem:[#allocation53_spill] sm:$0xff]  ;;  %v948_v54 = vld [vmem:[#allocation2 + $0x538] sm:$0xff] }
 0x347   :  { %v2944_v62 = vmax.f32 %v1922_v37, 0.0  ;;  %2214 = vmatmul.f32.gmra.mxu2 %v5530_v49  ;;  %v5534_v49 = vld [vmem:[#allocation55_spill] sm:$0xff] }
 0x348   :  { %2101 = vmatmul.f32.gmra.mxu1 %v5529_v30  ;;  %2327 = vmatmul.f32.gmra.mxu3 %v5531_v9  ;;  %v5533_v30 = vld [vmem:[#allocation54_spill] sm:$0xff]  ;;  %v5535_v9 = vld [vmem:[#allocation56_spill] sm:$0xff] }
 0x349   :  { %3072 = vst [vmem:[#allocation5 + $0x2c8] sm:$0xff] %v2944_v62  ;;  %v820_v62 = vld [vmem:[#allocation2 + $0x138] sm:$0xff]  ;;  %2635 = vmatpush.msra.mxu2 %v948_v54 }
 0x34a   :  { %v1811_v26 = vpop.f32.mrf.mxu2  ;;  %2409 = vmatpush.msra.mxu0 %v820_v62  ;;  %v884_v54 = vld [vmem:[#allocation2 + $0x338] sm:$0xff] }
 0x34b   :  { %v1924_v48 = vpop.f32.mrf.mxu3  ;;  %v1812_v58 = vadd.f32 %v1811_v26, %v1699_v21  ;;  %v1588_v63 = vpop.f32.mrf.mxu0  ;;  %2522 = vmatpush.msra.mxu1 %v884_v54  ;;  %v1008_v54 = vld [vmem:[#allocation2 + $0x718] sm:$0xff] }
 0x34c   :  { %v1589_v15 = vadd.f32 %v1588_v63, %v4631_v3  ;;  %2749 = vmatpush.msra.mxu3 %v1008_v54 }
 0x34d   :  { %v1701_v51 = vpop.f32.mrf.mxu1  ;;  %v1925_v5 = vadd.f32 %v1924_v48, %v1812_v58 }
 0x34e   :  { %1991 = vmatmul.f32.gmra.mxu0 %v5532_v4  ;;  %v1702_v56 = vadd.f32 %v1701_v51, %v1589_v15  ;;  %v5538_v51 = vld [vmem:[#allocation59_spill] sm:$0xff]  ;;  %v5539_v15 = vld [vmem:[#allocation60_spill] sm:$0xff] }
 0x34f   :  { %v2948_v37 = vmax.f32 %v1925_v5, 0.0  ;;  %2217 = vmatmul.f32.gmra.mxu2 %v5534_v49  ;;  %v5537_v49 = vld [vmem:[#allocation58_spill] sm:$0xff] }
 0x350   :  { %2104 = vmatmul.f32.gmra.mxu1 %v5533_v30  ;;  %2330 = vmatmul.f32.gmra.mxu3 %v5535_v9  ;;  %v5536_v30 = vld [vmem:[#allocation57_spill] sm:$0xff] }
 0x351   :  { %3076 = vst [vmem:[#allocation5 + $0x2e8] sm:$0xff] %v2948_v37 }
 0x352   :  { %v1814_v21 = vpop.f32.mrf.mxu2 }
 0x353   :  { %v1927_v26 = vpop.f32.mrf.mxu3  ;;  %v1815_v48 = vadd.f32 %v1814_v21, %v1702_v56  ;;  %v1591_v58 = vpop.f32.mrf.mxu0 }
 0x354   :  { %v1592_v5 = vadd.f32 %v1591_v58, %v4631_v3 }
 0x355   :  { %v1704_v63 = vpop.f32.mrf.mxu1  ;;  %v1928_v4 = vadd.f32 %v1927_v26, %v1815_v48 }
 0x356   :  { %1994 = vmatmul.f32.gmra.mxu0 %v5536_v30  ;;  %v1705_v9 = vadd.f32 %v1704_v63, %v1592_v5  ;;  %v5540_v30 = vld [vmem:[#allocation61_spill] sm:$0xff]  ;;  %v944_v5 = vld [vmem:[#allocation2 + $0x518] sm:$0xff] }
 0x357   :  { %v2952_v37 = vmax.f32 %v1928_v4, 0.0  ;;  %2220 = vmatmul.f32.gmra.mxu2 %v5538_v51  ;;  %v5542_v51 = vld [vmem:[#allocation63_spill] sm:$0xff] }
 0x358   :  { %2107 = vmatmul.f32.gmra.mxu1 %v5537_v49  ;;  %2333 = vmatmul.f32.gmra.mxu3 %v5539_v15  ;;  %v5541_v49 = vld [vmem:[#allocation62_spill] sm:$0xff]  ;;  %v5543_v15 = vld [vmem:[#allocation64_spill] sm:$0xff] }
 0x359   :  { %3080 = vst [vmem:[#allocation5 + $0x308] sm:$0xff] %v2952_v37  ;;  %v816_v37 = vld [vmem:[#allocation2 + $0x118] sm:$0xff]  ;;  %2636 = vmatpush.msra.mxu2 %v944_v5 }
 0x35a   :  { %v1817_v62 = vpop.f32.mrf.mxu2  ;;  %2410 = vmatpush.msra.mxu0 %v816_v37  ;;  %v880_v5 = vld [vmem:[#allocation2 + $0x318] sm:$0xff] }
 0x35b   :  { %v1930_v56 = vpop.f32.mrf.mxu3  ;;  %v1818_v21 = vadd.f32 %v1817_v62, %v1705_v9  ;;  %v1594_v14 = vpop.f32.mrf.mxu0  ;;  %2523 = vmatpush.msra.mxu1 %v880_v5  ;;  %v1004_v5 = vld [vmem:[#allocation2 + $0x6f8] sm:$0xff] }
 0x35c   :  { %v1595_v58 = vadd.f32 %v1594_v14, %v4631_v3  ;;  %2750 = vmatpush.msra.mxu3 %v1004_v5 }
 0x35d   :  { %v1707_v26 = vpop.f32.mrf.mxu1  ;;  %v1931_v48 = vadd.f32 %v1930_v56, %v1818_v21 }
 0x35e   :  { %1997 = vmatmul.f32.gmra.mxu0 %v5540_v30  ;;  %v1708_v63 = vadd.f32 %v1707_v26, %v1595_v58  ;;  %v5546_v26 = vld [vmem:[#allocation69_spill] sm:$0xff]  ;;  %v5547_v58 = vld [vmem:[#allocation70_spill] sm:$0xff] }
 0x35f   :  { %v2956_v4 = vmax.f32 %v1931_v48, 0.0  ;;  %2223 = vmatmul.f32.gmra.mxu2 %v5542_v51  ;;  %v5545_v51 = vld [vmem:[#allocation68_spill] sm:$0xff] }
 0x360   :  { %2110 = vmatmul.f32.gmra.mxu1 %v5541_v49  ;;  %2336 = vmatmul.f32.gmra.mxu3 %v5543_v15  ;;  %v5544_v49 = vld [vmem:[#allocation67_spill] sm:$0xff] }
 0x361   :  { %3084 = vst [vmem:[#allocation5 + $0x328] sm:$0xff] %v2956_v4 }
 0x362   :  { %v1820_v9 = vpop.f32.mrf.mxu2 }
 0x363   :  { %v1933_v62 = vpop.f32.mrf.mxu3  ;;  %v1821_v56 = vadd.f32 %v1820_v9, %v1708_v63  ;;  %v1597_v21 = vpop.f32.mrf.mxu0 }
 0x364   :  { %v1598_v48 = vadd.f32 %v1597_v21, %v4631_v3 }
 0x365   :  { %v1710_v14 = vpop.f32.mrf.mxu1  ;;  %v1934_v30 = vadd.f32 %v1933_v62, %v1821_v56 }
 0x366   :  { %2000 = vmatmul.f32.gmra.mxu0 %v5544_v49  ;;  %v1711_v15 = vadd.f32 %v1710_v14, %v1598_v48  ;;  %v5548_v49 = vld [vmem:[#allocation73_spill] sm:$0xff]  ;;  %v940_v48 = vld [vmem:[#allocation2 + $0x4f8] sm:$0xff] }
 0x367   :  { %v2960_v4 = vmax.f32 %v1934_v30, 0.0  ;;  %2226 = vmatmul.f32.gmra.mxu2 %v5546_v26  ;;  %v5550_v26 = vld [vmem:[#allocation75_spill] sm:$0xff] }
 0x368   :  { %2113 = vmatmul.f32.gmra.mxu1 %v5545_v51  ;;  %2339 = vmatmul.f32.gmra.mxu3 %v5547_v58  ;;  %v5549_v51 = vld [vmem:[#allocation74_spill] sm:$0xff]  ;;  %v5551_v58 = vld [vmem:[#allocation76_spill] sm:$0xff] }
 0x369   :  { %3088 = vst [vmem:[#allocation5 + $0x348] sm:$0xff] %v2960_v4  ;;  %v812_v4 = vld [vmem:[#allocation2 + $0xf8] sm:$0xff]  ;;  %2637 = vmatpush.msra.mxu2 %v940_v48 }
 0x36a   :  { %v1823_v37 = vpop.f32.mrf.mxu2  ;;  %2411 = vmatpush.msra.mxu0 %v812_v4  ;;  %v876_v48 = vld [vmem:[#allocation2 + $0x2f8] sm:$0xff] }
 0x36b   :  { %v1936_v63 = vpop.f32.mrf.mxu3  ;;  %v1824_v9 = vadd.f32 %v1823_v37, %v1711_v15  ;;  %v1600_v54 = vpop.f32.mrf.mxu0  ;;  %2524 = vmatpush.msra.mxu1 %v876_v48  ;;  %v1000_v48 = vld [vmem:[#allocation2 + $0x6d8] sm:$0xff] }
 0x36c   :  { %v1601_v21 = vadd.f32 %v1600_v54, %v4631_v3  ;;  %2751 = vmatpush.msra.mxu3 %v1000_v48 }
 0x36d   :  { %v1713_v62 = vpop.f32.mrf.mxu1  ;;  %v1937_v56 = vadd.f32 %v1936_v63, %v1824_v9 }
 0x36e   :  { %2003 = vmatmul.f32.gmra.mxu0 %v5548_v49  ;;  %v1714_v14 = vadd.f32 %v1713_v62, %v1601_v21  ;;  %v5554_v62 = vld [vmem:[#allocation78_spill] sm:$0xff]  ;;  %v5555_v21 = vld [vmem:[#allocation79_spill] sm:$0xff] }
 0x36f   :  { %v2964_v30 = vmax.f32 %v1937_v56, 0.0  ;;  %2229 = vmatmul.f32.gmra.mxu2 %v5550_v26  ;;  %v5553_v26 = vld [vmem:[#allocation77_spill] sm:$0xff] }
 0x370   :  { %2116 = vmatmul.f32.gmra.mxu1 %v5549_v51  ;;  %2342 = vmatmul.f32.gmra.mxu3 %v5551_v58  ;;  %v5552_v51 = vld [vmem:[#allocation13_spill] sm:$0xff] }
 0x371   :  { %3092 = vst [vmem:[#allocation5 + $0x368] sm:$0xff] %v2964_v30 }
 0x372   :  { %v1826_v15 = vpop.f32.mrf.mxu2 }
 0x373   :  { %v1939_v37 = vpop.f32.mrf.mxu3  ;;  %v1827_v63 = vadd.f32 %v1826_v15, %v1714_v14  ;;  %v1603_v9 = vpop.f32.mrf.mxu0 }
 0x374   :  { %v1604_v56 = vadd.f32 %v1603_v9, %v4631_v3 }
 0x375   :  { %v1716_v54 = vpop.f32.mrf.mxu1  ;;  %v1940_v49 = vadd.f32 %v1939_v37, %v1827_v63 }
 0x376   :  { %2006 = vmatmul.f32.gmra.mxu0 %v5552_v51  ;;  %v1717_v58 = vadd.f32 %v1716_v54, %v1604_v56  ;;  %v5556_v51 = vld [vmem:[#allocation17_spill] sm:$0xff]  ;;  %v936_v56 = vld [vmem:[#allocation2 + $0x4d8] sm:$0xff] }
 0x377   :  { %v2968_v30 = vmax.f32 %v1940_v49, 0.0  ;;  %2232 = vmatmul.f32.gmra.mxu2 %v5554_v62  ;;  %v5558_v62 = vld [vmem:[#allocation81_spill] sm:$0xff] }
 0x378   :  { %2119 = vmatmul.f32.gmra.mxu1 %v5553_v26  ;;  %2345 = vmatmul.f32.gmra.mxu3 %v5555_v21  ;;  %v5557_v26 = vld [vmem:[#allocation80_spill] sm:$0xff]  ;;  %v5559_v21 = vld [vmem:[#allocation82_spill] sm:$0xff] }
 0x379   :  { %3096 = vst [vmem:[#allocation5 + $0x388] sm:$0xff] %v2968_v30  ;;  %v808_v30 = vld [vmem:[#allocation2 + $0xd8] sm:$0xff]  ;;  %2638 = vmatpush.msra.mxu2 %v936_v56 }
 0x37a   :  { %v1829_v4 = vpop.f32.mrf.mxu2  ;;  %2412 = vmatpush.msra.mxu0 %v808_v30 }
 0x37b   :  { %v1942_v14 = vpop.f32.mrf.mxu3  ;;  %v1830_v15 = vadd.f32 %v1829_v4, %v1717_v58  ;;  %v1606_v5 = vpop.f32.mrf.mxu0 }
 0x37c   :  { %v1607_v9 = vadd.f32 %v1606_v5, %v4631_v3 }
 0x37d   :  { %v1719_v37 = vpop.f32.mrf.mxu1  ;;  %v1943_v63 = vadd.f32 %v1942_v14, %v1830_v15 }
 0x37e   :  { %2009 = vmatmul.f32.gmra.mxu0 %v5556_v51  ;;  %v1720_v54 = vadd.f32 %v1719_v37, %v1607_v9  ;;  %v5562_v37 = vld [vmem:[#allocation86_spill] sm:$0xff]  ;;  %v5563_v9 = vld [vmem:[#allocation87_spill] sm:$0xff] }
 0x37f   :  { %v2972_v49 = vmax.f32 %v1943_v63, 0.0  ;;  %2235 = vmatmul.f32.gmra.mxu2 %v5558_v62  ;;  %v5561_v62 = vld [vmem:[#allocation85_spill] sm:$0xff] }
 0x380   :  { %2122 = vmatmul.f32.gmra.mxu1 %v5557_v26  ;;  %2348 = vmatmul.f32.gmra.mxu3 %v5559_v21  ;;  %v5560_v26 = vld [vmem:[#allocation84_spill] sm:$0xff] }
 0x381   :  { %3100 = vst [vmem:[#allocation5 + $0x3a8] sm:$0xff] %v2972_v49 }
 0x382   :  { %v1832_v58 = vpop.f32.mrf.mxu2 }
 0x383   :  { %v1945_v4 = vpop.f32.mrf.mxu3  ;;  %v1833_v14 = vadd.f32 %v1832_v58, %v1720_v54  ;;  %v1609_v15 = vpop.f32.mrf.mxu0  ;;  %v4796_v54 = vld [vmem:[%s5070_s4] sm:$0xf]  ;;  %s3323_s4 = smov [#allocation5]  }
 0x384   :  { %v1610_v63 = vadd.f32 %v1609_v15, %v4631_v3  ;;  %5564 = vst [vmem:[#allocation90_spill] sm:$0xff] %v4796_v54  ;;  %v4799_v56 = vperm.slane %v4796_v54, 2  ;;  %v872_v3 = vld [vmem:[#allocation2 + $0x2d8] sm:$0xff]  ;;  %s3115_s18 = sshll.u32 %s3323_s4, 4  ;;  %s3116_s18 = int_to_ptr.vmem [resolvable:$true] %s3115_s18 }
 0x385   :  { %v1722_v5 = vpop.f32.mrf.mxu1  ;;  %v1946_v51 = vadd.f32 %v1945_v4, %v1833_v14  ;;  %2525 = vmatpush.msra.mxu1 %v872_v3  ;;  %v932_v54 = vld [vmem:[#allocation2 + $0x4b8] sm:$0xff] }
 0x386   :  { %2012 = vmatmul.f32.gmra.mxu0 %v5560_v26  ;;  %v1723_v21 = vadd.f32 %v1722_v5, %v1610_v63  ;;  %v996_v3 = vld [vmem:[#allocation2 + $0x6b8] sm:$0xff]  ;;  %2639 = vmatpush.msra.mxu2 %v932_v54 }
 0x387   :  { %v2976_v49 = vmax.f32 %v1946_v51, 0.0  ;;  %2238 = vmatmul.f32.gmra.mxu2 %v5562_v37  ;;  %2752 = vmatpush.msra.mxu3 %v996_v3  ;;  %v868_v54 = vld [vmem:[#allocation2 + $0x2b8] sm:$0xff] }
 0x388   :  { %2125 = vmatmul.f32.gmra.mxu1 %v5561_v62  ;;  %2351 = vmatmul.f32.gmra.mxu3 %v5563_v9  ;;  %v804_v9 = vld [vmem:[#allocation2 + $0xb8] sm:$0xff] }
 0x389   :  { %3104 = vst [vmem:[#allocation5 + $0x3c8] sm:$0xff] %v2976_v49  ;;  %v5565_v49 = vld [vmem:[#allocation89_spill] sm:$0xff]  ;;  %2413 = vmatpush.msra.mxu0 %v804_v9  ;;  %2526 = vmatpush.msra.mxu1 %v868_v54 }
 0x38a   :  { %v1835_v30 = vpop.f32.mrf.mxu2 }
 0x38b   :  { %v1948_v48 = vpop.f32.mrf.mxu3  ;;  %v1836_v58 = vadd.f32 %v1835_v30, %v1723_v21  ;;  %v1968_v51 = vpop.f32.mrf.mxu0 }
 0x38c   :  { %v1969_v15 = vadd.f32 %v1968_v51, %v4799_v56 }
 0x38d   :  { %v2081_v4 = vpop.f32.mrf.mxu1  ;;  %v1949_v14 = vadd.f32 %v1948_v48, %v1836_v58 }
 0x38e   :  { %2015 = vmatmul.f32.gmra.mxu0 %v5565_v49  ;;  %v2082_v63 = vadd.f32 %v2081_v4, %v1969_v15 }
 0x38f   :  { %v2980_v5 = vmax.f32 %v1949_v14, 0.0  ;;  %2241 = vmatmul.f32.gmra.mxu2 %v5484_v60 }
 0x390   :  { %2128 = vmatmul.f32.gmra.mxu1 %v5483_v16  ;;  %2354 = vmatmul.f32.gmra.mxu3 %v5485_v28 }
 0x391   :  { %3108 = vst [vmem:[#allocation5 + $0x3e8] sm:$0xff] %v2980_v5 }
 0x392   :  { %v2194_v21 = vpop.f32.mrf.mxu2 }
 0x393   :  { %v2307_v30 = vpop.f32.mrf.mxu3  ;;  %v2195_v48 = vadd.f32 %v2194_v21, %v2082_v63  ;;  %v1971_v58 = vpop.f32.mrf.mxu0 }
 0x394   :  { %v1972_v14 = vadd.f32 %v1971_v58, %v4799_v56 }
 0x395   :  { %v2084_v51 = vpop.f32.mrf.mxu1  ;;  %v2308_v49 = vadd.f32 %v2307_v30, %v2195_v48 }
 0x396   :  { %2018 = vmatmul.f32.gmra.mxu0 %v4241_v50  ;;  %v2085_v4 = vadd.f32 %v2084_v51, %v1972_v14  ;;  %v928_v51 = vld [vmem:[#allocation2 + $0x498] sm:$0xff] }
 0x397   :  { %v2857_v5 = vmax.f32 %v2308_v49, 0.0  ;;  %2244 = vmatmul.f32.gmra.mxu2 %v4245_v43  ;;  %v800_v14 = vld [vmem:[#allocation2 + $0x98] sm:$0xff] }
 0x398   :  { %2131 = vmatmul.f32.gmra.mxu1 %v4243_v0  ;;  %2357 = vmatmul.f32.gmra.mxu3 %v4247_v35 }
 0x399   :  { %2985 = vst [vmem:[#allocation5 + $0x10] sm:$0xff] %v2857_v5  ;;  %v992_v5 = vld [vmem:[#allocation2 + $0x698] sm:$0xff]  ;;  %2640 = vmatpush.msra.mxu2 %v928_v51  ;;  %2414 = vmatpush.msra.mxu0 %v800_v14 }
 0x39a   :  { %v2197_v9 = vpop.f32.mrf.mxu2  ;;  %2753 = vmatpush.msra.mxu3 %v992_v5 }
 0x39b   :  { %v2310_v15 = vpop.f32.mrf.mxu3  ;;  %v2198_v63 = vadd.f32 %v2197_v9, %v2085_v4  ;;  %v1974_v3 = vpop.f32.mrf.mxu0 }
 0x39c   :  { %v1975_v48 = vadd.f32 %v1974_v3, %v4799_v56 }
 0x39d   :  { %v2087_v21 = vpop.f32.mrf.mxu1  ;;  %v2311_v30 = vadd.f32 %v2310_v15, %v2198_v63 }
 0x39e   :  { %2021 = vmatmul.f32.gmra.mxu0 %v4262_v20  ;;  %v2088_v58 = vadd.f32 %v2087_v21, %v1975_v48  ;;  %v864_v48 = vld [vmem:[#allocation2 + $0x298] sm:$0xff] }
 0x39f   :  { %v2861_v49 = vmax.f32 %v2311_v30, 0.0  ;;  %2247 = vmatmul.f32.gmra.mxu2 %v4266_v11  ;;  %2527 = vmatpush.msra.mxu1 %v864_v48 }
 0x3a0   :  { %2134 = vmatmul.f32.gmra.mxu1 %v4264_v10  ;;  %2360 = vmatmul.f32.gmra.mxu3 %v4268_v22 }
 0x3a1   :  { %2989 = vst [vmem:[#allocation5 + $0x30] sm:$0xff] %v2861_v49 }
 0x3a2   :  { %v2200_v4 = vpop.f32.mrf.mxu2 }
 0x3a3   :  { %v2313_v54 = vpop.f32.mrf.mxu3  ;;  %v2201_v9 = vadd.f32 %v2200_v4, %v2088_v58  ;;  %v1977_v15 = vpop.f32.mrf.mxu0 }
 0x3a4   :  { %v1978_v30 = vadd.f32 %v1977_v15, %v4799_v56 }
 0x3a5   :  { %v2090_v63 = vpop.f32.mrf.mxu1  ;;  %v2314_v3 = vadd.f32 %v2313_v54, %v2201_v9 }
 0x3a6   :  { %2024 = vmatmul.f32.gmra.mxu0 %v4283_v13  ;;  %v2091_v21 = vadd.f32 %v2090_v63, %v1978_v30  ;;  %v796_v30 = vld [vmem:[#allocation2 + $0x78] sm:$0xff] }
 0x3a7   :  { %v2865_v49 = vmax.f32 %v2314_v3, 0.0  ;;  %2250 = vmatmul.f32.gmra.mxu2 %v4287_v29  ;;  %v924_v3 = vld [vmem:[#allocation2 + $0x478] sm:$0xff]  ;;  %2415 = vmatpush.msra.mxu0 %v796_v30 }
 0x3a8   :  { %2137 = vmatmul.f32.gmra.mxu1 %v4285_v19  ;;  %2363 = vmatmul.f32.gmra.mxu3 %v4289_v42 }
 0x3a9   :  { %2993 = vst [vmem:[#allocation5 + $0x50] sm:$0xff] %v2865_v49  ;;  %v988_v49 = vld [vmem:[#allocation2 + $0x678] sm:$0xff]  ;;  %2641 = vmatpush.msra.mxu2 %v924_v3 }
 0x3aa   :  { %v2203_v51 = vpop.f32.mrf.mxu2  ;;  %2754 = vmatpush.msra.mxu3 %v988_v49 }
 0x3ab   :  { %v2316_v58 = vpop.f32.mrf.mxu3  ;;  %v2204_v14 = vadd.f32 %v2203_v51, %v2091_v21  ;;  %v1980_v5 = vpop.f32.mrf.mxu0 }
 0x3ac   :  { %v1981_v9 = vadd.f32 %v1980_v5, %v4799_v56 }
 0x3ad   :  { %v2093_v4 = vpop.f32.mrf.mxu1  ;;  %v2317_v54 = vadd.f32 %v2316_v58, %v2204_v14 }
 0x3ae   :  { %2027 = vmatmul.f32.gmra.mxu0 %v4304_v18  ;;  %v2094_v63 = vadd.f32 %v2093_v4, %v1981_v9  ;;  %v860_v9 = vld [vmem:[#allocation2 + $0x278] sm:$0xff] }
 0x3af   :  { %v2869_v15 = vmax.f32 %v2317_v54, 0.0  ;;  %2253 = vmatmul.f32.gmra.mxu2 %v4308_v25  ;;  %2528 = vmatpush.msra.mxu1 %v860_v9 }
 0x3b0   :  { %2140 = vmatmul.f32.gmra.mxu1 %v4306_v24  ;;  %2366 = vmatmul.f32.gmra.mxu3 %v4310_v40 }
 0x3b1   :  { %2997 = vst [vmem:[#allocation5 + $0x70] sm:$0xff] %v2869_v15 }
 0x3b2   :  { %v2206_v21 = vpop.f32.mrf.mxu2 }
 0x3b3   :  { %v2319_v48 = vpop.f32.mrf.mxu3  ;;  %v2207_v51 = vadd.f32 %v2206_v21, %v2094_v63  ;;  %v1983_v58 = vpop.f32.mrf.mxu0 }
 0x3b4   :  { %v1984_v54 = vadd.f32 %v1983_v58, %v4799_v56 }
 0x3b5   :  { %v2096_v14 = vpop.f32.mrf.mxu1  ;;  %v2320_v5 = vadd.f32 %v2319_v48, %v2207_v51 }
 0x3b6   :  { %2030 = vmatmul.f32.gmra.mxu0 %v4325_v27  ;;  %v2097_v4 = vadd.f32 %v2096_v14, %v1984_v54  ;;  %v792_v54 = vld [vmem:[#allocation2 + $0x58] sm:$0xff] }
 0x3b7   :  { %v2873_v15 = vmax.f32 %v2320_v5, 0.0  ;;  %2256 = vmatmul.f32.gmra.mxu2 %v4329_v17  ;;  %v920_v5 = vld [vmem:[#allocation2 + $0x458] sm:$0xff]  ;;  %2416 = vmatpush.msra.mxu0 %v792_v54 }
 0x3b8   :  { %2143 = vmatmul.f32.gmra.mxu1 %v4327_v33  ;;  %2369 = vmatmul.f32.gmra.mxu3 %v4331_v1 }
 0x3b9   :  { %3001 = vst [vmem:[#allocation5 + $0x90] sm:$0xff] %v2873_v15  ;;  %v984_v15 = vld [vmem:[#allocation2 + $0x658] sm:$0xff]  ;;  %2642 = vmatpush.msra.mxu2 %v920_v5 }
 0x3ba   :  { %v2209_v3 = vpop.f32.mrf.mxu2  ;;  %2755 = vmatpush.msra.mxu3 %v984_v15 }
 0x3bb   :  { %v2322_v63 = vpop.f32.mrf.mxu3  ;;  %v2210_v30 = vadd.f32 %v2209_v3, %v2097_v4  ;;  %v1986_v49 = vpop.f32.mrf.mxu0 }
 0x3bc   :  { %v1987_v51 = vadd.f32 %v1986_v49, %v4799_v56 }
 0x3bd   :  { %v2099_v21 = vpop.f32.mrf.mxu1  ;;  %v2323_v48 = vadd.f32 %v2322_v63, %v2210_v30 }
 0x3be   :  { %2033 = vmatmul.f32.gmra.mxu0 %v4346_v32  ;;  %v2100_v14 = vadd.f32 %v2099_v21, %v1987_v51  ;;  %v856_v51 = vld [vmem:[#allocation2 + $0x258] sm:$0xff] }
 0x3bf   :  { %v2877_v58 = vmax.f32 %v2323_v48, 0.0  ;;  %2259 = vmatmul.f32.gmra.mxu2 %v4350_v39  ;;  %2529 = vmatpush.msra.mxu1 %v856_v51 }
 0x3c0   :  { %2146 = vmatmul.f32.gmra.mxu1 %v4348_v38  ;;  %2372 = vmatmul.f32.gmra.mxu3 %v4352_v8 }
 0x3c1   :  { %3005 = vst [vmem:[#allocation5 + $0xb0] sm:$0xff] %v2877_v58 }
 0x3c2   :  { %v2212_v4 = vpop.f32.mrf.mxu2 }
 0x3c3   :  { %v2325_v9 = vpop.f32.mrf.mxu3  ;;  %v2213_v3 = vadd.f32 %v2212_v4, %v2100_v14  ;;  %v1989_v63 = vpop.f32.mrf.mxu0 }
 0x3c4   :  { %v1990_v48 = vadd.f32 %v1989_v63, %v4799_v56 }
 0x3c5   :  { %v2102_v30 = vpop.f32.mrf.mxu1  ;;  %v2326_v49 = vadd.f32 %v2325_v9, %v2213_v3 }
 0x3c6   :  { %2036 = vmatmul.f32.gmra.mxu0 %v4367_v41  ;;  %v2103_v21 = vadd.f32 %v2102_v30, %v1990_v48  ;;  %v788_v48 = vld [vmem:[#allocation2 + $0x38] sm:$0xff] }
 0x3c7   :  { %v2881_v58 = vmax.f32 %v2326_v49, 0.0  ;;  %2262 = vmatmul.f32.gmra.mxu2 %v4371_v31  ;;  %v916_v49 = vld [vmem:[#allocation2 + $0x438] sm:$0xff]  ;;  %2417 = vmatpush.msra.mxu0 %v788_v48 }
 0x3c8   :  { %2149 = vmatmul.f32.gmra.mxu1 %v4369_v47  ;;  %2375 = vmatmul.f32.gmra.mxu3 %v4373_v12 }
 0x3c9   :  { %3009 = vst [vmem:[#allocation5 + $0xd0] sm:$0xff] %v2881_v58  ;;  %v980_v58 = vld [vmem:[#allocation2 + $0x638] sm:$0xff]  ;;  %2643 = vmatpush.msra.mxu2 %v916_v49 }
 0x3ca   :  { %v2215_v5 = vpop.f32.mrf.mxu2  ;;  %2756 = vmatpush.msra.mxu3 %v980_v58  ;;  %v852_v49 = vld [vmem:[#allocation2 + $0x238] sm:$0xff] }
 0x3cb   :  { %v2328_v14 = vpop.f32.mrf.mxu3  ;;  %v2216_v54 = vadd.f32 %v2215_v5, %v2103_v21  ;;  %v1992_v15 = vpop.f32.mrf.mxu0  ;;  %2530 = vmatpush.msra.mxu1 %v852_v49  ;;  %v976_v49 = vld [vmem:[#allocation2 + $0x618] sm:$0xff] }
 0x3cc   :  { %v1993_v3 = vadd.f32 %v1992_v15, %v4799_v56  ;;  %2757 = vmatpush.msra.mxu3 %v976_v49 }
 0x3cd   :  { %v2105_v4 = vpop.f32.mrf.mxu1  ;;  %v2329_v9 = vadd.f32 %v2328_v14, %v2216_v54 }
 0x3ce   :  { %2039 = vmatmul.f32.gmra.mxu0 %v4388_v46  ;;  %v2106_v30 = vadd.f32 %v2105_v4, %v1993_v3  ;;  %v5567_v4 = vld [vmem:[#allocation97_spill] sm:$0xff]  ;;  %v5568_v3 = vld [vmem:[#allocation98_spill] sm:$0xff] }
 0x3cf   :  { %v2885_v63 = vmax.f32 %v2329_v9, 0.0  ;;  %2265 = vmatmul.f32.gmra.mxu2 %v4392_v53  ;;  %v5566_v53 = vld [vmem:[#allocation96_spill] sm:$0xff] }
 0x3d0   :  { %2152 = vmatmul.f32.gmra.mxu1 %v4390_v52  ;;  %2378 = vmatmul.f32.gmra.mxu3 %v4394_v34 }
 0x3d1   :  { %3013 = vst [vmem:[#allocation5 + $0xf0] sm:$0xff] %v2885_v63 }
 0x3d2   :  { %v2218_v21 = vpop.f32.mrf.mxu2 }
 0x3d3   :  { %v2331_v51 = vpop.f32.mrf.mxu3  ;;  %v2219_v5 = vadd.f32 %v2218_v21, %v2106_v30  ;;  %v1995_v14 = vpop.f32.mrf.mxu0 }
 0x3d4   :  { %v1996_v9 = vadd.f32 %v1995_v14, %v4799_v56 }
 0x3d5   :  { %v2108_v54 = vpop.f32.mrf.mxu1  ;;  %v2332_v15 = vadd.f32 %v2331_v51, %v2219_v5 }
 0x3d6   :  { %2042 = vmatmul.f32.gmra.mxu0 %v4409_v55  ;;  %v2109_v34 = vadd.f32 %v2108_v54, %v1996_v9  ;;  %v5569_v55 = vld [vmem:[#allocation99_spill] sm:$0xff] }
 0x3d7   :  { %v2889_v63 = vmax.f32 %v2332_v15, 0.0  ;;  %2268 = vmatmul.f32.gmra.mxu2 %v5567_v4  ;;  %v5570_v4 = vld [vmem:[#allocation101_spill] sm:$0xff]  ;;  %v912_v9 = vld [vmem:[#allocation2 + $0x418] sm:$0xff] }
 0x3d8   :  { %2155 = vmatmul.f32.gmra.mxu1 %v5566_v53  ;;  %2381 = vmatmul.f32.gmra.mxu3 %v5568_v3  ;;  %v5571_v3 = vld [vmem:[#allocation102_spill] sm:$0xff] }
 0x3d9   :  { %3017 = vst [vmem:[#allocation5 + $0x110] sm:$0xff] %v2889_v63  ;;  %v784_v63 = vld [vmem:[#allocation2 + $0x18] sm:$0xff]  ;;  %2644 = vmatpush.msra.mxu2 %v912_v9 }
 0x3da   :  { %v2221_v48 = vpop.f32.mrf.mxu2  ;;  %2418 = vmatpush.msra.mxu0 %v784_v63  ;;  %v848_v9 = vld [vmem:[#allocation2 + $0x218] sm:$0xff] }
 0x3db   :  { %v2334_v30 = vpop.f32.mrf.mxu3  ;;  %v2222_v21 = vadd.f32 %v2221_v48, %v2109_v34  ;;  %v1998_v58 = vpop.f32.mrf.mxu0  ;;  %2531 = vmatpush.msra.mxu1 %v848_v9 }
 0x3dc   :  { %v1999_v14 = vadd.f32 %v1998_v58, %v4799_v56 }
 0x3dd   :  { %v2111_v51 = vpop.f32.mrf.mxu1  ;;  %v2335_v5 = vadd.f32 %v2334_v30, %v2222_v21 }
 0x3de   :  { %2045 = vmatmul.f32.gmra.mxu0 %v5569_v55  ;;  %v2112_v54 = vadd.f32 %v2111_v51, %v1999_v14  ;;  %v5573_v51 = vld [vmem:[#allocation8_spill] sm:$0xff]  ;;  %v5574_v14 = vld [vmem:[#allocation9_spill] sm:$0xff] }
 0x3df   :  { %v2893_v15 = vmax.f32 %v2335_v5, 0.0  ;;  %2271 = vmatmul.f32.gmra.mxu2 %v5570_v4  ;;  %v5572_v4 = vld [vmem:[#allocation66_spill] sm:$0xff] }
 0x3e0   :  { %2158 = vmatmul.f32.gmra.mxu1 %v5487_v61  ;;  %2384 = vmatmul.f32.gmra.mxu3 %v5571_v3 }
 0x3e1   :  { %3021 = vst [vmem:[#allocation5 + $0x130] sm:$0xff] %v2893_v15 }
 0x3e2   :  { %v2224_v34 = vpop.f32.mrf.mxu2 }
 0x3e3   :  { %v2337_v48 = vpop.f32.mrf.mxu3  ;;  %v2225_v30 = vadd.f32 %v2224_v34, %v2112_v54  ;;  %v2001_v21 = vpop.f32.mrf.mxu0 }
 0x3e4   :  { %v2002_v5 = vadd.f32 %v2001_v21, %v4799_v56 }
 0x3e5   :  { %v2114_v58 = vpop.f32.mrf.mxu1  ;;  %v2338_v55 = vadd.f32 %v2337_v48, %v2225_v30 }
 0x3e6   :  { %2048 = vmatmul.f32.gmra.mxu0 %v4451_v44  ;;  %v2115_v3 = vadd.f32 %v2114_v58, %v2002_v5  ;;  %v5575_v44 = vld [vmem:[#allocation71_spill] sm:$0xff] }
 0x3e7   :  { %v2897_v15 = vmax.f32 %v2338_v55, 0.0  ;;  %2274 = vmatmul.f32.gmra.mxu2 %v5573_v51  ;;  %v5576_v51 = vld [vmem:[#allocation10_spill] sm:$0xff] }
 0x3e8   :  { %2161 = vmatmul.f32.gmra.mxu1 %v5572_v4  ;;  %2387 = vmatmul.f32.gmra.mxu3 %v5574_v14  ;;  %v5577_v14 = vld [vmem:[#allocation103_spill] sm:$0xff] }
 0x3e9   :  { %3025 = vst [vmem:[#allocation5 + $0x150] sm:$0xff] %v2897_v15 }
 0x3ea   :  { %v2227_v63 = vpop.f32.mrf.mxu2 }
 0x3eb   :  { %v2340_v54 = vpop.f32.mrf.mxu3  ;;  %v2228_v34 = vadd.f32 %v2227_v63, %v2115_v3  ;;  %v2004_v49 = vpop.f32.mrf.mxu0 }
 0x3ec   :  { %v2005_v21 = vadd.f32 %v2004_v49, %v4799_v56  ;;  %v5578_v49 = vld [vmem:[#allocation12_spill] sm:$0xff] }
 0x3ed   :  { %v2117_v48 = vpop.f32.mrf.mxu1  ;;  %v2341_v30 = vadd.f32 %v2340_v54, %v2228_v34 }
 0x3ee   :  { %2051 = vmatmul.f32.gmra.mxu0 %v5575_v44  ;;  %v2118_v58 = vadd.f32 %v2117_v48, %v2005_v21 }
 0x3ef   :  { %v2901_v55 = vmax.f32 %v2341_v30, 0.0  ;;  %2277 = vmatmul.f32.gmra.mxu2 %v5576_v51  ;;  %v5579_v30 = vld [vmem:[#allocation14_spill] sm:$0xff] }
 0x3f0   :  { %2164 = vmatmul.f32.gmra.mxu1 %v5493_v45  ;;  %2390 = vmatmul.f32.gmra.mxu3 %v5577_v14 }
 0x3f1   :  { %3029 = vst [vmem:[#allocation5 + $0x170] sm:$0xff] %v2901_v55 }
 0x3f2   :  { %v2230_v5 = vpop.f32.mrf.mxu2 }
 0x3f3   :  { %v2343_v15 = vpop.f32.mrf.mxu3  ;;  %v2231_v9 = vadd.f32 %v2230_v5, %v2118_v58  ;;  %v2007_v3 = vpop.f32.mrf.mxu0 }
 0x3f4   :  { %v2008_v54 = vadd.f32 %v2007_v3, %v4799_v56 }
 0x3f5   :  { %v2120_v63 = vpop.f32.mrf.mxu1  ;;  %v2344_v4 = vadd.f32 %v2343_v15, %v2231_v9  ;;  %v5580_v9 = vld [vmem:[#allocation15_spill] sm:$0xff] }
 0x3f6   :  { %2054 = vmatmul.f32.gmra.mxu0 %v4493_v59  ;;  %v2121_v55 = vadd.f32 %v2120_v63, %v2008_v54 }
 0x3f7   :  { %v2905_v34 = vmax.f32 %v2344_v4, 0.0  ;;  %2280 = vmatmul.f32.gmra.mxu2 %v5578_v49 }
 0x3f8   :  { %2167 = vmatmul.f32.gmra.mxu1 %v5496_v2  ;;  %2393 = vmatmul.f32.gmra.mxu3 %v5579_v30 }
 0x3f9   :  { %3033 = vst [vmem:[#allocation5 + $0x190] sm:$0xff] %v2905_v34 }
 0x3fa   :  { %v2233_v48 = vpop.f32.mrf.mxu2 }
 0x3fb   :  { %v2346_v21 = vpop.f32.mrf.mxu3  ;;  %v2234_v14 = vadd.f32 %v2233_v48, %v2121_v55  ;;  %v2010_v58 = vpop.f32.mrf.mxu0 }
 0x3fc   :  { %v2011_v15 = vadd.f32 %v2010_v58, %v4799_v56  ;;  %v5582_v58 = vld [vmem:[#allocation88_spill] sm:$0xff] }
 0x3fd   :  { %v2123_v5 = vpop.f32.mrf.mxu1  ;;  %v2347_v51 = vadd.f32 %v2346_v21, %v2234_v14 }
 0x3fe   :  { %2057 = vmatmul.f32.gmra.mxu0 %v5580_v9  ;;  %v2124_v4 = vadd.f32 %v2123_v5, %v2011_v15 }
 0x3ff   :  { %v2909_v3 = vmax.f32 %v2347_v51, 0.0  ;;  %2283 = vmatmul.f32.gmra.mxu2 %v5499_v23  ;;  %v5581_v51 = vld [vmem:[#allocation20_spill] sm:$0xff] }
 0x400   :  { %2170 = vmatmul.f32.gmra.mxu1 %v4516_v6  ;;  %2396 = vmatmul.f32.gmra.mxu3 %v5500_v7 }
 0x401   :  { %3037 = vst [vmem:[#allocation5 + $0x1b0] sm:$0xff] %v2909_v3 }
 0x402   :  { %v2236_v63 = vpop.f32.mrf.mxu2 }
 0x403   :  { %v2349_v54 = vpop.f32.mrf.mxu3  ;;  %v2237_v34 = vadd.f32 %v2236_v63, %v2124_v4  ;;  %v2013_v55 = vpop.f32.mrf.mxu0 }
 0x404   :  { %v2014_v14 = vadd.f32 %v2013_v55, %v4799_v56  ;;  %v5584_v55 = vld [vmem:[#allocation22_spill] sm:$0xff] }
 0x405   :  { %v2126_v48 = vpop.f32.mrf.mxu1  ;;  %v2350_v30 = vadd.f32 %v2349_v54, %v2237_v34  ;;  %v5583_v34 = vld [vmem:[#allocation21_spill] sm:$0xff] }
 0x406   :  { %2060 = vmatmul.f32.gmra.mxu0 %v4535_v57  ;;  %v2127_v3 = vadd.f32 %v2126_v48, %v2014_v14 }
 0x407   :  { %v2913_v21 = vmax.f32 %v2350_v30, 0.0  ;;  %2286 = vmatmul.f32.gmra.mxu2 %v5581_v51  ;;  %v5585_v30 = vld [vmem:[#allocation23_spill] sm:$0xff]  ;;  %v5586_v51 = vld [vmem:[#allocation24_spill] sm:$0xff] }
 0x408   :  { %2173 = vmatmul.f32.gmra.mxu1 %v4537_v36  ;;  %2399 = vmatmul.f32.gmra.mxu3 %v5582_v58 }
 0x409   :  { %3041 = vst [vmem:[#allocation5 + $0x1d0] sm:$0xff] %v2913_v21 }
 0x40a   :  { %v2239_v5 = vpop.f32.mrf.mxu2 }
 0x40b   :  { %v2352_v15 = vpop.f32.mrf.mxu3  ;;  %v2240_v7 = vadd.f32 %v2239_v5, %v2127_v3  ;;  %v2016_v4 = vpop.f32.mrf.mxu0 }
 0x40c   :  { %v2017_v54 = vadd.f32 %v2016_v4, %v4799_v56  ;;  %v5588_v4 = vld [vmem:[#allocation26_spill] sm:$0xff] }
 0x40d   :  { %v2129_v63 = vpop.f32.mrf.mxu1  ;;  %v2353_v23 = vadd.f32 %v2352_v15, %v2240_v7  ;;  %v5587_v15 = vld [vmem:[#allocation25_spill] sm:$0xff] }
 0x40e   :  { %2419 = vmatmul.f32.vlgmr.msra.gmra.mxu0 %v5583_v34  ;;  %v2130_v21 = vadd.f32 %v2129_v63, %v2017_v54 }
 0x40f   :  { %v2917_v36 = vmax.f32 %v2353_v23, 0.0  ;;  %2645 = vmatmul.f32.vlgmr.msra.gmra.mxu2 %v5585_v30  ;;  %v5589_v23 = vld [vmem:[#allocation27_spill] sm:$0xff] }
 0x410   :  { %2532 = vmatmul.f32.vlgmr.msra.gmra.mxu1 %v5584_v55  ;;  %2758 = vmatmul.f32.vlgmr.msra.gmra.mxu3 %v5586_v51  ;;  %v5590_v55 = vld [vmem:[#allocation28_spill] sm:$0xff] }
 0x411   :  { %3045 = vst [vmem:[#allocation5 + $0x1f0] sm:$0xff] %v2917_v36 }
 0x412   :  { %v2242_v48 = vpop.f32.mrf.mxu2 }
 0x413   :  { %v2355_v14 = vpop.f32.mrf.mxu3  ;;  %v2243_v58 = vadd.f32 %v2242_v48, %v2130_v21  ;;  %v2019_v3 = vpop.f32.mrf.mxu0 }
 0x414   :  { %v2020_v7 = vadd.f32 %v2019_v3, %v4799_v56  ;;  %v5592_v3 = vld [vmem:[#allocation30_spill] sm:$0xff] }
 0x415   :  { %v2132_v5 = vpop.f32.mrf.mxu1  ;;  %v2356_v57 = vadd.f32 %v2355_v14, %v2243_v58  ;;  %v5591_v14 = vld [vmem:[#allocation29_spill] sm:$0xff] }
 0x416   :  { %2422 = vmatmul.f32.gmra.mxu0 %v5587_v15  ;;  %v2133_v36 = vadd.f32 %v2132_v5, %v2020_v7 }
 0x417   :  { %v2921_v34 = vmax.f32 %v2356_v57, 0.0  ;;  %2648 = vmatmul.f32.gmra.mxu2 %v5589_v23  ;;  %v5593_v57 = vld [vmem:[#allocation31_spill] sm:$0xff] }
 0x418   :  { %2535 = vmatmul.f32.gmra.mxu1 %v5588_v4  ;;  %2761 = vmatmul.f32.gmra.mxu3 %v5590_v55  ;;  %v5594_v4 = vld [vmem:[#allocation32_spill] sm:$0xff] }
 0x419   :  { %3049 = vst [vmem:[#allocation5 + $0x210] sm:$0xff] %v2921_v34 }
 0x41a   :  { %v2245_v51 = vpop.f32.mrf.mxu2 }
 0x41b   :  { %v2358_v63 = vpop.f32.mrf.mxu3  ;;  %v2246_v54 = vadd.f32 %v2245_v51, %v2133_v36  ;;  %v2022_v30 = vpop.f32.mrf.mxu0 }
 0x41c   :  { %v2023_v58 = vadd.f32 %v2022_v30, %v4799_v56  ;;  %v5596_v30 = vld [vmem:[#allocation34_spill] sm:$0xff] }
 0x41d   :  { %v2135_v21 = vpop.f32.mrf.mxu1  ;;  %v2359_v48 = vadd.f32 %v2358_v63, %v2246_v54  ;;  %v5595_v54 = vld [vmem:[#allocation33_spill] sm:$0xff] }
 0x41e   :  { %2425 = vmatmul.f32.gmra.mxu0 %v5591_v14  ;;  %v2136_v34 = vadd.f32 %v2135_v21, %v2023_v58 }
 0x41f   :  { %v2925_v15 = vmax.f32 %v2359_v48, 0.0  ;;  %2651 = vmatmul.f32.gmra.mxu2 %v5593_v57  ;;  %v5597_v48 = vld [vmem:[#allocation35_spill] sm:$0xff] }
 0x420   :  { %2538 = vmatmul.f32.gmra.mxu1 %v5592_v3  ;;  %2764 = vmatmul.f32.gmra.mxu3 %v5594_v4  ;;  %v5598_v3 = vld [vmem:[#allocation36_spill] sm:$0xff] }
 0x421   :  { %3053 = vst [vmem:[#allocation5 + $0x230] sm:$0xff] %v2925_v15 }
 0x422   :  { %v2248_v5 = vpop.f32.mrf.mxu2 }
 0x423   :  { %v2361_v7 = vpop.f32.mrf.mxu3  ;;  %v2249_v23 = vadd.f32 %v2248_v5, %v2136_v34  ;;  %v2025_v55 = vpop.f32.mrf.mxu0 }
 0x424   :  { %v2026_v63 = vadd.f32 %v2025_v55, %v4799_v56  ;;  %v5600_v55 = vld [vmem:[#allocation38_spill] sm:$0xff] }
 0x425   :  { %v2138_v36 = vpop.f32.mrf.mxu1  ;;  %v2362_v51 = vadd.f32 %v2361_v7, %v2249_v23  ;;  %v5599_v23 = vld [vmem:[#allocation37_spill] sm:$0xff] }
 0x426   :  { %2428 = vmatmul.f32.gmra.mxu0 %v5595_v54  ;;  %v2139_v15 = vadd.f32 %v2138_v36, %v2026_v63 }
 0x427   :  { %v2929_v14 = vmax.f32 %v2362_v51, 0.0  ;;  %2654 = vmatmul.f32.gmra.mxu2 %v5597_v48  ;;  %v5601_v51 = vld [vmem:[#allocation39_spill] sm:$0xff] }
 0x428   :  { %2541 = vmatmul.f32.gmra.mxu1 %v5596_v30  ;;  %2767 = vmatmul.f32.gmra.mxu3 %v5598_v3  ;;  %v5602_v30 = vld [vmem:[#allocation40_spill] sm:$0xff] }
 0x429   :  { %3057 = vst [vmem:[#allocation5 + $0x250] sm:$0xff] %v2929_v14 }
 0x42a   :  { %v2251_v21 = vpop.f32.mrf.mxu2 }
 0x42b   :  { %v2364_v58 = vpop.f32.mrf.mxu3  ;;  %v2252_v57 = vadd.f32 %v2251_v21, %v2139_v15  ;;  %v2028_v4 = vpop.f32.mrf.mxu0 }
 0x42c   :  { %v2029_v7 = vadd.f32 %v2028_v4, %v4799_v56  ;;  %v5604_v4 = vld [vmem:[#allocation42_spill] sm:$0xff] }
 0x42d   :  { %v2141_v34 = vpop.f32.mrf.mxu1  ;;  %v2365_v5 = vadd.f32 %v2364_v58, %v2252_v57  ;;  %v5603_v57 = vld [vmem:[#allocation41_spill] sm:$0xff] }
 0x42e   :  { %2431 = vmatmul.f32.gmra.mxu0 %v5599_v23  ;;  %v2142_v14 = vadd.f32 %v2141_v34, %v2029_v7 }
 0x42f   :  { %v2933_v54 = vmax.f32 %v2365_v5, 0.0  ;;  %2657 = vmatmul.f32.gmra.mxu2 %v5601_v51  ;;  %v5605_v5 = vld [vmem:[#allocation43_spill] sm:$0xff] }
 0x430   :  { %2544 = vmatmul.f32.gmra.mxu1 %v5600_v55  ;;  %2770 = vmatmul.f32.gmra.mxu3 %v5602_v30  ;;  %v5606_v55 = vld [vmem:[#allocation44_spill] sm:$0xff] }
 0x431   :  { %3061 = vst [vmem:[#allocation5 + $0x270] sm:$0xff] %v2933_v54 }
 0x432   :  { %v2254_v36 = vpop.f32.mrf.mxu2 }
 0x433   :  { %v2367_v63 = vpop.f32.mrf.mxu3  ;;  %v2255_v48 = vadd.f32 %v2254_v36, %v2142_v14  ;;  %v2031_v3 = vpop.f32.mrf.mxu0 }
 0x434   :  { %v2032_v58 = vadd.f32 %v2031_v3, %v4799_v56  ;;  %v5608_v3 = vld [vmem:[#allocation46_spill] sm:$0xff] }
 0x435   :  { %v2144_v15 = vpop.f32.mrf.mxu1  ;;  %v2368_v21 = vadd.f32 %v2367_v63, %v2255_v48  ;;  %v5607_v48 = vld [vmem:[#allocation45_spill] sm:$0xff] }
 0x436   :  { %2434 = vmatmul.f32.gmra.mxu0 %v5603_v57  ;;  %v2145_v54 = vadd.f32 %v2144_v15, %v2032_v58 }
 0x437   :  { %v2937_v23 = vmax.f32 %v2368_v21, 0.0  ;;  %2660 = vmatmul.f32.gmra.mxu2 %v5605_v5  ;;  %v5609_v21 = vld [vmem:[#allocation47_spill] sm:$0xff] }
 0x438   :  { %2547 = vmatmul.f32.gmra.mxu1 %v5604_v4  ;;  %2773 = vmatmul.f32.gmra.mxu3 %v5606_v55  ;;  %v5610_v4 = vld [vmem:[#allocation48_spill] sm:$0xff] }
 0x439   :  { %3065 = vst [vmem:[#allocation5 + $0x290] sm:$0xff] %v2937_v23 }
 0x43a   :  { %v2257_v34 = vpop.f32.mrf.mxu2 }
 0x43b   :  { %v2370_v7 = vpop.f32.mrf.mxu3  ;;  %v2258_v51 = vadd.f32 %v2257_v34, %v2145_v54  ;;  %v2034_v30 = vpop.f32.mrf.mxu0 }
 0x43c   :  { %v2035_v63 = vadd.f32 %v2034_v30, %v4799_v56  ;;  %v5612_v30 = vld [vmem:[#allocation50_spill] sm:$0xff] }
 0x43d   :  { %v2147_v14 = vpop.f32.mrf.mxu1  ;;  %v2371_v36 = vadd.f32 %v2370_v7, %v2258_v51  ;;  %v5611_v51 = vld [vmem:[#allocation49_spill] sm:$0xff] }
 0x43e   :  { %2437 = vmatmul.f32.gmra.mxu0 %v5607_v48  ;;  %v2148_v23 = vadd.f32 %v2147_v14, %v2035_v63 }
 0x43f   :  { %v2941_v57 = vmax.f32 %v2371_v36, 0.0  ;;  %2663 = vmatmul.f32.gmra.mxu2 %v5609_v21  ;;  %v5613_v36 = vld [vmem:[#allocation51_spill] sm:$0xff] }
 0x440   :  { %2550 = vmatmul.f32.gmra.mxu1 %v5608_v3  ;;  %2776 = vmatmul.f32.gmra.mxu3 %v5610_v4  ;;  %v5614_v3 = vld [vmem:[#allocation52_spill] sm:$0xff] }
 0x441   :  { %3069 = vst [vmem:[#allocation5 + $0x2b0] sm:$0xff] %v2941_v57 }
 0x442   :  { %v2260_v15 = vpop.f32.mrf.mxu2 }
 0x443   :  { %v2373_v58 = vpop.f32.mrf.mxu3  ;;  %v2261_v5 = vadd.f32 %v2260_v15, %v2148_v23  ;;  %v2037_v55 = vpop.f32.mrf.mxu0 }
 0x444   :  { %v2038_v7 = vadd.f32 %v2037_v55, %v4799_v56  ;;  %v5616_v55 = vld [vmem:[#allocation54_spill] sm:$0xff] }
 0x445   :  { %v2150_v54 = vpop.f32.mrf.mxu1  ;;  %v2374_v34 = vadd.f32 %v2373_v58, %v2261_v5  ;;  %v5615_v5 = vld [vmem:[#allocation53_spill] sm:$0xff] }
 0x446   :  { %2440 = vmatmul.f32.gmra.mxu0 %v5611_v51  ;;  %v2151_v57 = vadd.f32 %v2150_v54, %v2038_v7 }
 0x447   :  { %v2945_v48 = vmax.f32 %v2374_v34, 0.0  ;;  %2666 = vmatmul.f32.gmra.mxu2 %v5613_v36  ;;  %v5617_v34 = vld [vmem:[#allocation55_spill] sm:$0xff] }
 0x448   :  { %2553 = vmatmul.f32.gmra.mxu1 %v5612_v30  ;;  %2779 = vmatmul.f32.gmra.mxu3 %v5614_v3  ;;  %v5618_v30 = vld [vmem:[#allocation56_spill] sm:$0xff] }
 0x449   :  { %3073 = vst [vmem:[#allocation5 + $0x2d0] sm:$0xff] %v2945_v48 }
 0x44a   :  { %v2263_v14 = vpop.f32.mrf.mxu2 }
 0x44b   :  { %v2376_v63 = vpop.f32.mrf.mxu3  ;;  %v2264_v21 = vadd.f32 %v2263_v14, %v2151_v57  ;;  %v2040_v4 = vpop.f32.mrf.mxu0 }
 0x44c   :  { %v2041_v58 = vadd.f32 %v2040_v4, %v4799_v56  ;;  %v5620_v4 = vld [vmem:[#allocation58_spill] sm:$0xff] }
 0x44d   :  { %v2153_v23 = vpop.f32.mrf.mxu1  ;;  %v2377_v15 = vadd.f32 %v2376_v63, %v2264_v21  ;;  %v5619_v21 = vld [vmem:[#allocation57_spill] sm:$0xff] }
 0x44e   :  { %2443 = vmatmul.f32.gmra.mxu0 %v5615_v5  ;;  %v2154_v48 = vadd.f32 %v2153_v23, %v2041_v58 }
 0x44f   :  { %v2949_v51 = vmax.f32 %v2377_v15, 0.0  ;;  %2669 = vmatmul.f32.gmra.mxu2 %v5617_v34  ;;  %v5621_v15 = vld [vmem:[#allocation59_spill] sm:$0xff] }
 0x450   :  { %2556 = vmatmul.f32.gmra.mxu1 %v5616_v55  ;;  %2782 = vmatmul.f32.gmra.mxu3 %v5618_v30  ;;  %v5622_v55 = vld [vmem:[#allocation60_spill] sm:$0xff] }
 0x451   :  { %3077 = vst [vmem:[#allocation5 + $0x2f0] sm:$0xff] %v2949_v51 }
 0x452   :  { %v2266_v54 = vpop.f32.mrf.mxu2 }
 0x453   :  { %v2379_v7 = vpop.f32.mrf.mxu3  ;;  %v2267_v36 = vadd.f32 %v2266_v54, %v2154_v48  ;;  %v2043_v3 = vpop.f32.mrf.mxu0 }
 0x454   :  { %v2044_v63 = vadd.f32 %v2043_v3, %v4799_v56  ;;  %v5624_v3 = vld [vmem:[#allocation62_spill] sm:$0xff] }
 0x455   :  { %v2156_v57 = vpop.f32.mrf.mxu1  ;;  %v2380_v14 = vadd.f32 %v2379_v7, %v2267_v36  ;;  %v5623_v36 = vld [vmem:[#allocation61_spill] sm:$0xff] }
 0x456   :  { %2446 = vmatmul.f32.gmra.mxu0 %v5619_v21  ;;  %v2157_v51 = vadd.f32 %v2156_v57, %v2044_v63 }
 0x457   :  { %v2953_v5 = vmax.f32 %v2380_v14, 0.0  ;;  %2672 = vmatmul.f32.gmra.mxu2 %v5621_v15  ;;  %v5625_v14 = vld [vmem:[#allocation63_spill] sm:$0xff] }
 0x458   :  { %2559 = vmatmul.f32.gmra.mxu1 %v5620_v4  ;;  %2785 = vmatmul.f32.gmra.mxu3 %v5622_v55  ;;  %v5626_v4 = vld [vmem:[#allocation64_spill] sm:$0xff] }
 0x459   :  { %3081 = vst [vmem:[#allocation5 + $0x310] sm:$0xff] %v2953_v5 }
 0x45a   :  { %v2269_v23 = vpop.f32.mrf.mxu2 }
 0x45b   :  { %v2382_v58 = vpop.f32.mrf.mxu3  ;;  %v2270_v34 = vadd.f32 %v2269_v23, %v2157_v51  ;;  %v2046_v30 = vpop.f32.mrf.mxu0 }
 0x45c   :  { %v2047_v7 = vadd.f32 %v2046_v30, %v4799_v56  ;;  %v5628_v30 = vld [vmem:[#allocation68_spill] sm:$0xff] }
 0x45d   :  { %v2159_v48 = vpop.f32.mrf.mxu1  ;;  %v2383_v54 = vadd.f32 %v2382_v58, %v2270_v34  ;;  %v5627_v34 = vld [vmem:[#allocation67_spill] sm:$0xff] }
 0x45e   :  { %2449 = vmatmul.f32.gmra.mxu0 %v5623_v36  ;;  %v2160_v5 = vadd.f32 %v2159_v48, %v2047_v7 }
 0x45f   :  { %v2957_v21 = vmax.f32 %v2383_v54, 0.0  ;;  %2675 = vmatmul.f32.gmra.mxu2 %v5625_v14  ;;  %v5629_v54 = vld [vmem:[#allocation69_spill] sm:$0xff] }
 0x460   :  { %2562 = vmatmul.f32.gmra.mxu1 %v5624_v3  ;;  %2788 = vmatmul.f32.gmra.mxu3 %v5626_v4  ;;  %v5630_v3 = vld [vmem:[#allocation70_spill] sm:$0xff] }
 0x461   :  { %3085 = vst [vmem:[#allocation5 + $0x330] sm:$0xff] %v2957_v21 }
 0x462   :  { %v2272_v57 = vpop.f32.mrf.mxu2 }
 0x463   :  { %v2385_v63 = vpop.f32.mrf.mxu3  ;;  %v2273_v15 = vadd.f32 %v2272_v57, %v2160_v5  ;;  %v2049_v55 = vpop.f32.mrf.mxu0 }
 0x464   :  { %v2050_v58 = vadd.f32 %v2049_v55, %v4799_v56  ;;  %v5632_v55 = vld [vmem:[#allocation74_spill] sm:$0xff] }
 0x465   :  { %v2162_v51 = vpop.f32.mrf.mxu1  ;;  %v2386_v23 = vadd.f32 %v2385_v63, %v2273_v15  ;;  %v5631_v15 = vld [vmem:[#allocation73_spill] sm:$0xff] }
 0x466   :  { %2452 = vmatmul.f32.gmra.mxu0 %v5627_v34  ;;  %v2163_v21 = vadd.f32 %v2162_v51, %v2050_v58 }
 0x467   :  { %v2961_v36 = vmax.f32 %v2386_v23, 0.0  ;;  %2678 = vmatmul.f32.gmra.mxu2 %v5629_v54  ;;  %v5633_v23 = vld [vmem:[#allocation75_spill] sm:$0xff] }
 0x468   :  { %2565 = vmatmul.f32.gmra.mxu1 %v5628_v30  ;;  %2791 = vmatmul.f32.gmra.mxu3 %v5630_v3  ;;  %v5634_v30 = vld [vmem:[#allocation76_spill] sm:$0xff] }
 0x469   :  { %3089 = vst [vmem:[#allocation5 + $0x350] sm:$0xff] %v2961_v36 }
 0x46a   :  { %v2275_v48 = vpop.f32.mrf.mxu2 }
 0x46b   :  { %v2388_v7 = vpop.f32.mrf.mxu3  ;;  %v2276_v14 = vadd.f32 %v2275_v48, %v2163_v21  ;;  %v2052_v4 = vpop.f32.mrf.mxu0 }
 0x46c   :  { %v2053_v63 = vadd.f32 %v2052_v4, %v4799_v56  ;;  %v5636_v4 = vld [vmem:[#allocation77_spill] sm:$0xff] }
 0x46d   :  { %v2165_v5 = vpop.f32.mrf.mxu1  ;;  %v2389_v57 = vadd.f32 %v2388_v7, %v2276_v14  ;;  %v5635_v14 = vld [vmem:[#allocation13_spill] sm:$0xff] }
 0x46e   :  { %2455 = vmatmul.f32.gmra.mxu0 %v5631_v15  ;;  %v2166_v36 = vadd.f32 %v2165_v5, %v2053_v63 }
 0x46f   :  { %v2965_v34 = vmax.f32 %v2389_v57, 0.0  ;;  %2681 = vmatmul.f32.gmra.mxu2 %v5633_v23  ;;  %v5637_v57 = vld [vmem:[#allocation78_spill] sm:$0xff] }
 0x470   :  { %2568 = vmatmul.f32.gmra.mxu1 %v5632_v55  ;;  %2794 = vmatmul.f32.gmra.mxu3 %v5634_v30  ;;  %v5638_v55 = vld [vmem:[#allocation79_spill] sm:$0xff] }
 0x471   :  { %3093 = vst [vmem:[#allocation5 + $0x370] sm:$0xff] %v2965_v34 }
 0x472   :  { %v2278_v51 = vpop.f32.mrf.mxu2 }
 0x473   :  { %v2391_v58 = vpop.f32.mrf.mxu3  ;;  %v2279_v54 = vadd.f32 %v2278_v51, %v2166_v36  ;;  %v2055_v3 = vpop.f32.mrf.mxu0 }
 0x474   :  { %v2056_v7 = vadd.f32 %v2055_v3, %v4799_v56  ;;  %v5640_v3 = vld [vmem:[#allocation80_spill] sm:$0xff] }
 0x475   :  { %v2168_v21 = vpop.f32.mrf.mxu1  ;;  %v2392_v48 = vadd.f32 %v2391_v58, %v2279_v54  ;;  %v5639_v54 = vld [vmem:[#allocation17_spill] sm:$0xff] }
 0x476   :  { %2458 = vmatmul.f32.gmra.mxu0 %v5635_v14  ;;  %v2169_v34 = vadd.f32 %v2168_v21, %v2056_v7 }
 0x477   :  { %v2969_v15 = vmax.f32 %v2392_v48, 0.0  ;;  %2684 = vmatmul.f32.gmra.mxu2 %v5637_v57  ;;  %v5641_v48 = vld [vmem:[#allocation81_spill] sm:$0xff] }
 0x478   :  { %2571 = vmatmul.f32.gmra.mxu1 %v5636_v4  ;;  %2797 = vmatmul.f32.gmra.mxu3 %v5638_v55  ;;  %v5642_v4 = vld [vmem:[#allocation82_spill] sm:$0xff] }
 0x479   :  { %3097 = vst [vmem:[#allocation5 + $0x390] sm:$0xff] %v2969_v15 }
 0x47a   :  { %v2281_v5 = vpop.f32.mrf.mxu2 }
 0x47b   :  { %v2394_v63 = vpop.f32.mrf.mxu3  ;;  %v2282_v23 = vadd.f32 %v2281_v5, %v2169_v34  ;;  %v2058_v30 = vpop.f32.mrf.mxu0 }
 0x47c   :  { %v2059_v58 = vadd.f32 %v2058_v30, %v4799_v56  ;;  %v5643_v30 = vld [vmem:[#allocation87_spill] sm:$0xff] }
 0x47d   :  { %v2171_v36 = vpop.f32.mrf.mxu1  ;;  %v2395_v51 = vadd.f32 %v2394_v63, %v2282_v23 }
 0x47e   :  { %2461 = vmatmul.f32.gmra.mxu0 %v5639_v54  ;;  %v2172_v15 = vadd.f32 %v2171_v36, %v2059_v58  ;;  %v5644_v36 = vld [vmem:[#allocation90_spill] sm:$0xff] }
 0x47f   :  { %v2973_v14 = vmax.f32 %v2395_v51, 0.0  ;;  %2687 = vmatmul.f32.gmra.mxu2 %v5641_v48  ;;  %v4962_v58 = vperm.slane %v5644_v36, 3 }
 0x480   :  { %2574 = vmatmul.f32.gmra.mxu1 %v5640_v3  ;;  %2800 = vmatmul.f32.gmra.mxu3 %v5642_v4 }
 0x481   :  { %3101 = vst [vmem:[#allocation5 + $0x3b0] sm:$0xff] %v2973_v14 }
 0x482   :  { %v2284_v21 = vpop.f32.mrf.mxu2 }
 0x483   :  { %v2397_v7 = vpop.f32.mrf.mxu3  ;;  %v2285_v57 = vadd.f32 %v2284_v21, %v2172_v15  ;;  %v2061_v55 = vpop.f32.mrf.mxu0  ;;  %v5645_v15 = vld [vmem:[#allocation89_spill] sm:$0xff] }
 0x484   :  { %v2062_v63 = vadd.f32 %v2061_v55, %v4799_v56 }
 0x485   :  { %v2174_v34 = vpop.f32.mrf.mxu1  ;;  %v2398_v5 = vadd.f32 %v2397_v7, %v2285_v57 }
 0x486   :  { %2464 = vmatmul.f32.gmra.mxu0 %v5560_v26  ;;  %v2175_v51 = vadd.f32 %v2174_v34, %v2062_v63 }
 0x487   :  { %v2977_v23 = vmax.f32 %v2398_v5, 0.0  ;;  %2690 = vmatmul.f32.gmra.mxu2 %v5562_v37 }
 0x488   :  { %2577 = vmatmul.f32.gmra.mxu1 %v5561_v62  ;;  %2803 = vmatmul.f32.gmra.mxu3 %v5643_v30 }
 0x489   :  { %3105 = vst [vmem:[#allocation5 + $0x3d0] sm:$0xff] %v2977_v23 }
 0x48a   :  { %v2287_v54 = vpop.f32.mrf.mxu2 }
 0x48b   :  { %v2400_v3 = vpop.f32.mrf.mxu3  ;;  %v2288_v14 = vadd.f32 %v2287_v54, %v2175_v51  ;;  %v2420_v48 = vpop.f32.mrf.mxu0 }
 0x48c   :  { %v2421_v26 = vadd.f32 %v2420_v48, %v4962_v58 }
 0x48d   :  { %v2533_v4 = vpop.f32.mrf.mxu1  ;;  %v2401_v56 = vadd.f32 %v2400_v3, %v2288_v14 }
 0x48e   :  { %2467 = vmatmul.f32.gmra.mxu0 %v5645_v15  ;;  %v2534_v37 = vadd.f32 %v2533_v4, %v2421_v26 }
 0x48f   :  { %v2981_v62 = vmax.f32 %v2401_v56, 0.0  ;;  %2693 = vmatmul.f32.gmra.mxu2 %v5484_v60 }
 0x490   :  { %2580 = vmatmul.f32.gmra.mxu1 %v5483_v16  ;;  %2806 = vmatmul.f32.gmra.mxu3 %v5485_v28 }
 0x491   :  { %3109 = vst [vmem:[#allocation5 + $0x3f0] sm:$0xff] %v2981_v62 }
 0x492   :  { %v2646_v21 = vpop.f32.mrf.mxu2 }
 0x493   :  { %v2759_v7 = vpop.f32.mrf.mxu3  ;;  %v2647_v57 = vadd.f32 %v2646_v21, %v2534_v37  ;;  %v2423_v55 = vpop.f32.mrf.mxu0 }
 0x494   :  { %v2424_v63 = vadd.f32 %v2423_v55, %v4962_v58 }
 0x495   :  { %v2536_v34 = vpop.f32.mrf.mxu1  ;;  %v2760_v5 = vadd.f32 %v2759_v7, %v2647_v57 }
 0x496   :  { %2470 = vmatmul.f32.gmra.mxu0 %v4241_v50  ;;  %v2537_v28 = vadd.f32 %v2536_v34, %v2424_v63 }
 0x497   :  { %v2858_v16 = vmax.f32 %v2760_v5, 0.0  ;;  %2696 = vmatmul.f32.gmra.mxu2 %v4245_v43 }
 0x498   :  { %2583 = vmatmul.f32.gmra.mxu1 %v4243_v0  ;;  %2809 = vmatmul.f32.gmra.mxu3 %v4247_v35 }
 0x499   :  { %2986 = vst [vmem:[#allocation5 + $0x18] sm:$0xff] %v2858_v16 }
 0x49a   :  { %v2649_v60 = vpop.f32.mrf.mxu2 }
 0x49b   :  { %v2762_v23 = vpop.f32.mrf.mxu3  ;;  %v2650_v30 = vadd.f32 %v2649_v60, %v2537_v28  ;;  %v2426_v51 = vpop.f32.mrf.mxu0 }
 0x49c   :  { %v2427_v3 = vadd.f32 %v2426_v51, %v4962_v58 }
 0x49d   :  { %v2539_v36 = vpop.f32.mrf.mxu1  ;;  %v2763_v54 = vadd.f32 %v2762_v23, %v2650_v30 }
 0x49e   :  { %2473 = vmatmul.f32.gmra.mxu0 %v4262_v20  ;;  %v2540_v35 = vadd.f32 %v2539_v36, %v2427_v3 }
 0x49f   :  { %v2862_v50 = vmax.f32 %v2763_v54, 0.0  ;;  %2699 = vmatmul.f32.gmra.mxu2 %v4266_v11 }
 0x4a0   :  { %2586 = vmatmul.f32.gmra.mxu1 %v4264_v10  ;;  %2812 = vmatmul.f32.gmra.mxu3 %v4268_v22 }
 0x4a1   :  { %2990 = vst [vmem:[#allocation5 + $0x38] sm:$0xff] %v2862_v50 }
 0x4a2   :  { %v2652_v0 = vpop.f32.mrf.mxu2 }
 0x4a3   :  { %v2765_v43 = vpop.f32.mrf.mxu3  ;;  %v2653_v14 = vadd.f32 %v2652_v0, %v2540_v35  ;;  %v2429_v48 = vpop.f32.mrf.mxu0 }
 0x4a4   :  { %v2430_v26 = vadd.f32 %v2429_v48, %v4962_v58 }
 0x4a5   :  { %v2542_v4 = vpop.f32.mrf.mxu1  ;;  %v2766_v56 = vadd.f32 %v2765_v43, %v2653_v14 }
 0x4a6   :  { %2476 = vmatmul.f32.gmra.mxu0 %v4283_v13  ;;  %v2543_v10 = vadd.f32 %v2542_v4, %v2430_v26 }
 0x4a7   :  { %v2866_v20 = vmax.f32 %v2766_v56, 0.0  ;;  %2702 = vmatmul.f32.gmra.mxu2 %v4287_v29 }
 0x4a8   :  { %2589 = vmatmul.f32.gmra.mxu1 %v4285_v19  ;;  %2815 = vmatmul.f32.gmra.mxu3 %v4289_v42 }
 0x4a9   :  { %2994 = vst [vmem:[#allocation5 + $0x58] sm:$0xff] %v2866_v20 }
 0x4aa   :  { %v2655_v11 = vpop.f32.mrf.mxu2 }
 0x4ab   :  { %v2768_v22 = vpop.f32.mrf.mxu3  ;;  %v2656_v15 = vadd.f32 %v2655_v11, %v2543_v10  ;;  %v2432_v62 = vpop.f32.mrf.mxu0 }
 0x4ac   :  { %v2433_v7 = vadd.f32 %v2432_v62, %v4962_v58  ;;  %v5650_v62 = vld [vmem:[#allocation98_spill] sm:$0xff] }
 0x4ad   :  { %v2545_v37 = vpop.f32.mrf.mxu1  ;;  %v2769_v21 = vadd.f32 %v2768_v22, %v2656_v15  ;;  %v5648_v15 = vld [vmem:[#allocation95_spill] sm:$0xff] }
 0x4ae   :  { %2479 = vmatmul.f32.gmra.mxu0 %v4304_v18  ;;  %v2546_v19 = vadd.f32 %v2545_v37, %v2433_v7 }
 0x4af   :  { %v2870_v13 = vmax.f32 %v2769_v21, 0.0  ;;  %2705 = vmatmul.f32.gmra.mxu2 %v4308_v25 }
 0x4b0   :  { %2592 = vmatmul.f32.gmra.mxu1 %v4306_v24  ;;  %2818 = vmatmul.f32.gmra.mxu3 %v4310_v40 }
 0x4b1   :  { %2998 = vst [vmem:[#allocation5 + $0x78] sm:$0xff] %v2870_v13 }
 0x4b2   :  { %v2658_v29 = vpop.f32.mrf.mxu2 }
 0x4b3   :  { %v2771_v42 = vpop.f32.mrf.mxu3  ;;  %v2659_v57 = vadd.f32 %v2658_v29, %v2546_v19  ;;  %v2435_v55 = vpop.f32.mrf.mxu0 }
 0x4b4   :  { %v2436_v63 = vadd.f32 %v2435_v55, %v4962_v58  ;;  %v5651_v55 = vld [vmem:[#allocation99_spill] sm:$0xff] }
 0x4b5   :  { %v2548_v34 = vpop.f32.mrf.mxu1  ;;  %v2772_v5 = vadd.f32 %v2771_v42, %v2659_v57 }
 0x4b6   :  { %2482 = vmatmul.f32.gmra.mxu0 %v4325_v27  ;;  %v2549_v24 = vadd.f32 %v2548_v34, %v2436_v63  ;;  %v5652_v34 = vld [vmem:[#allocation101_spill] sm:$0xff] }
 0x4b7   :  { %v2874_v18 = vmax.f32 %v2772_v5, 0.0  ;;  %2708 = vmatmul.f32.gmra.mxu2 %v4329_v17  ;;  %v5653_v5 = vld [vmem:[#allocation102_spill] sm:$0xff] }
 0x4b8   :  { %2595 = vmatmul.f32.gmra.mxu1 %v4327_v33  ;;  %2821 = vmatmul.f32.gmra.mxu3 %v4331_v1 }
 0x4b9   :  { %3002 = vst [vmem:[#allocation5 + $0x98] sm:$0xff] %v2874_v18 }
 0x4ba   :  { %v2661_v25 = vpop.f32.mrf.mxu2 }
 0x4bb   :  { %v2774_v40 = vpop.f32.mrf.mxu3  ;;  %v2662_v16 = vadd.f32 %v2661_v25, %v2549_v24  ;;  %v2438_v28 = vpop.f32.mrf.mxu0 }
 0x4bc   :  { %v2439_v30 = vadd.f32 %v2438_v28, %v4962_v58 }
 0x4bd   :  { %v2551_v60 = vpop.f32.mrf.mxu1  ;;  %v2775_v23 = vadd.f32 %v2774_v40, %v2662_v16 }
 0x4be   :  { %2485 = vmatmul.f32.gmra.mxu0 %v4346_v32  ;;  %v2552_v33 = vadd.f32 %v2551_v60, %v2439_v30  ;;  %v5655_v30 = vld [vmem:[#allocation66_spill] sm:$0xff] }
 0x4bf   :  { %v2878_v27 = vmax.f32 %v2775_v23, 0.0  ;;  %2711 = vmatmul.f32.gmra.mxu2 %v4350_v39  ;;  %v5654_v23 = vld [vmem:[#allocation65_spill] sm:$0xff] }
 0x4c0   :  { %2598 = vmatmul.f32.gmra.mxu1 %v4348_v38  ;;  %2824 = vmatmul.f32.gmra.mxu3 %v4352_v8 }
 0x4c1   :  { %3006 = vst [vmem:[#allocation5 + $0xb8] sm:$0xff] %v2878_v27  ;;  %v5656_v27 = vld [vmem:[#allocation8_spill] sm:$0xff] }
 0x4c2   :  { %v2664_v17 = vpop.f32.mrf.mxu2 }
 0x4c3   :  { %v2777_v1 = vpop.f32.mrf.mxu3  ;;  %v2665_v51 = vadd.f32 %v2664_v17, %v2552_v33  ;;  %v2441_v36 = vpop.f32.mrf.mxu0  ;;  %v5657_v33 = vld [vmem:[#allocation9_spill] sm:$0xff] }
 0x4c4   :  { %v2442_v50 = vadd.f32 %v2441_v36, %v4962_v58 }
 0x4c5   :  { %v2554_v54 = vpop.f32.mrf.mxu1  ;;  %v2778_v3 = vadd.f32 %v2777_v1, %v2665_v51 }
 0x4c6   :  { %2488 = vmatmul.f32.gmra.mxu0 %v4367_v41  ;;  %v2555_v38 = vadd.f32 %v2554_v54, %v2442_v50 }
 0x4c7   :  { %v2882_v32 = vmax.f32 %v2778_v3, 0.0  ;;  %2714 = vmatmul.f32.gmra.mxu2 %v4371_v31  ;;  %v5647_v31 = vld [vmem:[#allocation94_spill] sm:$0xff] }
 0x4c8   :  { %2601 = vmatmul.f32.gmra.mxu1 %v4369_v47  ;;  %2827 = vmatmul.f32.gmra.mxu3 %v4373_v12  ;;  %v5646_v47 = vld [vmem:[#allocation93_spill] sm:$0xff] }
 0x4c9   :  { %3010 = vst [vmem:[#allocation5 + $0xd8] sm:$0xff] %v2882_v32 }
 0x4ca   :  { %v2667_v39 = vpop.f32.mrf.mxu2 }
 0x4cb   :  { %v2780_v8 = vpop.f32.mrf.mxu3  ;;  %v2668_v35 = vadd.f32 %v2667_v39, %v2555_v38  ;;  %v2444_v0 = vpop.f32.mrf.mxu0  ;;  %v5658_v39 = vld [vmem:[#allocation10_spill] sm:$0xff] }
 0x4cc   :  { %v2445_v48 = vadd.f32 %v2444_v0, %v4962_v58 }
 0x4cd   :  { %v2557_v43 = vpop.f32.mrf.mxu1  ;;  %v2781_v14 = vadd.f32 %v2780_v8, %v2668_v35  ;;  %v5659_v8 = vld [vmem:[#allocation103_spill] sm:$0xff] }
 0x4ce   :  { %2491 = vmatmul.f32.gmra.mxu0 %v4388_v46  ;;  %v2558_v12 = vadd.f32 %v2557_v43, %v2445_v48 }
 0x4cf   :  { %v2886_v41 = vmax.f32 %v2781_v14, 0.0  ;;  %2717 = vmatmul.f32.gmra.mxu2 %v5646_v47 }
 0x4d0   :  { %2604 = vmatmul.f32.gmra.mxu1 %v4390_v52  ;;  %2830 = vmatmul.f32.gmra.mxu3 %v5647_v31  ;;  %v5649_v52 = vld [vmem:[#allocation97_spill] sm:$0xff] }
 0x4d1   :  { %3014 = vst [vmem:[#allocation5 + $0xf8] sm:$0xff] %v2886_v41 }
 0x4d2   :  { %v2670_v4 = vpop.f32.mrf.mxu2 }
 0x4d3   :  { %v2783_v56 = vpop.f32.mrf.mxu3  ;;  %v2671_v26 = vadd.f32 %v2670_v4, %v2558_v12  ;;  %v2447_v20 = vpop.f32.mrf.mxu0 }
 0x4d4   :  { %v2448_v22 = vadd.f32 %v2447_v20, %v4962_v58 }
 0x4d5   :  { %v2560_v10 = vpop.f32.mrf.mxu1  ;;  %v2784_v11 = vadd.f32 %v2783_v56, %v2671_v26 }
 0x4d6   :  { %2494 = vmatmul.f32.gmra.mxu0 %v5648_v15  ;;  %v2561_v37 = vadd.f32 %v2560_v10, %v2448_v22 }
 0x4d7   :  { %v2890_v46 = vmax.f32 %v2784_v11, 0.0  ;;  %2720 = vmatmul.f32.gmra.mxu2 %v5649_v52 }
 0x4d8   :  { %2607 = vmatmul.f32.gmra.mxu1 %v5566_v53  ;;  %2833 = vmatmul.f32.gmra.mxu3 %v5650_v62 }
 0x4d9   :  { %3018 = vst [vmem:[#allocation5 + $0x118] sm:$0xff] %v2890_v46 }
 0x4da   :  { %v2673_v21 = vpop.f32.mrf.mxu2 }
 0x4db   :  { %v2786_v7 = vpop.f32.mrf.mxu3  ;;  %v2674_v13 = vadd.f32 %v2673_v21, %v2561_v37  ;;  %v2450_v19 = vpop.f32.mrf.mxu0 }
 0x4dc   :  { %v2451_v57 = vadd.f32 %v2450_v19, %v4962_v58  ;;  %v5663_v19 = vld [vmem:[#allocation19_spill] sm:$0xff] }
 0x4dd   :  { %v2563_v29 = vpop.f32.mrf.mxu1  ;;  %v2787_v42 = vadd.f32 %v2786_v7, %v2674_v13 }
 0x4de   :  { %2497 = vmatmul.f32.gmra.mxu0 %v5651_v55  ;;  %v2564_v63 = vadd.f32 %v2563_v29, %v2451_v57  ;;  %v5665_v29 = vld [vmem:[#allocation20_spill] sm:$0xff] }
 0x4df   :  { %v2894_v53 = vmax.f32 %v2787_v42, 0.0  ;;  %2723 = vmatmul.f32.gmra.mxu2 %v5652_v34  ;;  %v5666_v42 = vld [vmem:[#allocation88_spill] sm:$0xff] }
 0x4e0   :  { %2610 = vmatmul.f32.gmra.mxu1 %v5487_v61  ;;  %2836 = vmatmul.f32.gmra.mxu3 %v5653_v5 }
 0x4e1   :  { %3022 = vst [vmem:[#allocation5 + $0x138] sm:$0xff] %v2894_v53 }
 0x4e2   :  { %v2676_v18 = vpop.f32.mrf.mxu2 }
 0x4e3   :  { %v2789_v24 = vpop.f32.mrf.mxu3  ;;  %v2677_v25 = vadd.f32 %v2676_v18, %v2564_v63  ;;  %v2453_v40 = vpop.f32.mrf.mxu0 }
 0x4e4   :  { %v2454_v60 = vadd.f32 %v2453_v40, %v4962_v58 }
 0x4e5   :  { %v2566_v16 = vpop.f32.mrf.mxu1  ;;  %v2790_v28 = vadd.f32 %v2789_v24, %v2677_v25 }
 0x4e6   :  { %2500 = vmatmul.f32.gmra.mxu0 %v5654_v23  ;;  %v2567_v17 = vadd.f32 %v2566_v16, %v2454_v60 }
 0x4e7   :  { %v2898_v61 = vmax.f32 %v2790_v28, 0.0  ;;  %2726 = vmatmul.f32.gmra.mxu2 %v5656_v27 }
 0x4e8   :  { %2613 = vmatmul.f32.gmra.mxu1 %v5655_v30  ;;  %2839 = vmatmul.f32.gmra.mxu3 %v5657_v33 }
 0x4e9   :  { %3026 = vst [vmem:[#allocation5 + $0x158] sm:$0xff] %v2898_v61 }
 0x4ea   :  { %v2679_v1 = vpop.f32.mrf.mxu2 }
 0x4eb   :  { %v2792_v51 = vpop.f32.mrf.mxu3  ;;  %v2680_v36 = vadd.f32 %v2679_v1, %v2567_v17  ;;  %v2456_v54 = vpop.f32.mrf.mxu0 }
 0x4ec   :  { %v2457_v32 = vadd.f32 %v2456_v54, %v4962_v58 }
 0x4ed   :  { %v2569_v3 = vpop.f32.mrf.mxu1  ;;  %v2793_v50 = vadd.f32 %v2792_v51, %v2680_v36 }
 0x4ee   :  { %2503 = vmatmul.f32.gmra.mxu0 %v5575_v44  ;;  %v2570_v35 = vadd.f32 %v2569_v3, %v2457_v32  ;;  %v5660_v44 = vld [vmem:[#allocation14_spill] sm:$0xff] }
 0x4ef   :  { %v2902_v38 = vmax.f32 %v2793_v50, 0.0  ;;  %2729 = vmatmul.f32.gmra.mxu2 %v5658_v39 }
 0x4f0   :  { %2616 = vmatmul.f32.gmra.mxu1 %v5493_v45  ;;  %2842 = vmatmul.f32.gmra.mxu3 %v5659_v8 }
 0x4f1   :  { %3030 = vst [vmem:[#allocation5 + $0x178] sm:$0xff] %v2902_v38 }
 0x4f2   :  { %v2682_v0 = vpop.f32.mrf.mxu2 }
 0x4f3   :  { %v2795_v43 = vpop.f32.mrf.mxu3  ;;  %v2683_v14 = vadd.f32 %v2682_v0, %v2570_v35  ;;  %v2459_v48 = vpop.f32.mrf.mxu0 }
 0x4f4   :  { %v2460_v31 = vadd.f32 %v2459_v48, %v4962_v58 }
 0x4f5   :  { %v2572_v41 = vpop.f32.mrf.mxu1  ;;  %v2796_v47 = vadd.f32 %v2795_v43, %v2683_v14 }
 0x4f6   :  { %2506 = vmatmul.f32.gmra.mxu0 %v4493_v59  ;;  %v2573_v12 = vadd.f32 %v2572_v41, %v2460_v31 }
 0x4f7   :  { %v2906_v45 = vmax.f32 %v2796_v47, 0.0  ;;  %2732 = vmatmul.f32.gmra.mxu2 %v5578_v49  ;;  %v5662_v49 = vld [vmem:[#allocation18_spill] sm:$0xff] }
 0x4f8   :  { %2619 = vmatmul.f32.gmra.mxu1 %v5496_v2  ;;  %2845 = vmatmul.f32.gmra.mxu3 %v5660_v44  ;;  %v5661_v2 = vld [vmem:[#allocation16_spill] sm:$0xff] }
 0x4f9   :  { %3034 = vst [vmem:[#allocation5 + $0x198] sm:$0xff] %v2906_v45 }
 0x4fa   :  { %v2685_v4 = vpop.f32.mrf.mxu2 }
 0x4fb   :  { %v2798_v56 = vpop.f32.mrf.mxu3  ;;  %v2686_v26 = vadd.f32 %v2685_v4, %v2573_v12  ;;  %v2462_v20 = vpop.f32.mrf.mxu0 }
 0x4fc   :  { %v2463_v22 = vadd.f32 %v2462_v20, %v4962_v58 }
 0x4fd   :  { %v2575_v10 = vpop.f32.mrf.mxu1  ;;  %v2799_v11 = vadd.f32 %v2798_v56, %v2686_v26 }
 0x4fe   :  { %2509 = vmatmul.f32.gmra.mxu0 %v5580_v9  ;;  %v2576_v15 = vadd.f32 %v2575_v10, %v2463_v22  ;;  %v5664_v9 = vld [vmem:[#allocation83_spill] sm:$0xff] }
 0x4ff   :  { %v2910_v59 = vmax.f32 %v2799_v11, 0.0  ;;  %2735 = vmatmul.f32.gmra.mxu2 %v5661_v2 }
 0x500   :  { %2622 = vmatmul.f32.gmra.mxu1 %v4516_v6  ;;  %2848 = vmatmul.f32.gmra.mxu3 %v5662_v49 }
 0x501   :  { %3038 = vst [vmem:[#allocation5 + $0x1b8] sm:$0xff] %v2910_v59 }
 0x502   :  { %v2688_v46 = vpop.f32.mrf.mxu2 }
 0x503   :  { %v2801_v52 = vpop.f32.mrf.mxu3  ;;  %v2689_v62 = vadd.f32 %v2688_v46, %v2576_v15  ;;  %v2465_v37 = vpop.f32.mrf.mxu0 }
 0x504   :  { %v2466_v13 = vadd.f32 %v2465_v37, %v4962_v58 }
 0x505   :  { %v2578_v21 = vpop.f32.mrf.mxu1  ;;  %v2802_v7 = vadd.f32 %v2801_v52, %v2689_v62 }
 0x506   :  { %2512 = vmatmul.f32.gmra.mxu0 %v5663_v19  ;;  %v2579_v57 = vadd.f32 %v2578_v21, %v2466_v13 }
 0x507   :  { %v2914_v6 = vmax.f32 %v2802_v7, 0.0  ;;  %2738 = vmatmul.f32.gmra.mxu2 %v5665_v29 }
 0x508   :  { %2625 = vmatmul.f32.gmra.mxu1 %v5664_v9  ;;  %2851 = vmatmul.f32.gmra.mxu3 %v5666_v42 }
 0x509   :  { %3042 = vst [vmem:[#allocation5 + $0x1d8] sm:$0xff] %v2914_v6 }
 0x50a   :  { %v2691_v55 = vpop.f32.mrf.mxu2 }
 0x50b   :  { %v2804_v53 = vpop.f32.mrf.mxu3  ;;  %v2692_v34 = vadd.f32 %v2691_v55, %v2579_v57  ;;  %v2468_v5 = vpop.f32.mrf.mxu0 }
 0x50c   :  { %v2469_v24 = vadd.f32 %v2468_v5, %v4962_v58 }
 0x50d   :  { %v2581_v63 = vpop.f32.mrf.mxu1  ;;  %v2805_v18 = vadd.f32 %v2804_v53, %v2692_v34 }
 0x50e   :  { %v2582_v40 = vadd.f32 %v2581_v63, %v2469_v24 }
 0x50f   :  { %v2918_v25 = vmax.f32 %v2805_v18, 0.0 }
 0x511   :  { %3046 = vst [vmem:[#allocation5 + $0x1f8] sm:$0xff] %v2918_v25 }
 0x512   :  { %v2694_v16 = vpop.f32.mrf.mxu2 }
 0x513   :  { %v2807_v28 = vpop.f32.mrf.mxu3  ;;  %v2695_v60 = vadd.f32 %v2694_v16, %v2582_v40  ;;  %v2471_v23 = vpop.f32.mrf.mxu0 }
 0x514   :  { %v2472_v27 = vadd.f32 %v2471_v23, %v4962_v58 }
 0x515   :  { %v2584_v30 = vpop.f32.mrf.mxu1  ;;  %v2808_v61 = vadd.f32 %v2807_v28, %v2695_v60 }
 0x516   :  { %v2585_v17 = vadd.f32 %v2584_v30, %v2472_v27 }
 0x517   :  { %v2922_v33 = vmax.f32 %v2808_v61, 0.0 }
 0x519   :  { %3050 = vst [vmem:[#allocation5 + $0x218] sm:$0xff] %v2922_v33 }
 0x51a   :  { %v2697_v1 = vpop.f32.mrf.mxu2 }
 0x51b   :  { %v2810_v51 = vpop.f32.mrf.mxu3  ;;  %v2698_v36 = vadd.f32 %v2697_v1, %v2585_v17  ;;  %v2474_v54 = vpop.f32.mrf.mxu0 }
 0x51c   :  { %v2475_v32 = vadd.f32 %v2474_v54, %v4962_v58 }
 0x51d   :  { %v2587_v3 = vpop.f32.mrf.mxu1  ;;  %v2811_v50 = vadd.f32 %v2810_v51, %v2698_v36 }
 0x51e   :  { %v2588_v39 = vadd.f32 %v2587_v3, %v2475_v32 }
 0x51f   :  { %v2926_v38 = vmax.f32 %v2811_v50, 0.0 }
 0x521   :  { %3054 = vst [vmem:[#allocation5 + $0x238] sm:$0xff] %v2926_v38 }
 0x522   :  { %v2700_v8 = vpop.f32.mrf.mxu2 }
 0x523   :  { %v2813_v35 = vpop.f32.mrf.mxu3  ;;  %v2701_v0 = vadd.f32 %v2700_v8, %v2588_v39  ;;  %v2477_v43 = vpop.f32.mrf.mxu0 }
 0x524   :  { %v2478_v41 = vadd.f32 %v2477_v43, %v4962_v58 }
 0x525   :  { %v2590_v14 = vpop.f32.mrf.mxu1  ;;  %v2814_v48 = vadd.f32 %v2813_v35, %v2701_v0 }
 0x526   :  { %v2591_v31 = vadd.f32 %v2590_v14, %v2478_v41 }
 0x527   :  { %v2930_v47 = vmax.f32 %v2814_v48, 0.0 }
 0x529   :  { %3058 = vst [vmem:[#allocation5 + $0x258] sm:$0xff] %v2930_v47 }
 0x52a   :  { %v2703_v45 = vpop.f32.mrf.mxu2 }
 0x52b   :  { %v2816_v44 = vpop.f32.mrf.mxu3  ;;  %v2704_v12 = vadd.f32 %v2703_v45, %v2591_v31  ;;  %v2480_v4 = vpop.f32.mrf.mxu0 }
 0x52c   :  { %v2481_v20 = vadd.f32 %v2480_v4, %v4962_v58 }
 0x52d   :  { %v2593_v56 = vpop.f32.mrf.mxu1  ;;  %v2817_v26 = vadd.f32 %v2816_v44, %v2704_v12 }
 0x52e   :  { %v2594_v11 = vadd.f32 %v2593_v56, %v2481_v20 }
 0x52f   :  { %v2934_v10 = vmax.f32 %v2817_v26, 0.0 }
 0x531   :  { %3062 = vst [vmem:[#allocation5 + $0x278] sm:$0xff] %v2934_v10 }
 0x532   :  { %v2706_v22 = vpop.f32.mrf.mxu2 }
 0x533   :  { %v2819_v59 = vpop.f32.mrf.mxu3  ;;  %v2707_v2 = vadd.f32 %v2706_v22, %v2594_v11  ;;  %v2483_v49 = vpop.f32.mrf.mxu0 }
 0x534   :  { %v2484_v52 = vadd.f32 %v2483_v49, %v4962_v58 }
 0x535   :  { %v2596_v15 = vpop.f32.mrf.mxu1  ;;  %v2820_v46 = vadd.f32 %v2819_v59, %v2707_v2 }
 0x536   :  { %v2597_v37 = vadd.f32 %v2596_v15, %v2484_v52 }
 0x537   :  { %v2938_v62 = vmax.f32 %v2820_v46, 0.0 }
 0x539   :  { %3066 = vst [vmem:[#allocation5 + $0x298] sm:$0xff] %v2938_v62 }
 0x53a   :  { %v2709_v21 = vpop.f32.mrf.mxu2 }
 0x53b   :  { %v2822_v7 = vpop.f32.mrf.mxu3  ;;  %v2710_v13 = vadd.f32 %v2709_v21, %v2597_v37  ;;  %v2486_v19 = vpop.f32.mrf.mxu0 }
 0x53c   :  { %v2487_v29 = vadd.f32 %v2486_v19, %v4962_v58 }
 0x53d   :  { %v2599_v9 = vpop.f32.mrf.mxu1  ;;  %v2823_v6 = vadd.f32 %v2822_v7, %v2710_v13 }
 0x53e   :  { %v2600_v57 = vadd.f32 %v2599_v9, %v2487_v29 }
 0x53f   :  { %v2942_v42 = vmax.f32 %v2823_v6, 0.0 }
 0x541   :  { %3070 = vst [vmem:[#allocation5 + $0x2b8] sm:$0xff] %v2942_v42 }
 0x542   :  { %v2712_v55 = vpop.f32.mrf.mxu2 }
 0x543   :  { %v2825_v53 = vpop.f32.mrf.mxu3  ;;  %v2713_v34 = vadd.f32 %v2712_v55, %v2600_v57  ;;  %v2489_v5 = vpop.f32.mrf.mxu0 }
 0x544   :  { %v2490_v24 = vadd.f32 %v2489_v5, %v4962_v58 }
 0x545   :  { %v2602_v63 = vpop.f32.mrf.mxu1  ;;  %v2826_v18 = vadd.f32 %v2825_v53, %v2713_v34 }
 0x546   :  { %v2603_v40 = vadd.f32 %v2602_v63, %v2490_v24 }
 0x547   :  { %v2946_v25 = vmax.f32 %v2826_v18, 0.0 }
 0x549   :  { %3074 = vst [vmem:[#allocation5 + $0x2d8] sm:$0xff] %v2946_v25 }
 0x54a   :  { %v2715_v16 = vpop.f32.mrf.mxu2 }
 0x54b   :  { %v2828_v28 = vpop.f32.mrf.mxu3  ;;  %v2716_v60 = vadd.f32 %v2715_v16, %v2603_v40  ;;  %v2492_v23 = vpop.f32.mrf.mxu0 }
 0x54c   :  { %v2493_v27 = vadd.f32 %v2492_v23, %v4962_v58 }
 0x54d   :  { %v2605_v30 = vpop.f32.mrf.mxu1  ;;  %v2829_v61 = vadd.f32 %v2828_v28, %v2716_v60 }
 0x54e   :  { %v2606_v17 = vadd.f32 %v2605_v30, %v2493_v27 }
 0x54f   :  { %v2950_v33 = vmax.f32 %v2829_v61, 0.0 }
 0x551   :  { %3078 = vst [vmem:[#allocation5 + $0x2f8] sm:$0xff] %v2950_v33 }
 0x552   :  { %v2718_v1 = vpop.f32.mrf.mxu2 }
 0x553   :  { %v2831_v51 = vpop.f32.mrf.mxu3  ;;  %v2719_v36 = vadd.f32 %v2718_v1, %v2606_v17  ;;  %v2495_v54 = vpop.f32.mrf.mxu0 }
 0x554   :  { %v2496_v32 = vadd.f32 %v2495_v54, %v4962_v58 }
 0x555   :  { %v2608_v3 = vpop.f32.mrf.mxu1  ;;  %v2832_v50 = vadd.f32 %v2831_v51, %v2719_v36 }
 0x556   :  { %v2609_v39 = vadd.f32 %v2608_v3, %v2496_v32 }
 0x557   :  { %v2954_v38 = vmax.f32 %v2832_v50, 0.0 }
 0x559   :  { %3082 = vst [vmem:[#allocation5 + $0x318] sm:$0xff] %v2954_v38 }
 0x55a   :  { %v2721_v8 = vpop.f32.mrf.mxu2 }
 0x55b   :  { %v2834_v35 = vpop.f32.mrf.mxu3  ;;  %v2722_v0 = vadd.f32 %v2721_v8, %v2609_v39  ;;  %v2498_v43 = vpop.f32.mrf.mxu0 }
 0x55c   :  { %v2499_v41 = vadd.f32 %v2498_v43, %v4962_v58 }
 0x55d   :  { %v2611_v14 = vpop.f32.mrf.mxu1  ;;  %v2835_v48 = vadd.f32 %v2834_v35, %v2722_v0 }
 0x55e   :  { %v2612_v31 = vadd.f32 %v2611_v14, %v2499_v41 }
 0x55f   :  { %v2958_v47 = vmax.f32 %v2835_v48, 0.0 }
 0x561   :  { %3086 = vst [vmem:[#allocation5 + $0x338] sm:$0xff] %v2958_v47 }
 0x562   :  { %v2724_v45 = vpop.f32.mrf.mxu2 }
 0x563   :  { %v2837_v44 = vpop.f32.mrf.mxu3  ;;  %v2725_v12 = vadd.f32 %v2724_v45, %v2612_v31  ;;  %v2501_v4 = vpop.f32.mrf.mxu0 }
 0x564   :  { %v2502_v20 = vadd.f32 %v2501_v4, %v4962_v58 }
 0x565   :  { %v2614_v56 = vpop.f32.mrf.mxu1  ;;  %v2838_v26 = vadd.f32 %v2837_v44, %v2725_v12 }
 0x566   :  { %v2615_v11 = vadd.f32 %v2614_v56, %v2502_v20 }
 0x567   :  { %v2962_v10 = vmax.f32 %v2838_v26, 0.0 }
 0x569   :  { %3090 = vst [vmem:[#allocation5 + $0x358] sm:$0xff] %v2962_v10 }
 0x56a   :  { %v2727_v22 = vpop.f32.mrf.mxu2 }
 0x56b   :  { %v2840_v59 = vpop.f32.mrf.mxu3  ;;  %v2728_v2 = vadd.f32 %v2727_v22, %v2615_v11  ;;  %v2504_v49 = vpop.f32.mrf.mxu0 }
 0x56c   :  { %v2505_v52 = vadd.f32 %v2504_v49, %v4962_v58 }
 0x56d   :  { %v2617_v15 = vpop.f32.mrf.mxu1  ;;  %v2841_v46 = vadd.f32 %v2840_v59, %v2728_v2 }
 0x56e   :  { %v2618_v37 = vadd.f32 %v2617_v15, %v2505_v52 }
 0x56f   :  { %v2966_v62 = vmax.f32 %v2841_v46, 0.0 }
 0x571   :  { %3094 = vst [vmem:[#allocation5 + $0x378] sm:$0xff] %v2966_v62 }
 0x572   :  { %v2730_v21 = vpop.f32.mrf.mxu2 }
 0x573   :  { %v2843_v7 = vpop.f32.mrf.mxu3  ;;  %v2731_v13 = vadd.f32 %v2730_v21, %v2618_v37  ;;  %v2507_v19 = vpop.f32.mrf.mxu0 }
 0x574   :  { %v2508_v29 = vadd.f32 %v2507_v19, %v4962_v58 }
 0x575   :  { %v2620_v9 = vpop.f32.mrf.mxu1  ;;  %v2844_v6 = vadd.f32 %v2843_v7, %v2731_v13 }
 0x576   :  { %v2621_v57 = vadd.f32 %v2620_v9, %v2508_v29 }
 0x577   :  { %v2970_v42 = vmax.f32 %v2844_v6, 0.0 }
 0x579   :  { %3098 = vst [vmem:[#allocation5 + $0x398] sm:$0xff] %v2970_v42 }
 0x57a   :  { %v2733_v55 = vpop.f32.mrf.mxu2 }
 0x57b   :  { %v2846_v53 = vpop.f32.mrf.mxu3  ;;  %v2734_v34 = vadd.f32 %v2733_v55, %v2621_v57  ;;  %v2510_v5 = vpop.f32.mrf.mxu0 }
 0x57c   :  { %v2511_v18 = vadd.f32 %v2510_v5, %v4962_v58 }
 0x57d   :  { %v2847_v63 = vadd.f32 %v2846_v53, %v2734_v34  ;;  %v2623_v24 = vpop.f32.mrf.mxu1 }
 0x57e   :  { %v2624_v40 = vadd.f32 %v2623_v24, %v2511_v18 }
 0x57f   :  { %v2974_v25 = vmax.f32 %v2847_v63, 0.0 }
 0x581   :  { %3102 = vst [vmem:[#allocation5 + $0x3b8] sm:$0xff] %v2974_v25 }
 0x582   :  { %v2736_v16 = vpop.f32.mrf.mxu2 }
 0x583   :  { %v2849_v28 = vpop.f32.mrf.mxu3  ;;  %v2737_v60 = vadd.f32 %v2736_v16, %v2624_v40  ;;  %v2513_v23 = vpop.f32.mrf.mxu0 }
 0x584   :  { %v2514_v61 = vadd.f32 %v2513_v23, %v4962_v58 }
 0x585   :  { %v2850_v30 = vadd.f32 %v2849_v28, %v2737_v60  ;;  %v2626_v33 = vpop.f32.mrf.mxu1 }
 0x586   :  { %v2627_v17 = vadd.f32 %v2626_v33, %v2514_v61 }
 0x587   :  { %v2978_v27 = vmax.f32 %v2850_v30, 0.0 }
 0x589   :  { %3106 = vst [vmem:[#allocation5 + $0x3d8] sm:$0xff] %v2978_v27 }
 0x58a   :  { %v2739_v1 = vpop.f32.mrf.mxu2 }
 0x58b   :  { %v2740_v51 = vadd.f32 %v2739_v1, %v2627_v17  ;;  %v2852_v36 = vpop.f32.mrf.mxu3 }
 0x58d   :  { %v2853_v54 = vadd.f32 %v2852_v36, %v2740_v51 }
 0x58f   :  { %v2982_v3 = vmax.f32 %v2853_v54, 0.0 }
 0x591   :  { %3110 = vst [vmem:[#allocation5 + $0x3f8] sm:$0xff] %v2982_v3 }
 0x592   :  { %3123 = dma.vmem_to_hbm [thread:$0]  %s3116_s18, 16384, %s3118_s21, [#allocation4], %s3321_s23, %s3321_s23, %s3322_s24  }
 0x593   :  { %3318 = dma.done.wait [#allocation4], 16384  }
 0x594   :  { %3319 = vsyncadd [#allocation4], 4294950912 }
 0x595   :  { %3128 = vsyncpa [#allocation3], 1 }
 0x596   :  { %3129 = vsyncpa [#allocation4], 1 }

</bundles_post_ra>
